<compile_context>
chip_gen: v5e
topology: v5e:2x2
jax: 0.10.0
libtpu: 0.0.40
codegen_flags: <defaults>
</compile_context>

<pallas_src>
import jax
import jax.numpy as jnp
import numpy as np
from jax.experimental import pallas as pl
from jax.experimental.pallas import tpu as pltpu  # noqa: F401  (TPU backend)

OH = OW = 15        # conv output spatial (28 - 14 + 1)
KH = KW = 14        # conv kernel
IN_H = IN_W = 28    # input image
COUT = 10           # conv output channels
F2_OUT = 69
F3_OUT = 46
F5_OUT = 10


# ---------------------------------------------------------------------------
# Fused Pallas kernel
# ---------------------------------------------------------------------------
def _fused_kernel(x_ref, a_ref, w2_ref, b2_ref, w3_ref, w5_ref, out_ref):
    # x:  (B*28, 28)   rows = (b, h), lanes = w
    # a:  (14, 28, 150)   banded conv weight, feature index = ow*10 + c
    # w2: (15, 150, 69)   first Linear, stacked per conv output row oh
    # b2: (1, 69); w3: (69, 46); w5: (46, 10); out: (B, 10)
    B = out_ref.shape[0]

    def sigmoid(v):
        # tanh form -> EUP slot, no VALU divide, no exp(-v) overflow corner
        return 0.5 * (jnp.tanh(0.5 * v) + 1.0)

    x2 = x_ref[...]                                           # (B*28, 28)

    # --- Conv2d(1->10, 14x14, valid) + Sigmoid, entirely in VMEM ------------
    accs = [jnp.zeros((OH, OW * COUT), jnp.float32) for _ in range(B)]
    for kh in range(KH):
        p = jnp.dot(x2, a_ref[kh], preferred_element_type=jnp.float32)  # (B*28,150)
        for b in range(B):
            accs[b] = accs[b] + p[b * IN_H + kh: b * IN_H + kh + OH, :]
    feats = [sigmoid(a) for a in accs]        # B x (15, 150), feature = ow*10+c

    # --- Linear(2250 -> 69) + bias, as 15 lane-dense (B,150)@(150,69) slabs --
    h1 = jnp.zeros((B, F2_OUT), jnp.float32) + b2_ref[...]
    for oh in range(OH):
        rows = jnp.concatenate([feats[b][oh:oh + 1, :] for b in range(B)], axis=0)
        h1 = h1 + jnp.dot(rows, w2_ref[oh], preferred_element_type=jnp.float32)

    # --- Linear(69->46) -> Sigmoid -> Linear(46->10) -> LogSoftmax ----------
    h2 = jnp.dot(h1, w3_ref[...], preferred_element_type=jnp.float32)   # (B,46)
    h3 = sigmoid(h2)
    h4 = jnp.dot(h3, w5_ref[...], preferred_element_type=jnp.float32)   # (B,10)
    m = jnp.max(h4, axis=-1, keepdims=True)
    z = h4 - m
    lse = jnp.log(jnp.sum(jnp.exp(z), axis=-1, keepdims=True))
    out_ref[...] = z - lse


def _full_spec(shape):
    # single block covering the whole (small) array, grid=()
    return pl.BlockSpec(shape, lambda: (0,) * len(shape))


def fused_forward(x2, aband, w2s, b2r, w3_t, w5_t, batch):
    return pl.pallas_call(
        _fused_kernel,
        out_shape=jax.ShapeDtypeStruct((batch, F5_OUT), jnp.float32),
        grid=(),
        in_specs=[
            _full_spec(x2.shape),
            _full_spec(aband.shape),
            _full_spec(w2s.shape),
            _full_spec(b2r.shape),
            _full_spec(w3_t.shape),
            _full_spec(w5_t.shape),
        ],
        out_specs=_full_spec((batch, F5_OUT)),
    )(x2, aband, w2s, b2r, w3_t, w5_t)


# ---------------------------------------------------------------------------
# One-time parameter preprocessing (hoisted out of the hot path)
# ---------------------------------------------------------------------------
def prepare_params(conv_w, w2, b2, w3, w5):
    """Convert PyTorch-layout parameters to the kernel's layout. Run once."""
    cw = np.asarray(conv_w, np.float32).reshape(COUT, KH, KW)       # (c, kh, kw)

    # Banded conv matrices: aband[kh, ow+kw, ow*10+c] = cw[c, kh, kw]
    aband = np.zeros((KH, IN_W, OW * COUT), np.float32)             # (14, 28, 150)
    for kh in range(KH):
        for ow in range(OW):
            for kw in range(KW):
                aband[kh, ow + kw, ow * COUT:(ow + 1) * COUT] = cw[:, kh, kw]

    # First Linear: PyTorch flat feature index is c*225 + oh*15 + ow.
    # Our kernel feature order is (oh, ow*10+c) -> stack per oh:
    #   w2s[oh, ow*10+c, o] = w2[o, c*225 + oh*15 + ow]
    w2np = np.asarray(w2, np.float32).reshape(F2_OUT, COUT, OH, OW)  # (o,c,oh,ow)
    w2s = np.transpose(w2np, (2, 3, 1, 0)).reshape(OH, OW * COUT, F2_OUT)

    return (
        jnp.asarray(aband),
        jnp.asarray(w2s),
        jnp.asarray(b2, jnp.float32).reshape(1, F2_OUT),
        jnp.asarray(np.asarray(w3, np.float32).T),   # (69, 46)
        jnp.asarray(np.asarray(w5, np.float32).T),   # (46, 10)
    )


@jax.jit
def forward(x, aband, w2s, b2r, w3_t, w5_t):
    B = x.shape[0]
    x2 = x.reshape(B * IN_H, IN_W).astype(jnp.float32)   # free contiguous reshape
    return fused_forward(x2, aband, w2s, b2r, w3_t, w5_t, B)


# ---------------------------------------------------------------------------
# Pure-JAX reference (PyTorch semantics)
# ---------------------------------------------------------------------------
def reference(x, conv_w, w2, b2, w3, w5):
    B = x.shape[0]
    x_img = x.reshape(B, 1, IN_H, IN_W).astype(jnp.float32)
    out = jax.lax.conv_general_dilated(
        x_img, conv_w, window_strides=(1, 1), padding="VALID",
        dimension_numbers=("NCHW", "OIHW", "NCHW"))           # (B,10,15,15)
    out = jax.nn.sigmoid(out).reshape(B, COUT * OH * OW)      # PyTorch flatten order
    h1 = out @ w2.T + b2
    h2 = h1 @ w3.T
    h3 = jax.nn.sigmoid(h2)
    h4 = h3 @ w5.T
    return jax.nn.log_softmax(h4, axis=1)


# ---------------------------------------------------------------------------
# Main
# ---------------------------------------------------------------------------
if __name__ == "__main__":
    key = jax.random.PRNGKey(0)
    k_x, k_c, k_w2, k_b2, k_w3, k_w5 = jax.random.split(key, 6)

    B = 2
    x = jax.random.normal(k_x, (B, IN_H * IN_W), dtype=jnp.float32)

    # Deterministic parameter init (PyTorch-style uniform bounds).
    def u(k, shape, fan_in):
        bound = 1.0 / np.sqrt(fan_in)
        return jax.random.uniform(k, shape, jnp.float32, -bound, bound)

    conv_w = u(k_c, (COUT, 1, KH, KW), 1 * KH * KW)      # f0
    w2 = u(k_w2, (F2_OUT, COUT * OH * OW), COUT * OH * OW)  # f2 weight
    b2 = u(k_b2, (F2_OUT,), COUT * OH * OW)              # f2 bias
    w3 = u(k_w3, (F3_OUT, F2_OUT), F2_OUT)               # f3
    w5 = u(k_w5, (F5_OUT, F3_OUT), F3_OUT)               # f5

    # One-time layout fixups (NOT part of the jitted hot path).
    aband, w2s, b2r, w3_t, w5_t = prepare_params(conv_w, w2, b2, w3, w5)

    out = jax.block_until_ready(forward(x, aband, w2s, b2r, w3_t, w5_t))
    ref = jax.block_until_ready(reference(x, conv_w, w2, b2, w3, w5))
    np.testing.assert_allclose(np.asarray(out), np.asarray(ref),
                               rtol=1e-4, atol=2e-5)

    print("KERNEL_OK")
</pallas_src>

<mosaic_0001>
module attributes {stable_mosaic.version = 11 : i64} {
  func.func @_fused_kernel(%arg0: memref<56x28xf32, #tpu.memory_space<vmem>>, %arg1: memref<14x28x150xf32, #tpu.memory_space<vmem>>, %arg2: memref<15x150x69xf32, #tpu.memory_space<vmem>>, %arg3: memref<1x69xf32, #tpu.memory_space<vmem>>, %arg4: memref<69x46xf32, #tpu.memory_space<vmem>>, %arg5: memref<46x10xf32, #tpu.memory_space<vmem>>, %arg6: memref<2x10xf32, #tpu.memory_space<vmem>>) attributes {dimension_semantics = [], scalar_prefetch = 0 : i64, scratch_operands = 0 : i64, tpu.core_type = #tpu.core_type<tc>} {
    %c0 = arith.constant 0 : index
    %c0_0 = arith.constant 0 : index
    %0 = vector.load %arg0[%c0, %c0_0] : memref<56x28xf32, #tpu.memory_space<vmem>>, vector<56x28xf32>
    %cst = arith.constant 0.000000e+00 : f32
    %1 = vector.broadcast %cst : f32 to vector<15x150xf32>
    %cst_1 = arith.constant 0.000000e+00 : f32
    %2 = vector.broadcast %cst_1 : f32 to vector<15x150xf32>
    %c0_2 = arith.constant 0 : index
    %c0_3 = arith.constant 0 : index
    %c0_4 = arith.constant 0 : index
    %3 = vector.load %arg1[%c0_2, %c0_3, %c0_4] : memref<14x28x150xf32, #tpu.memory_space<vmem>>, vector<1x28x150xf32>
    %4 = vector.shape_cast %3 : vector<1x28x150xf32> to vector<28x150xf32>
    %cst_5 = arith.constant dense<0.000000e+00> : vector<56x150xf32>
    %5 = tpu.matmul %0, %4, %cst_5 {dimension_numbers = #tpu.dot_dimension_numbers<[1], [0], [0], [1], [0, 0, 1, 1], [], []>} : vector<56x28xf32>, vector<28x150xf32>, vector<56x150xf32> -> vector<56x150xf32>
    %6 = vector.extract_strided_slice %5 {offsets = [0, 0], sizes = [15, 150], strides = [1, 1]} : vector<56x150xf32> to vector<15x150xf32>
    %7 = arith.addf %1, %6 : vector<15x150xf32>
    %8 = vector.extract_strided_slice %5 {offsets = [28, 0], sizes = [15, 150], strides = [1, 1]} : vector<56x150xf32> to vector<15x150xf32>
    %9 = arith.addf %2, %8 : vector<15x150xf32>
    %c1 = arith.constant 1 : index
    %c0_6 = arith.constant 0 : index
    %c0_7 = arith.constant 0 : index
    %10 = vector.load %arg1[%c1, %c0_6, %c0_7] : memref<14x28x150xf32, #tpu.memory_space<vmem>>, vector<1x28x150xf32>
    %11 = vector.shape_cast %10 : vector<1x28x150xf32> to vector<28x150xf32>
    %cst_8 = arith.constant dense<0.000000e+00> : vector<56x150xf32>
    %12 = tpu.matmul %0, %11, %cst_8 {dimension_numbers = #tpu.dot_dimension_numbers<[1], [0], [0], [1], [0, 0, 1, 1], [], []>} : vector<56x28xf32>, vector<28x150xf32>, vector<56x150xf32> -> vector<56x150xf32>
    %13 = vector.extract_strided_slice %12 {offsets = [1, 0], sizes = [15, 150], strides = [1, 1]} : vector<56x150xf32> to vector<15x150xf32>
    %14 = arith.addf %7, %13 : vector<15x150xf32>
    %15 = vector.extract_strided_slice %12 {offsets = [29, 0], sizes = [15, 150], strides = [1, 1]} : vector<56x150xf32> to vector<15x150xf32>
    %16 = arith.addf %9, %15 : vector<15x150xf32>
    %c2 = arith.constant 2 : index
    %c0_9 = arith.constant 0 : index
    %c0_10 = arith.constant 0 : index
    %17 = vector.load %arg1[%c2, %c0_9, %c0_10] : memref<14x28x150xf32, #tpu.memory_space<vmem>>, vector<1x28x150xf32>
    %18 = vector.shape_cast %17 : vector<1x28x150xf32> to vector<28x150xf32>
    %cst_11 = arith.constant dense<0.000000e+00> : vector<56x150xf32>
    %19 = tpu.matmul %0, %18, %cst_11 {dimension_numbers = #tpu.dot_dimension_numbers<[1], [0], [0], [1], [0, 0, 1, 1], [], []>} : vector<56x28xf32>, vector<28x150xf32>, vector<56x150xf32> -> vector<56x150xf32>
    %20 = vector.extract_strided_slice %19 {offsets = [2, 0], sizes = [15, 150], strides = [1, 1]} : vector<56x150xf32> to vector<15x150xf32>
    %21 = arith.addf %14, %20 : vector<15x150xf32>
    %22 = vector.extract_strided_slice %19 {offsets = [30, 0], sizes = [15, 150], strides = [1, 1]} : vector<56x150xf32> to vector<15x150xf32>
    %23 = arith.addf %16, %22 : vector<15x150xf32>
    %c3 = arith.constant 3 : index
    %c0_12 = arith.constant 0 : index
    %c0_13 = arith.constant 0 : index
    %24 = vector.load %arg1[%c3, %c0_12, %c0_13] : memref<14x28x150xf32, #tpu.memory_space<vmem>>, vector<1x28x150xf32>
    %25 = vector.shape_cast %24 : vector<1x28x150xf32> to vector<28x150xf32>
    %cst_14 = arith.constant dense<0.000000e+00> : vector<56x150xf32>
    %26 = tpu.matmul %0, %25, %cst_14 {dimension_numbers = #tpu.dot_dimension_numbers<[1], [0], [0], [1], [0, 0, 1, 1], [], []>} : vector<56x28xf32>, vector<28x150xf32>, vector<56x150xf32> -> vector<56x150xf32>
    %27 = vector.extract_strided_slice %26 {offsets = [3, 0], sizes = [15, 150], strides = [1, 1]} : vector<56x150xf32> to vector<15x150xf32>
    %28 = arith.addf %21, %27 : vector<15x150xf32>
    %29 = vector.extract_strided_slice %26 {offsets = [31, 0], sizes = [15, 150], strides = [1, 1]} : vector<56x150xf32> to vector<15x150xf32>
    %30 = arith.addf %23, %29 : vector<15x150xf32>
    %c4 = arith.constant 4 : index
    %c0_15 = arith.constant 0 : index
    %c0_16 = arith.constant 0 : index
    %31 = vector.load %arg1[%c4, %c0_15, %c0_16] : memref<14x28x150xf32, #tpu.memory_space<vmem>>, vector<1x28x150xf32>
    %32 = vector.shape_cast %31 : vector<1x28x150xf32> to vector<28x150xf32>
    %cst_17 = arith.constant dense<0.000000e+00> : vector<56x150xf32>
    %33 = tpu.matmul %0, %32, %cst_17 {dimension_numbers = #tpu.dot_dimension_numbers<[1], [0], [0], [1], [0, 0, 1, 1], [], []>} : vector<56x28xf32>, vector<28x150xf32>, vector<56x150xf32> -> vector<56x150xf32>
    %34 = vector.extract_strided_slice %33 {offsets = [4, 0], sizes = [15, 150], strides = [1, 1]} : vector<56x150xf32> to vector<15x150xf32>
    %35 = arith.addf %28, %34 : vector<15x150xf32>
    %36 = vector.extract_strided_slice %33 {offsets = [32, 0], sizes = [15, 150], strides = [1, 1]} : vector<56x150xf32> to vector<15x150xf32>
    %37 = arith.addf %30, %36 : vector<15x150xf32>
    %c5 = arith.constant 5 : index
    %c0_18 = arith.constant 0 : index
    %c0_19 = arith.constant 0 : index
    %38 = vector.load %arg1[%c5, %c0_18, %c0_19] : memref<14x28x150xf32, #tpu.memory_space<vmem>>, vector<1x28x150xf32>
    %39 = vector.shape_cast %38 : vector<1x28x150xf32> to vector<28x150xf32>
    %cst_20 = arith.constant dense<0.000000e+00> : vector<56x150xf32>
    %40 = tpu.matmul %0, %39, %cst_20 {dimension_numbers = #tpu.dot_dimension_numbers<[1], [0], [0], [1], [0, 0, 1, 1], [], []>} : vector<56x28xf32>, vector<28x150xf32>, vector<56x150xf32> -> vector<56x150xf32>
    %41 = vector.extract_strided_slice %40 {offsets = [5, 0], sizes = [15, 150], strides = [1, 1]} : vector<56x150xf32> to vector<15x150xf32>
    %42 = arith.addf %35, %41 : vector<15x150xf32>
    %43 = vector.extract_strided_slice %40 {offsets = [33, 0], sizes = [15, 150], strides = [1, 1]} : vector<56x150xf32> to vector<15x150xf32>
    %44 = arith.addf %37, %43 : vector<15x150xf32>
    %c6 = arith.constant 6 : index
    %c0_21 = arith.constant 0 : index
    %c0_22 = arith.constant 0 : index
    %45 = vector.load %arg1[%c6, %c0_21, %c0_22] : memref<14x28x150xf32, #tpu.memory_space<vmem>>, vector<1x28x150xf32>
    %46 = vector.shape_cast %45 : vector<1x28x150xf32> to vector<28x150xf32>
    %cst_23 = arith.constant dense<0.000000e+00> : vector<56x150xf32>
    %47 = tpu.matmul %0, %46, %cst_23 {dimension_numbers = #tpu.dot_dimension_numbers<[1], [0], [0], [1], [0, 0, 1, 1], [], []>} : vector<56x28xf32>, vector<28x150xf32>, vector<56x150xf32> -> vector<56x150xf32>
    %48 = vector.extract_strided_slice %47 {offsets = [6, 0], sizes = [15, 150], strides = [1, 1]} : vector<56x150xf32> to vector<15x150xf32>
    %49 = arith.addf %42, %48 : vector<15x150xf32>
    %50 = vector.extract_strided_slice %47 {offsets = [34, 0], sizes = [15, 150], strides = [1, 1]} : vector<56x150xf32> to vector<15x150xf32>
    %51 = arith.addf %44, %50 : vector<15x150xf32>
    %c7 = arith.constant 7 : index
    %c0_24 = arith.constant 0 : index
    %c0_25 = arith.constant 0 : index
    %52 = vector.load %arg1[%c7, %c0_24, %c0_25] : memref<14x28x150xf32, #tpu.memory_space<vmem>>, vector<1x28x150xf32>
    %53 = vector.shape_cast %52 : vector<1x28x150xf32> to vector<28x150xf32>
    %cst_26 = arith.constant dense<0.000000e+00> : vector<56x150xf32>
    %54 = tpu.matmul %0, %53, %cst_26 {dimension_numbers = #tpu.dot_dimension_numbers<[1], [0], [0], [1], [0, 0, 1, 1], [], []>} : vector<56x28xf32>, vector<28x150xf32>, vector<56x150xf32> -> vector<56x150xf32>
    %55 = vector.extract_strided_slice %54 {offsets = [7, 0], sizes = [15, 150], strides = [1, 1]} : vector<56x150xf32> to vector<15x150xf32>
    %56 = arith.addf %49, %55 : vector<15x150xf32>
    %57 = vector.extract_strided_slice %54 {offsets = [35, 0], sizes = [15, 150], strides = [1, 1]} : vector<56x150xf32> to vector<15x150xf32>
    %58 = arith.addf %51, %57 : vector<15x150xf32>
    %c8 = arith.constant 8 : index
    %c0_27 = arith.constant 0 : index
    %c0_28 = arith.constant 0 : index
    %59 = vector.load %arg1[%c8, %c0_27, %c0_28] : memref<14x28x150xf32, #tpu.memory_space<vmem>>, vector<1x28x150xf32>
    %60 = vector.shape_cast %59 : vector<1x28x150xf32> to vector<28x150xf32>
    %cst_29 = arith.constant dense<0.000000e+00> : vector<56x150xf32>
    %61 = tpu.matmul %0, %60, %cst_29 {dimension_numbers = #tpu.dot_dimension_numbers<[1], [0], [0], [1], [0, 0, 1, 1], [], []>} : vector<56x28xf32>, vector<28x150xf32>, vector<56x150xf32> -> vector<56x150xf32>
    %62 = vector.extract_strided_slice %61 {offsets = [8, 0], sizes = [15, 150], strides = [1, 1]} : vector<56x150xf32> to vector<15x150xf32>
    %63 = arith.addf %56, %62 : vector<15x150xf32>
    %64 = vector.extract_strided_slice %61 {offsets = [36, 0], sizes = [15, 150], strides = [1, 1]} : vector<56x150xf32> to vector<15x150xf32>
    %65 = arith.addf %58, %64 : vector<15x150xf32>
    %c9 = arith.constant 9 : index
    %c0_30 = arith.constant 0 : index
    %c0_31 = arith.constant 0 : index
    %66 = vector.load %arg1[%c9, %c0_30, %c0_31] : memref<14x28x150xf32, #tpu.memory_space<vmem>>, vector<1x28x150xf32>
    %67 = vector.shape_cast %66 : vector<1x28x150xf32> to vector<28x150xf32>
    %cst_32 = arith.constant dense<0.000000e+00> : vector<56x150xf32>
    %68 = tpu.matmul %0, %67, %cst_32 {dimension_numbers = #tpu.dot_dimension_numbers<[1], [0], [0], [1], [0, 0, 1, 1], [], []>} : vector<56x28xf32>, vector<28x150xf32>, vector<56x150xf32> -> vector<56x150xf32>
    %69 = vector.extract_strided_slice %68 {offsets = [9, 0], sizes = [15, 150], strides = [1, 1]} : vector<56x150xf32> to vector<15x150xf32>
    %70 = arith.addf %63, %69 : vector<15x150xf32>
    %71 = vector.extract_strided_slice %68 {offsets = [37, 0], sizes = [15, 150], strides = [1, 1]} : vector<56x150xf32> to vector<15x150xf32>
    %72 = arith.addf %65, %71 : vector<15x150xf32>
    %c10 = arith.constant 10 : index
    %c0_33 = arith.constant 0 : index
    %c0_34 = arith.constant 0 : index
    %73 = vector.load %arg1[%c10, %c0_33, %c0_34] : memref<14x28x150xf32, #tpu.memory_space<vmem>>, vector<1x28x150xf32>
    %74 = vector.shape_cast %73 : vector<1x28x150xf32> to vector<28x150xf32>
    %cst_35 = arith.constant dense<0.000000e+00> : vector<56x150xf32>
    %75 = tpu.matmul %0, %74, %cst_35 {dimension_numbers = #tpu.dot_dimension_numbers<[1], [0], [0], [1], [0, 0, 1, 1], [], []>} : vector<56x28xf32>, vector<28x150xf32>, vector<56x150xf32> -> vector<56x150xf32>
    %76 = vector.extract_strided_slice %75 {offsets = [10, 0], sizes = [15, 150], strides = [1, 1]} : vector<56x150xf32> to vector<15x150xf32>
    %77 = arith.addf %70, %76 : vector<15x150xf32>
    %78 = vector.extract_strided_slice %75 {offsets = [38, 0], sizes = [15, 150], strides = [1, 1]} : vector<56x150xf32> to vector<15x150xf32>
    %79 = arith.addf %72, %78 : vector<15x150xf32>
    %c11 = arith.constant 11 : index
    %c0_36 = arith.constant 0 : index
    %c0_37 = arith.constant 0 : index
    %80 = vector.load %arg1[%c11, %c0_36, %c0_37] : memref<14x28x150xf32, #tpu.memory_space<vmem>>, vector<1x28x150xf32>
    %81 = vector.shape_cast %80 : vector<1x28x150xf32> to vector<28x150xf32>
    %cst_38 = arith.constant dense<0.000000e+00> : vector<56x150xf32>
    %82 = tpu.matmul %0, %81, %cst_38 {dimension_numbers = #tpu.dot_dimension_numbers<[1], [0], [0], [1], [0, 0, 1, 1], [], []>} : vector<56x28xf32>, vector<28x150xf32>, vector<56x150xf32> -> vector<56x150xf32>
    %83 = vector.extract_strided_slice %82 {offsets = [11, 0], sizes = [15, 150], strides = [1, 1]} : vector<56x150xf32> to vector<15x150xf32>
    %84 = arith.addf %77, %83 : vector<15x150xf32>
    %85 = vector.extract_strided_slice %82 {offsets = [39, 0], sizes = [15, 150], strides = [1, 1]} : vector<56x150xf32> to vector<15x150xf32>
    %86 = arith.addf %79, %85 : vector<15x150xf32>
    %c12 = arith.constant 12 : index
    %c0_39 = arith.constant 0 : index
    %c0_40 = arith.constant 0 : index
    %87 = vector.load %arg1[%c12, %c0_39, %c0_40] : memref<14x28x150xf32, #tpu.memory_space<vmem>>, vector<1x28x150xf32>
    %88 = vector.shape_cast %87 : vector<1x28x150xf32> to vector<28x150xf32>
    %cst_41 = arith.constant dense<0.000000e+00> : vector<56x150xf32>
    %89 = tpu.matmul %0, %88, %cst_41 {dimension_numbers = #tpu.dot_dimension_numbers<[1], [0], [0], [1], [0, 0, 1, 1], [], []>} : vector<56x28xf32>, vector<28x150xf32>, vector<56x150xf32> -> vector<56x150xf32>
    %90 = vector.extract_strided_slice %89 {offsets = [12, 0], sizes = [15, 150], strides = [1, 1]} : vector<56x150xf32> to vector<15x150xf32>
    %91 = arith.addf %84, %90 : vector<15x150xf32>
    %92 = vector.extract_strided_slice %89 {offsets = [40, 0], sizes = [15, 150], strides = [1, 1]} : vector<56x150xf32> to vector<15x150xf32>
    %93 = arith.addf %86, %92 : vector<15x150xf32>
    %c13 = arith.constant 13 : index
    %c0_42 = arith.constant 0 : index
    %c0_43 = arith.constant 0 : index
    %94 = vector.load %arg1[%c13, %c0_42, %c0_43] : memref<14x28x150xf32, #tpu.memory_space<vmem>>, vector<1x28x150xf32>
    %95 = vector.shape_cast %94 : vector<1x28x150xf32> to vector<28x150xf32>
    %cst_44 = arith.constant dense<0.000000e+00> : vector<56x150xf32>
    %96 = tpu.matmul %0, %95, %cst_44 {dimension_numbers = #tpu.dot_dimension_numbers<[1], [0], [0], [1], [0, 0, 1, 1], [], []>} : vector<56x28xf32>, vector<28x150xf32>, vector<56x150xf32> -> vector<56x150xf32>
    %97 = vector.extract_strided_slice %96 {offsets = [13, 0], sizes = [15, 150], strides = [1, 1]} : vector<56x150xf32> to vector<15x150xf32>
    %98 = arith.addf %91, %97 : vector<15x150xf32>
    %99 = vector.extract_strided_slice %96 {offsets = [41, 0], sizes = [15, 150], strides = [1, 1]} : vector<56x150xf32> to vector<15x150xf32>
    %100 = arith.addf %93, %99 : vector<15x150xf32>
    %cst_45 = arith.constant 5.000000e-01 : f32
    %101 = vector.broadcast %cst_45 : f32 to vector<15x150xf32>
    %102 = arith.mulf %101, %98 : vector<15x150xf32>
    %103 = math.tanh %102 : vector<15x150xf32>
    %cst_46 = arith.constant 1.000000e+00 : f32
    %104 = vector.broadcast %cst_46 : f32 to vector<15x150xf32>
    %105 = arith.addf %103, %104 : vector<15x150xf32>
    %cst_47 = arith.constant 5.000000e-01 : f32
    %106 = vector.broadcast %cst_47 : f32 to vector<15x150xf32>
    %107 = arith.mulf %106, %105 : vector<15x150xf32>
    %cst_48 = arith.constant 5.000000e-01 : f32
    %108 = vector.broadcast %cst_48 : f32 to vector<15x150xf32>
    %109 = arith.mulf %108, %100 : vector<15x150xf32>
    %110 = math.tanh %109 : vector<15x150xf32>
    %cst_49 = arith.constant 1.000000e+00 : f32
    %111 = vector.broadcast %cst_49 : f32 to vector<15x150xf32>
    %112 = arith.addf %110, %111 : vector<15x150xf32>
    %cst_50 = arith.constant 5.000000e-01 : f32
    %113 = vector.broadcast %cst_50 : f32 to vector<15x150xf32>
    %114 = arith.mulf %113, %112 : vector<15x150xf32>
    %cst_51 = arith.constant 0.000000e+00 : f32
    %115 = vector.broadcast %cst_51 : f32 to vector<2x69xf32>
    %c0_52 = arith.constant 0 : index
    %c0_53 = arith.constant 0 : index
    %116 = vector.load %arg3[%c0_52, %c0_53] : memref<1x69xf32, #tpu.memory_space<vmem>>, vector<1x69xf32>
    %117 = vector.broadcast %116 : vector<1x69xf32> to vector<2x69xf32>
    %118 = arith.addf %115, %117 : vector<2x69xf32>
    %119 = vector.extract_strided_slice %107 {offsets = [0, 0], sizes = [1, 150], strides = [1, 1]} : vector<15x150xf32> to vector<1x150xf32>
    %120 = vector.extract_strided_slice %114 {offsets = [0, 0], sizes = [1, 150], strides = [1, 1]} : vector<15x150xf32> to vector<1x150xf32>
    %121 = tpu.concatenate %119, %120 in 0 : vector<1x150xf32>, vector<1x150xf32> -> vector<2x150xf32>
    %c0_54 = arith.constant 0 : index
    %c0_55 = arith.constant 0 : index
    %c0_56 = arith.constant 0 : index
    %122 = vector.load %arg2[%c0_54, %c0_55, %c0_56] : memref<15x150x69xf32, #tpu.memory_space<vmem>>, vector<1x150x69xf32>
    %123 = vector.shape_cast %122 : vector<1x150x69xf32> to vector<150x69xf32>
    %cst_57 = arith.constant dense<0.000000e+00> : vector<2x69xf32>
    %124 = tpu.matmul %121, %123, %cst_57 {dimension_numbers = #tpu.dot_dimension_numbers<[1], [0], [0], [1], [0, 0, 1, 1], [], []>} : vector<2x150xf32>, vector<150x69xf32>, vector<2x69xf32> -> vector<2x69xf32>
    %125 = arith.addf %118, %124 : vector<2x69xf32>
    %126 = vector.extract_strided_slice %107 {offsets = [1, 0], sizes = [1, 150], strides = [1, 1]} : vector<15x150xf32> to vector<1x150xf32>
    %127 = vector.extract_strided_slice %114 {offsets = [1, 0], sizes = [1, 150], strides = [1, 1]} : vector<15x150xf32> to vector<1x150xf32>
    %128 = tpu.concatenate %126, %127 in 0 : vector<1x150xf32>, vector<1x150xf32> -> vector<2x150xf32>
    %c1_58 = arith.constant 1 : index
    %c0_59 = arith.constant 0 : index
    %c0_60 = arith.constant 0 : index
    %129 = vector.load %arg2[%c1_58, %c0_59, %c0_60] : memref<15x150x69xf32, #tpu.memory_space<vmem>>, vector<1x150x69xf32>
    %130 = vector.shape_cast %129 : vector<1x150x69xf32> to vector<150x69xf32>
    %cst_61 = arith.constant dense<0.000000e+00> : vector<2x69xf32>
    %131 = tpu.matmul %128, %130, %cst_61 {dimension_numbers = #tpu.dot_dimension_numbers<[1], [0], [0], [1], [0, 0, 1, 1], [], []>} : vector<2x150xf32>, vector<150x69xf32>, vector<2x69xf32> -> vector<2x69xf32>
    %132 = arith.addf %125, %131 : vector<2x69xf32>
    %133 = vector.extract_strided_slice %107 {offsets = [2, 0], sizes = [1, 150], strides = [1, 1]} : vector<15x150xf32> to vector<1x150xf32>
    %134 = vector.extract_strided_slice %114 {offsets = [2, 0], sizes = [1, 150], strides = [1, 1]} : vector<15x150xf32> to vector<1x150xf32>
    %135 = tpu.concatenate %133, %134 in 0 : vector<1x150xf32>, vector<1x150xf32> -> vector<2x150xf32>
    %c2_62 = arith.constant 2 : index
    %c0_63 = arith.constant 0 : index
    %c0_64 = arith.constant 0 : index
    %136 = vector.load %arg2[%c2_62, %c0_63, %c0_64] : memref<15x150x69xf32, #tpu.memory_space<vmem>>, vector<1x150x69xf32>
    %137 = vector.shape_cast %136 : vector<1x150x69xf32> to vector<150x69xf32>
    %cst_65 = arith.constant dense<0.000000e+00> : vector<2x69xf32>
    %138 = tpu.matmul %135, %137, %cst_65 {dimension_numbers = #tpu.dot_dimension_numbers<[1], [0], [0], [1], [0, 0, 1, 1], [], []>} : vector<2x150xf32>, vector<150x69xf32>, vector<2x69xf32> -> vector<2x69xf32>
    %139 = arith.addf %132, %138 : vector<2x69xf32>
    %140 = vector.extract_strided_slice %107 {offsets = [3, 0], sizes = [1, 150], strides = [1, 1]} : vector<15x150xf32> to vector<1x150xf32>
    %141 = vector.extract_strided_slice %114 {offsets = [3, 0], sizes = [1, 150], strides = [1, 1]} : vector<15x150xf32> to vector<1x150xf32>
    %142 = tpu.concatenate %140, %141 in 0 : vector<1x150xf32>, vector<1x150xf32> -> vector<2x150xf32>
    %c3_66 = arith.constant 3 : index
    %c0_67 = arith.constant 0 : index
    %c0_68 = arith.constant 0 : index
    %143 = vector.load %arg2[%c3_66, %c0_67, %c0_68] : memref<15x150x69xf32, #tpu.memory_space<vmem>>, vector<1x150x69xf32>
    %144 = vector.shape_cast %143 : vector<1x150x69xf32> to vector<150x69xf32>
    %cst_69 = arith.constant dense<0.000000e+00> : vector<2x69xf32>
    %145 = tpu.matmul %142, %144, %cst_69 {dimension_numbers = #tpu.dot_dimension_numbers<[1], [0], [0], [1], [0, 0, 1, 1], [], []>} : vector<2x150xf32>, vector<150x69xf32>, vector<2x69xf32> -> vector<2x69xf32>
    %146 = arith.addf %139, %145 : vector<2x69xf32>
    %147 = vector.extract_strided_slice %107 {offsets = [4, 0], sizes = [1, 150], strides = [1, 1]} : vector<15x150xf32> to vector<1x150xf32>
    %148 = vector.extract_strided_slice %114 {offsets = [4, 0], sizes = [1, 150], strides = [1, 1]} : vector<15x150xf32> to vector<1x150xf32>
    %149 = tpu.concatenate %147, %148 in 0 : vector<1x150xf32>, vector<1x150xf32> -> vector<2x150xf32>
    %c4_70 = arith.constant 4 : index
    %c0_71 = arith.constant 0 : index
    %c0_72 = arith.constant 0 : index
    %150 = vector.load %arg2[%c4_70, %c0_71, %c0_72] : memref<15x150x69xf32, #tpu.memory_space<vmem>>, vector<1x150x69xf32>
    %151 = vector.shape_cast %150 : vector<1x150x69xf32> to vector<150x69xf32>
    %cst_73 = arith.constant dense<0.000000e+00> : vector<2x69xf32>
    %152 = tpu.matmul %149, %151, %cst_73 {dimension_numbers = #tpu.dot_dimension_numbers<[1], [0], [0], [1], [0, 0, 1, 1], [], []>} : vector<2x150xf32>, vector<150x69xf32>, vector<2x69xf32> -> vector<2x69xf32>
    %153 = arith.addf %146, %152 : vector<2x69xf32>
    %154 = vector.extract_strided_slice %107 {offsets = [5, 0], sizes = [1, 150], strides = [1, 1]} : vector<15x150xf32> to vector<1x150xf32>
    %155 = vector.extract_strided_slice %114 {offsets = [5, 0], sizes = [1, 150], strides = [1, 1]} : vector<15x150xf32> to vector<1x150xf32>
    %156 = tpu.concatenate %154, %155 in 0 : vector<1x150xf32>, vector<1x150xf32> -> vector<2x150xf32>
    %c5_74 = arith.constant 5 : index
    %c0_75 = arith.constant 0 : index
    %c0_76 = arith.constant 0 : index
    %157 = vector.load %arg2[%c5_74, %c0_75, %c0_76] : memref<15x150x69xf32, #tpu.memory_space<vmem>>, vector<1x150x69xf32>
    %158 = vector.shape_cast %157 : vector<1x150x69xf32> to vector<150x69xf32>
    %cst_77 = arith.constant dense<0.000000e+00> : vector<2x69xf32>
    %159 = tpu.matmul %156, %158, %cst_77 {dimension_numbers = #tpu.dot_dimension_numbers<[1], [0], [0], [1], [0, 0, 1, 1], [], []>} : vector<2x150xf32>, vector<150x69xf32>, vector<2x69xf32> -> vector<2x69xf32>
    %160 = arith.addf %153, %159 : vector<2x69xf32>
    %161 = vector.extract_strided_slice %107 {offsets = [6, 0], sizes = [1, 150], strides = [1, 1]} : vector<15x150xf32> to vector<1x150xf32>
    %162 = vector.extract_strided_slice %114 {offsets = [6, 0], sizes = [1, 150], strides = [1, 1]} : vector<15x150xf32> to vector<1x150xf32>
    %163 = tpu.concatenate %161, %162 in 0 : vector<1x150xf32>, vector<1x150xf32> -> vector<2x150xf32>
    %c6_78 = arith.constant 6 : index
    %c0_79 = arith.constant 0 : index
    %c0_80 = arith.constant 0 : index
    %164 = vector.load %arg2[%c6_78, %c0_79, %c0_80] : memref<15x150x69xf32, #tpu.memory_space<vmem>>, vector<1x150x69xf32>
    %165 = vector.shape_cast %164 : vector<1x150x69xf32> to vector<150x69xf32>
    %cst_81 = arith.constant dense<0.000000e+00> : vector<2x69xf32>
    %166 = tpu.matmul %163, %165, %cst_81 {dimension_numbers = #tpu.dot_dimension_numbers<[1], [0], [0], [1], [0, 0, 1, 1], [], []>} : vector<2x150xf32>, vector<150x69xf32>, vector<2x69xf32> -> vector<2x69xf32>
    %167 = arith.addf %160, %166 : vector<2x69xf32>
    %168 = vector.extract_strided_slice %107 {offsets = [7, 0], sizes = [1, 150], strides = [1, 1]} : vector<15x150xf32> to vector<1x150xf32>
    %169 = vector.extract_strided_slice %114 {offsets = [7, 0], sizes = [1, 150], strides = [1, 1]} : vector<15x150xf32> to vector<1x150xf32>
    %170 = tpu.concatenate %168, %169 in 0 : vector<1x150xf32>, vector<1x150xf32> -> vector<2x150xf32>
    %c7_82 = arith.constant 7 : index
    %c0_83 = arith.constant 0 : index
    %c0_84 = arith.constant 0 : index
    %171 = vector.load %arg2[%c7_82, %c0_83, %c0_84] : memref<15x150x69xf32, #tpu.memory_space<vmem>>, vector<1x150x69xf32>
    %172 = vector.shape_cast %171 : vector<1x150x69xf32> to vector<150x69xf32>
    %cst_85 = arith.constant dense<0.000000e+00> : vector<2x69xf32>
    %173 = tpu.matmul %170, %172, %cst_85 {dimension_numbers = #tpu.dot_dimension_numbers<[1], [0], [0], [1], [0, 0, 1, 1], [], []>} : vector<2x150xf32>, vector<150x69xf32>, vector<2x69xf32> -> vector<2x69xf32>
    %174 = arith.addf %167, %173 : vector<2x69xf32>
    %175 = vector.extract_strided_slice %107 {offsets = [8, 0], sizes = [1, 150], strides = [1, 1]} : vector<15x150xf32> to vector<1x150xf32>
    %176 = vector.extract_strided_slice %114 {offsets = [8, 0], sizes = [1, 150], strides = [1, 1]} : vector<15x150xf32> to vector<1x150xf32>
    %177 = tpu.concatenate %175, %176 in 0 : vector<1x150xf32>, vector<1x150xf32> -> vector<2x150xf32>
    %c8_86 = arith.constant 8 : index
    %c0_87 = arith.constant 0 : index
    %c0_88 = arith.constant 0 : index
    %178 = vector.load %arg2[%c8_86, %c0_87, %c0_88] : memref<15x150x69xf32, #tpu.memory_space<vmem>>, vector<1x150x69xf32>
    %179 = vector.shape_cast %178 : vector<1x150x69xf32> to vector<150x69xf32>
    %cst_89 = arith.constant dense<0.000000e+00> : vector<2x69xf32>
    %180 = tpu.matmul %177, %179, %cst_89 {dimension_numbers = #tpu.dot_dimension_numbers<[1], [0], [0], [1], [0, 0, 1, 1], [], []>} : vector<2x150xf32>, vector<150x69xf32>, vector<2x69xf32> -> vector<2x69xf32>
    %181 = arith.addf %174, %180 : vector<2x69xf32>
    %182 = vector.extract_strided_slice %107 {offsets = [9, 0], sizes = [1, 150], strides = [1, 1]} : vector<15x150xf32> to vector<1x150xf32>
    %183 = vector.extract_strided_slice %114 {offsets = [9, 0], sizes = [1, 150], strides = [1, 1]} : vector<15x150xf32> to vector<1x150xf32>
    %184 = tpu.concatenate %182, %183 in 0 : vector<1x150xf32>, vector<1x150xf32> -> vector<2x150xf32>
    %c9_90 = arith.constant 9 : index
    %c0_91 = arith.constant 0 : index
    %c0_92 = arith.constant 0 : index
    %185 = vector.load %arg2[%c9_90, %c0_91, %c0_92] : memref<15x150x69xf32, #tpu.memory_space<vmem>>, vector<1x150x69xf32>
    %186 = vector.shape_cast %185 : vector<1x150x69xf32> to vector<150x69xf32>
    %cst_93 = arith.constant dense<0.000000e+00> : vector<2x69xf32>
    %187 = tpu.matmul %184, %186, %cst_93 {dimension_numbers = #tpu.dot_dimension_numbers<[1], [0], [0], [1], [0, 0, 1, 1], [], []>} : vector<2x150xf32>, vector<150x69xf32>, vector<2x69xf32> -> vector<2x69xf32>
    %188 = arith.addf %181, %187 : vector<2x69xf32>
    %189 = vector.extract_strided_slice %107 {offsets = [10, 0], sizes = [1, 150], strides = [1, 1]} : vector<15x150xf32> to vector<1x150xf32>
    %190 = vector.extract_strided_slice %114 {offsets = [10, 0], sizes = [1, 150], strides = [1, 1]} : vector<15x150xf32> to vector<1x150xf32>
    %191 = tpu.concatenate %189, %190 in 0 : vector<1x150xf32>, vector<1x150xf32> -> vector<2x150xf32>
    %c10_94 = arith.constant 10 : index
    %c0_95 = arith.constant 0 : index
    %c0_96 = arith.constant 0 : index
    %192 = vector.load %arg2[%c10_94, %c0_95, %c0_96] : memref<15x150x69xf32, #tpu.memory_space<vmem>>, vector<1x150x69xf32>
    %193 = vector.shape_cast %192 : vector<1x150x69xf32> to vector<150x69xf32>
    %cst_97 = arith.constant dense<0.000000e+00> : vector<2x69xf32>
    %194 = tpu.matmul %191, %193, %cst_97 {dimension_numbers = #tpu.dot_dimension_numbers<[1], [0], [0], [1], [0, 0, 1, 1], [], []>} : vector<2x150xf32>, vector<150x69xf32>, vector<2x69xf32> -> vector<2x69xf32>
    %195 = arith.addf %188, %194 : vector<2x69xf32>
    %196 = vector.extract_strided_slice %107 {offsets = [11, 0], sizes = [1, 150], strides = [1, 1]} : vector<15x150xf32> to vector<1x150xf32>
    %197 = vector.extract_strided_slice %114 {offsets = [11, 0], sizes = [1, 150], strides = [1, 1]} : vector<15x150xf32> to vector<1x150xf32>
    %198 = tpu.concatenate %196, %197 in 0 : vector<1x150xf32>, vector<1x150xf32> -> vector<2x150xf32>
    %c11_98 = arith.constant 11 : index
    %c0_99 = arith.constant 0 : index
    %c0_100 = arith.constant 0 : index
    %199 = vector.load %arg2[%c11_98, %c0_99, %c0_100] : memref<15x150x69xf32, #tpu.memory_space<vmem>>, vector<1x150x69xf32>
    %200 = vector.shape_cast %199 : vector<1x150x69xf32> to vector<150x69xf32>
    %cst_101 = arith.constant dense<0.000000e+00> : vector<2x69xf32>
    %201 = tpu.matmul %198, %200, %cst_101 {dimension_numbers = #tpu.dot_dimension_numbers<[1], [0], [0], [1], [0, 0, 1, 1], [], []>} : vector<2x150xf32>, vector<150x69xf32>, vector<2x69xf32> -> vector<2x69xf32>
    %202 = arith.addf %195, %201 : vector<2x69xf32>
    %203 = vector.extract_strided_slice %107 {offsets = [12, 0], sizes = [1, 150], strides = [1, 1]} : vector<15x150xf32> to vector<1x150xf32>
    %204 = vector.extract_strided_slice %114 {offsets = [12, 0], sizes = [1, 150], strides = [1, 1]} : vector<15x150xf32> to vector<1x150xf32>
    %205 = tpu.concatenate %203, %204 in 0 : vector<1x150xf32>, vector<1x150xf32> -> vector<2x150xf32>
    %c12_102 = arith.constant 12 : index
    %c0_103 = arith.constant 0 : index
    %c0_104 = arith.constant 0 : index
    %206 = vector.load %arg2[%c12_102, %c0_103, %c0_104] : memref<15x150x69xf32, #tpu.memory_space<vmem>>, vector<1x150x69xf32>
    %207 = vector.shape_cast %206 : vector<1x150x69xf32> to vector<150x69xf32>
    %cst_105 = arith.constant dense<0.000000e+00> : vector<2x69xf32>
    %208 = tpu.matmul %205, %207, %cst_105 {dimension_numbers = #tpu.dot_dimension_numbers<[1], [0], [0], [1], [0, 0, 1, 1], [], []>} : vector<2x150xf32>, vector<150x69xf32>, vector<2x69xf32> -> vector<2x69xf32>
    %209 = arith.addf %202, %208 : vector<2x69xf32>
    %210 = vector.extract_strided_slice %107 {offsets = [13, 0], sizes = [1, 150], strides = [1, 1]} : vector<15x150xf32> to vector<1x150xf32>
    %211 = vector.extract_strided_slice %114 {offsets = [13, 0], sizes = [1, 150], strides = [1, 1]} : vector<15x150xf32> to vector<1x150xf32>
    %212 = tpu.concatenate %210, %211 in 0 : vector<1x150xf32>, vector<1x150xf32> -> vector<2x150xf32>
    %c13_106 = arith.constant 13 : index
    %c0_107 = arith.constant 0 : index
    %c0_108 = arith.constant 0 : index
    %213 = vector.load %arg2[%c13_106, %c0_107, %c0_108] : memref<15x150x69xf32, #tpu.memory_space<vmem>>, vector<1x150x69xf32>
    %214 = vector.shape_cast %213 : vector<1x150x69xf32> to vector<150x69xf32>
    %cst_109 = arith.constant dense<0.000000e+00> : vector<2x69xf32>
    %215 = tpu.matmul %212, %214, %cst_109 {dimension_numbers = #tpu.dot_dimension_numbers<[1], [0], [0], [1], [0, 0, 1, 1], [], []>} : vector<2x150xf32>, vector<150x69xf32>, vector<2x69xf32> -> vector<2x69xf32>
    %216 = arith.addf %209, %215 : vector<2x69xf32>
    %217 = vector.extract_strided_slice %107 {offsets = [14, 0], sizes = [1, 150], strides = [1, 1]} : vector<15x150xf32> to vector<1x150xf32>
    %218 = vector.extract_strided_slice %114 {offsets = [14, 0], sizes = [1, 150], strides = [1, 1]} : vector<15x150xf32> to vector<1x150xf32>
    %219 = tpu.concatenate %217, %218 in 0 : vector<1x150xf32>, vector<1x150xf32> -> vector<2x150xf32>
    %c14 = arith.constant 14 : index
    %c0_110 = arith.constant 0 : index
    %c0_111 = arith.constant 0 : index
    %220 = vector.load %arg2[%c14, %c0_110, %c0_111] : memref<15x150x69xf32, #tpu.memory_space<vmem>>, vector<1x150x69xf32>
    %221 = vector.shape_cast %220 : vector<1x150x69xf32> to vector<150x69xf32>
    %cst_112 = arith.constant dense<0.000000e+00> : vector<2x69xf32>
    %222 = tpu.matmul %219, %221, %cst_112 {dimension_numbers = #tpu.dot_dimension_numbers<[1], [0], [0], [1], [0, 0, 1, 1], [], []>} : vector<2x150xf32>, vector<150x69xf32>, vector<2x69xf32> -> vector<2x69xf32>
    %223 = arith.addf %216, %222 : vector<2x69xf32>
    %c0_113 = arith.constant 0 : index
    %c0_114 = arith.constant 0 : index
    %224 = vector.load %arg4[%c0_113, %c0_114] : memref<69x46xf32, #tpu.memory_space<vmem>>, vector<69x46xf32>
    %cst_115 = arith.constant dense<0.000000e+00> : vector<2x46xf32>
    %225 = tpu.matmul %223, %224, %cst_115 {dimension_numbers = #tpu.dot_dimension_numbers<[1], [0], [0], [1], [0, 0, 1, 1], [], []>} : vector<2x69xf32>, vector<69x46xf32>, vector<2x46xf32> -> vector<2x46xf32>
    %cst_116 = arith.constant 5.000000e-01 : f32
    %226 = vector.broadcast %cst_116 : f32 to vector<2x46xf32>
    %227 = arith.mulf %226, %225 : vector<2x46xf32>
    %228 = math.tanh %227 : vector<2x46xf32>
    %cst_117 = arith.constant 1.000000e+00 : f32
    %229 = vector.broadcast %cst_117 : f32 to vector<2x46xf32>
    %230 = arith.addf %228, %229 : vector<2x46xf32>
    %cst_118 = arith.constant 5.000000e-01 : f32
    %231 = vector.broadcast %cst_118 : f32 to vector<2x46xf32>
    %232 = arith.mulf %231, %230 : vector<2x46xf32>
    %c0_119 = arith.constant 0 : index
    %c0_120 = arith.constant 0 : index
    %233 = vector.load %arg5[%c0_119, %c0_120] : memref<46x10xf32, #tpu.memory_space<vmem>>, vector<46x10xf32>
    %cst_121 = arith.constant dense<0.000000e+00> : vector<2x10xf32>
    %234 = tpu.matmul %232, %233, %cst_121 {dimension_numbers = #tpu.dot_dimension_numbers<[1], [0], [0], [1], [0, 0, 1, 1], [], []>} : vector<2x46xf32>, vector<46x10xf32>, vector<2x10xf32> -> vector<2x10xf32>
    %cst_122 = arith.constant dense<0xFF800000> : vector<2xf32>
    %235 = vector.multi_reduction <maximumf>, %234, %cst_122 [1] : vector<2x10xf32> to vector<2xf32>
    %236 = vector.shape_cast %235 : vector<2xf32> to vector<2x1xf32>
    %237 = vector.broadcast %236 : vector<2x1xf32> to vector<2x10xf32>
    %238 = arith.subf %234, %237 : vector<2x10xf32>
    %239 = math.exp %238 : vector<2x10xf32>
    %cst_123 = arith.constant dense<0.000000e+00> : vector<2xf32>
    %240 = vector.multi_reduction <add>, %239, %cst_123 [1] : vector<2x10xf32> to vector<2xf32>
    %241 = vector.shape_cast %240 : vector<2xf32> to vector<2x1xf32>
    %242 = math.log %241 : vector<2x1xf32>
    %243 = vector.broadcast %242 : vector<2x1xf32> to vector<2x10xf32>
    %244 = arith.subf %238, %243 : vector<2x10xf32>
    %c0_124 = arith.constant 0 : index
    %c0_125 = arith.constant 0 : index
    %245 = vector.load %arg6[%c0_124, %c0_125] : memref<2x10xf32, #tpu.memory_space<vmem>>, vector<2x10xf32>
    tpu.vector_store %arg6[%c0_124, %c0_125], %244 {strides = array<i32>} : memref<2x10xf32, #tpu.memory_space<vmem>>, vector<2x10xf32>,
    return
  }
}

</mosaic_0001>

<bundles_post_ra>
// kernel: forward.1
= control target key start
LH: loop header
LB: loop body
LE: loop exit
PB: predicated region body
PF: predicated region fallthrough
CT: control target
= control target key end

     0   :  { %vm61_vm0 = vcmask 1043456   ;;  %vm39_vm1 = vcmask 228352   ;;  %s6257_s0 = inlined_call_operand.vmem [shape: f32[56,28], index: 0, kind: input, shape index: {}]   ;;  %s6258_s1 = inlined_call_operand.vmem [shape: f32[14,28,150], index: 1, kind: input, shape index: {}]   ;;  %s6259_s2 = inlined_call_operand.vmem [shape: f32[15,150,69], index: 2, kind: input, shape index: {}]   ;;  %s6260_s3 = inlined_call_operand.vmem [shape: f32[1,69], index: 3, kind: input, shape index: {}]   ;;  %s6261_s4 = inlined_call_operand.vmem [shape: f32[69,46], index: 4, kind: input, shape index: {}]   ;;  %s6262_s5 = inlined_call_operand.vmem [shape: f32[46,10], index: 5, kind: input, shape index: {}]   ;;  %s6263_s6 = inlined_call_operand.hbm [shape: f32[2,10], index: 6, kind: output, shape index: {}]  }
   0x1   :  { %v37_v0 = vld [vmem:[%s6258_s1 + $0x30] sm:$0xf]  ;;  %v38_v1 = vld [vmem:[%s6258_s1 + $0x38] sm:$0xf]  ;;  %v35_v2 = vld [vmem:[%s6258_s1 + $0x20] sm:$0xff] }
   0x2   :  { %3194 = vmatpush.msk.msra.mxu0 %vm61_vm0, %v37_v0  ;;  %3202 = vmatpush.msk.msra.mxu1 %vm61_vm0, %v38_v1  ;;  %v3216_v3 = vld [vmem:[%s6258_s1 + $0x70] sm:$0xf]  ;;  %v3217_v4 = vld [vmem:[%s6258_s1 + $0x78] sm:$0xf]  ;;  %v36_v5 = vld [vmem:[%s6258_s1 + $0x28] sm:$0xff] }
   0x3   :  { %3218 = vmatpush.msk.msra.mxu2 %vm61_vm0, %v3216_v3  ;;  %3226 = vmatpush.msk.msra.mxu3 %vm61_vm0, %v3217_v4  ;;  %v3214_v6 = vld [vmem:[%s6258_s1 + $0x60] sm:$0xff]  ;;  %v3215_v7 = vld [vmem:[%s6258_s1 + $0x68] sm:$0xff]  ;;  %v33_v8 = vld [vmem:[%s6258_s1 + $0x10] sm:$0xff] }
   0x4   :  { %81 = vmatpush.msra.mxu0 %v35_v2  ;;  %117 = vmatpush.msra.mxu1 %v36_v5  ;;  %v34_v9 = vld [vmem:[%s6258_s1 + $0x18] sm:$0xff]  ;;  %v3212_v10 = vld [vmem:[%s6258_s1 + $0x50] sm:$0xff]  ;;  %v31_v12 = vld [vmem:[%s6258_s1] sm:$0xff] }
   0x5   :  { %v3213_v11 = vld [vmem:[%s6258_s1 + $0x58] sm:$0xff]  ;;  %178 = vmatpush.msra.mxu2 %v3214_v6  ;;  %214 = vmatpush.msra.mxu3 %v3215_v7  ;;  %v32_v13 = vld [vmem:[%s6258_s1 + $0x8] sm:$0xff]  ;;  %v3210_v14 = vld [vmem:[%s6258_s1 + $0x40] sm:$0xff] }
   0x6   :  { %82 = vmatpush.msra.mxu0 %v33_v8  ;;  %118 = vmatpush.msra.mxu1 %v34_v9  ;;  %v3211_v15 = vld [vmem:[%s6258_s1 + $0x48] sm:$0xff]  ;;  %v3974_v16 = vld [vmem:[%s6257_s0] sm:$0xff]  ;;  %v3264_v17 = vld [vmem:[%s6258_s1 + $0xf0] sm:$0xf] }
   0x7   :  { %179 = vmatpush.msra.mxu2 %v3212_v10  ;;  %215 = vmatpush.msra.mxu3 %v3213_v11  ;;  %v3265_v18 = vld [vmem:[%s6258_s1 + $0xf8] sm:$0xf] }
   0x8   :  { %83 = vmatpush.msra.mxu0 %v31_v12  ;;  %119 = vmatpush.msra.mxu1 %v32_v13 }
   0x9   :  { %180 = vmatpush.msra.mxu2 %v3210_v14  ;;  %216 = vmatpush.msra.mxu3 %v3211_v15 }
   0xa   :  { %11 = vsyncpa [#allocation3], 0  ;;  %3195 = vmatmul.msk.f32.vlgmr.msra.gmra.mxu0 %vm39_vm1, %v3974_v16  ;;  %3203 = vmatmul.msk.f32.vlgmr.msra.gmra.mxu1 %vm39_vm1, %v3974_v16  ;;  %v3240_v19 = vld [vmem:[%s6258_s1 + $0xb0] sm:$0xf]  ;;  %v3241_v20 = vld [vmem:[%s6258_s1 + $0xb8] sm:$0xf] }
   0xb   :  { %3219 = vmatmul.msk.f32.vlgmr.msra.gmra.mxu2 %vm39_vm1, %v3974_v16  ;;  %3227 = vmatmul.msk.f32.vlgmr.msra.gmra.mxu3 %vm39_vm1, %v3974_v16  ;;  %v4003_v21 = vld [vmem:[%s6257_s0 + $0x8] sm:$0xff]  ;;  %v3262_v22 = vld [vmem:[%s6258_s1 + $0xe0] sm:$0xff]  ;;  %v4028_v26 = vld [vmem:[%s6257_s0 + $0x10] sm:$0xff]  ;;  %vm241_vm2 = vcmask 1046528   ;;  %vm379_vm3 = vcmask 1045504   ;;  %vm521_vm4 = vcmask 1044480  }
   0xc   :  { %3266 = vmatpush.msk.msrb.mxu2 %vm61_vm0, %v3264_v17  ;;  %3274 = vmatpush.msk.msrb.mxu3 %vm61_vm0, %v3265_v18  ;;  %v3263_v23 = vld [vmem:[%s6258_s1 + $0xe8] sm:$0xff]  ;;  %v3238_v24 = vld [vmem:[%s6258_s1 + $0xa0] sm:$0xff]  ;;  %v3236_v27 = vld [vmem:[%s6258_s1 + $0x90] sm:$0xff]  ;;  %vm794_vm5 = vcmask 1042432   ;;  %vm930_vm6 = vcmask 1041408   ;;  %vm1072_vm7 = vcmask 1040384  }
   0xd   :  { %3242 = vmatpush.msk.msrb.mxu0 %vm61_vm0, %v3240_v19  ;;  %3250 = vmatpush.msk.msrb.mxu1 %vm61_vm0, %v3241_v20  ;;  %v3239_v25 = vld [vmem:[%s6258_s1 + $0xa8] sm:$0xff]  ;;  %v3237_v28 = vld [vmem:[%s6258_s1 + $0x98] sm:$0xff]  ;;  %v3260_v29 = vld [vmem:[%s6258_s1 + $0xd0] sm:$0xff]  ;;  %vm1969_vm8 = vcmask 179200   ;;  %vm3100_vm9 = vcmask 564224   ;;  %vm3137_vm10 = vcmask 375808  }
   0xe   :  { %454 = vmatpush.msrb.mxu2 %v3262_v22  ;;  %491 = vmatpush.msrb.mxu3 %v3263_v23  ;;  %v3261_v30 = vld [vmem:[%s6258_s1 + $0xd8] sm:$0xff]  ;;  %v3234_v31 = vld [vmem:[%s6258_s1 + $0x80] sm:$0xff]  ;;  %v3235_v32 = vld [vmem:[%s6258_s1 + $0x88] sm:$0xff]  ;;  %vm3164_vm11 = vcmask 74752   ;;  %s3185_s10 = sshll.u32 %s6263_s6, 4  ;;  %s3186_s10 = int_to_ptr.hbm [resolvable:$true] %s3185_s10 }
   0xf   :  { %312 = vmatpush.msrb.mxu0 %v3238_v24  ;;  %349 = vmatpush.msrb.mxu1 %v3239_v25  ;;  %v3258_v33 = vld [vmem:[%s6258_s1 + $0xc0] sm:$0xff]  ;;  %v3259_v34 = vld [vmem:[%s6258_s1 + $0xc8] sm:$0xff]  ;;  %v4065_v35 = vld [vmem:[%s6257_s0 + $0x18] sm:$0xff] }
  0x10   :  { %455 = vmatpush.msrb.mxu2 %v3260_v29  ;;  %492 = vmatpush.msrb.mxu3 %v3261_v30  ;;  %v4078_v36 = vld [vmem:[%s6257_s0 + $0x20] sm:$0xff]  ;;  %v4091_v37 = vld [vmem:[%s6257_s0 + $0x28] sm:$0xff]  ;;  %v4104_v38 = vld [vmem:[%s6257_s0 + $0x30] sm:$0xff] }
  0x11   :  { %313 = vmatpush.msrb.mxu0 %v3236_v27  ;;  %350 = vmatpush.msrb.mxu1 %v3237_v28  ;;  %v3312_v39 = vld [vmem:[%s6258_s1 + $0x170] sm:$0xf]  ;;  %v3313_v40 = vld [vmem:[%s6258_s1 + $0x178] sm:$0xf]  ;;  %v3310_v43 = vld [vmem:[%s6258_s1 + $0x160] sm:$0xff] }
  0x12   :  { %3196 = vmatmul.msk.f32.gmra.mxu0 %vm39_vm1, %v4003_v21  ;;  %3204 = vmatmul.msk.f32.gmra.mxu1 %vm39_vm1, %v4003_v21  ;;  %v3288_v41 = vld [vmem:[%s6258_s1 + $0x130] sm:$0xf]  ;;  %v3289_v42 = vld [vmem:[%s6258_s1 + $0x138] sm:$0xf]  ;;  %v3311_v44 = vld [vmem:[%s6258_s1 + $0x168] sm:$0xff] }
  0x13   :  { %3220 = vmatmul.msk.f32.gmra.mxu2 %vm39_vm1, %v4003_v21  ;;  %3228 = vmatmul.msk.f32.gmra.mxu3 %vm39_vm1, %v4003_v21  ;;  %v3286_v45 = vld [vmem:[%s6258_s1 + $0x120] sm:$0xff]  ;;  %v3287_v46 = vld [vmem:[%s6258_s1 + $0x128] sm:$0xff]  ;;  %v3284_v47 = vld [vmem:[%s6258_s1 + $0x110] sm:$0xff] }
  0x14   :  { %314 = vmatpush.msrb.mxu0 %v3234_v31  ;;  %351 = vmatpush.msrb.mxu1 %v3235_v32  ;;  %v3285_v48 = vld [vmem:[%s6258_s1 + $0x118] sm:$0xff]  ;;  %v3308_v49 = vld [vmem:[%s6258_s1 + $0x150] sm:$0xff]  ;;  %v3282_v51 = vld [vmem:[%s6258_s1 + $0x100] sm:$0xff] }
  0x15   :  { %456 = vmatpush.msrb.mxu2 %v3258_v33  ;;  %493 = vmatpush.msrb.mxu3 %v3259_v34  ;;  %v3309_v50 = vld [vmem:[%s6258_s1 + $0x158] sm:$0xff]  ;;  %v3283_v52 = vld [vmem:[%s6258_s1 + $0x108] sm:$0xff]  ;;  %v3306_v53 = vld [vmem:[%s6258_s1 + $0x140] sm:$0xff] }
  0x16   :  { %3290 = vmatpush.msk.msra.mxu0 %vm61_vm0, %v3288_v41  ;;  %3298 = vmatpush.msk.msra.mxu1 %vm61_vm0, %v3289_v42  ;;  %v3307_v54 = vld [vmem:[%s6258_s1 + $0x148] sm:$0xff]  ;;  %v3360_v55 = vld [vmem:[%s6258_s1 + $0x1f0] sm:$0xf]  ;;  %v3361_v56 = vld [vmem:[%s6258_s1 + $0x1f8] sm:$0xf] }
  0x17   :  { %3314 = vmatpush.msk.msra.mxu2 %vm61_vm0, %v3312_v39  ;;  %3322 = vmatpush.msk.msra.mxu3 %vm61_vm0, %v3313_v40  ;;  %v3336_v57 = vld [vmem:[%s6258_s1 + $0x1b0] sm:$0xf]  ;;  %v3337_v58 = vld [vmem:[%s6258_s1 + $0x1b8] sm:$0xf]  ;;  %v3358_v59 = vld [vmem:[%s6258_s1 + $0x1e0] sm:$0xff] }
  0x18   :  { %596 = vmatpush.msra.mxu0 %v3286_v45  ;;  %632 = vmatpush.msra.mxu1 %v3287_v46  ;;  %v3359_v60 = vld [vmem:[%s6258_s1 + $0x1e8] sm:$0xff]  ;;  %v3334_v63 = vld [vmem:[%s6258_s1 + $0x1a0] sm:$0xff]  ;;  %v3332_v5 = vld [vmem:[%s6258_s1 + $0x190] sm:$0xff] }
  0x19   :  { %729 = vmatpush.msra.mxu2 %v3310_v43  ;;  %765 = vmatpush.msra.mxu3 %v3311_v44  ;;  %v3335_v0 = vld [vmem:[%s6258_s1 + $0x1a8] sm:$0xff]  ;;  %v3333_v6 = vld [vmem:[%s6258_s1 + $0x198] sm:$0xff]  ;;  %v3356_v7 = vld [vmem:[%s6258_s1 + $0x1d0] sm:$0xff] }
  0x1a   :  { %3197 = vmatmul.msk.f32.gmra.mxu0 %vm39_vm1, %v4028_v26  ;;  %3205 = vmatmul.msk.f32.gmra.mxu1 %vm39_vm1, %v4028_v26  ;;  %v3357_v8 = vld [vmem:[%s6258_s1 + $0x1d8] sm:$0xff]  ;;  %v3330_v9 = vld [vmem:[%s6258_s1 + $0x180] sm:$0xff]  ;;  %v3331_v10 = vld [vmem:[%s6258_s1 + $0x188] sm:$0xff] }
  0x1b   :  { %3221 = vmatmul.msk.f32.gmra.mxu2 %vm39_vm1, %v4028_v26  ;;  %3229 = vmatmul.msk.f32.gmra.mxu3 %vm39_vm1, %v4028_v26  ;;  %v3354_v11 = vld [vmem:[%s6258_s1 + $0x1c0] sm:$0xff]  ;;  %v3355_v12 = vld [vmem:[%s6258_s1 + $0x1c8] sm:$0xff] }
  0x1c   :  { %597 = vmatpush.msra.mxu0 %v3284_v47  ;;  %633 = vmatpush.msra.mxu1 %v3285_v48 }
  0x1d   :  { %730 = vmatpush.msra.mxu2 %v3308_v49  ;;  %766 = vmatpush.msra.mxu3 %v3309_v50 }
  0x1e   :  { %598 = vmatpush.msra.mxu0 %v3282_v51  ;;  %634 = vmatpush.msra.mxu1 %v3283_v52 }
  0x1f   :  { %731 = vmatpush.msra.mxu2 %v3306_v53  ;;  %767 = vmatpush.msra.mxu3 %v3307_v54  ;;  %v3408_v54 = vld [vmem:[%s6258_s1 + $0x270] sm:$0xf] }
  0x22   :  { %3198 = vmatmul.msk.f32.gmra.mxu0 %vm39_vm1, %v4065_v35  ;;  %3206 = vmatmul.msk.f32.gmra.mxu1 %vm39_vm1, %v4065_v35 }
  0x23   :  { %3222 = vmatmul.msk.f32.gmra.mxu2 %vm39_vm1, %v4065_v35  ;;  %3230 = vmatmul.msk.f32.gmra.mxu3 %vm39_vm1, %v4065_v35 }
  0x2a   :  { %3199 = vmatmul.msk.f32.gmra.mxu0 %vm39_vm1, %v4078_v36  ;;  %3207 = vmatmul.msk.f32.gmra.mxu1 %vm39_vm1, %v4078_v36 }
  0x2b   :  { %3223 = vmatmul.msk.f32.gmra.mxu2 %vm39_vm1, %v4078_v36  ;;  %3231 = vmatmul.msk.f32.gmra.mxu3 %vm39_vm1, %v4078_v36 }
  0x32   :  { %3200 = vmatmul.msk.f32.gmra.mxu0 %vm39_vm1, %v4091_v37  ;;  %3208 = vmatmul.msk.f32.gmra.mxu1 %vm39_vm1, %v4091_v37 }
  0x33   :  { %3224 = vmatmul.msk.f32.gmra.mxu2 %vm39_vm1, %v4091_v37  ;;  %3232 = vmatmul.msk.f32.gmra.mxu3 %vm39_vm1, %v4091_v37 }
  0x3a   :  { %3201 = vmatmul.msk.f32.gmra.mxu0 %vm39_vm1, %v4104_v38  ;;  %3209 = vmatmul.msk.f32.gmra.mxu1 %vm39_vm1, %v4104_v38 }
  0x3b   :  { %3225 = vmatmul.msk.f32.gmra.mxu2 %vm39_vm1, %v4104_v38  ;;  %3233 = vmatmul.msk.f32.gmra.mxu3 %vm39_vm1, %v4104_v38 }
  0x42   :  { %3243 = vmatmul.msk.f32.vlgmr.msrb.gmra.mxu0 %vm39_vm1, %v3974_v16  ;;  %3251 = vmatmul.msk.f32.vlgmr.msrb.gmra.mxu1 %vm39_vm1, %v3974_v16 }
  0x43   :  { %3267 = vmatmul.msk.f32.vlgmr.msrb.gmra.mxu2 %vm39_vm1, %v3974_v16  ;;  %3275 = vmatmul.msk.f32.vlgmr.msrb.gmra.mxu3 %vm39_vm1, %v3974_v16 }
  0x44   :  { %3362 = vmatpush.msk.msrb.mxu2 %vm61_vm0, %v3360_v55  ;;  %3370 = vmatpush.msk.msrb.mxu3 %vm61_vm0, %v3361_v56  ;;  %v3409_v55 = vld [vmem:[%s6258_s1 + $0x278] sm:$0xf]  ;;  %v3384_v56 = vld [vmem:[%s6258_s1 + $0x230] sm:$0xf] }
  0x45   :  { %3338 = vmatpush.msk.msrb.mxu0 %vm61_vm0, %v3336_v57  ;;  %3346 = vmatpush.msk.msrb.mxu1 %vm61_vm0, %v3337_v58  ;;  %v3385_v57 = vld [vmem:[%s6258_s1 + $0x238] sm:$0xf] }
  0x46   :  { %1005 = vmatpush.msrb.mxu2 %v3358_v59  ;;  %1042 = vmatpush.msrb.mxu3 %v3359_v60 }
  0x47   :  { %863 = vmatpush.msrb.mxu0 %v3334_v63  ;;  %900 = vmatpush.msrb.mxu1 %v3335_v0 }
  0x48   :  { %1006 = vmatpush.msrb.mxu2 %v3356_v7  ;;  %1043 = vmatpush.msrb.mxu3 %v3357_v8  ;;  %v3407_v7 = vld [vmem:[%s6258_s1 + $0x268] sm:$0xff] }
  0x49   :  { %864 = vmatpush.msrb.mxu0 %v3332_v5  ;;  %901 = vmatpush.msrb.mxu1 %v3333_v6  ;;  %v3406_v6 = vld [vmem:[%s6258_s1 + $0x260] sm:$0xff] }
  0x4a   :  { %3244 = vmatmul.msk.f32.gmra.mxu0 %vm39_vm1, %v4003_v21  ;;  %3252 = vmatmul.msk.f32.gmra.mxu1 %vm39_vm1, %v4003_v21 }
  0x4b   :  { %3268 = vmatmul.msk.f32.gmra.mxu2 %vm39_vm1, %v4003_v21  ;;  %3276 = vmatmul.msk.f32.gmra.mxu3 %vm39_vm1, %v4003_v21 }
  0x4c   :  { %865 = vmatpush.msrb.mxu0 %v3330_v9  ;;  %902 = vmatpush.msrb.mxu1 %v3331_v10 }
  0x4d   :  { %1007 = vmatpush.msrb.mxu2 %v3354_v11  ;;  %1044 = vmatpush.msrb.mxu3 %v3355_v12  ;;  %v3382_v12 = vld [vmem:[%s6258_s1 + $0x220] sm:$0xff] }
  0x52   :  { %3245 = vmatmul.msk.f32.gmra.mxu0 %vm39_vm1, %v4028_v26  ;;  %3253 = vmatmul.msk.f32.gmra.mxu1 %vm39_vm1, %v4028_v26 }
  0x53   :  { %3269 = vmatmul.msk.f32.gmra.mxu2 %vm39_vm1, %v4028_v26  ;;  %3277 = vmatmul.msk.f32.gmra.mxu3 %vm39_vm1, %v4028_v26 }
  0x5a   :  { %3246 = vmatmul.msk.f32.gmra.mxu0 %vm39_vm1, %v4065_v35  ;;  %3254 = vmatmul.msk.f32.gmra.mxu1 %vm39_vm1, %v4065_v35 }
  0x5b   :  { %3270 = vmatmul.msk.f32.gmra.mxu2 %vm39_vm1, %v4065_v35  ;;  %3278 = vmatmul.msk.f32.gmra.mxu3 %vm39_vm1, %v4065_v35 }
  0x62   :  { %3247 = vmatmul.msk.f32.gmra.mxu0 %vm39_vm1, %v4078_v36  ;;  %3255 = vmatmul.msk.f32.gmra.mxu1 %vm39_vm1, %v4078_v36 }
  0x63   :  { %3271 = vmatmul.msk.f32.gmra.mxu2 %vm39_vm1, %v4078_v36  ;;  %3279 = vmatmul.msk.f32.gmra.mxu3 %vm39_vm1, %v4078_v36 }
  0x6a   :  { %3248 = vmatmul.msk.f32.gmra.mxu0 %vm39_vm1, %v4091_v37  ;;  %3256 = vmatmul.msk.f32.gmra.mxu1 %vm39_vm1, %v4091_v37 }
  0x6b   :  { %3272 = vmatmul.msk.f32.gmra.mxu2 %vm39_vm1, %v4091_v37  ;;  %3280 = vmatmul.msk.f32.gmra.mxu3 %vm39_vm1, %v4091_v37 }
  0x72   :  { %3249 = vmatmul.msk.f32.gmra.mxu0 %vm39_vm1, %v4104_v38  ;;  %3257 = vmatmul.msk.f32.gmra.mxu1 %vm39_vm1, %v4104_v38 }
  0x73   :  { %3273 = vmatmul.msk.f32.gmra.mxu2 %vm39_vm1, %v4104_v38  ;;  %3281 = vmatmul.msk.f32.gmra.mxu3 %vm39_vm1, %v4104_v38 }
  0x7a   :  { %3291 = vmatmul.msk.f32.vlgmr.msra.gmra.mxu0 %vm39_vm1, %v3974_v16  ;;  %3299 = vmatmul.msk.f32.vlgmr.msra.gmra.mxu1 %vm39_vm1, %v3974_v16 }
  0x7b   :  { %3315 = vmatmul.msk.f32.vlgmr.msra.gmra.mxu2 %vm39_vm1, %v3974_v16  ;;  %3323 = vmatmul.msk.f32.vlgmr.msra.gmra.mxu3 %vm39_vm1, %v3974_v16 }
  0x7c   :  { %3410 = vmatpush.msk.msra.mxu2 %vm61_vm0, %v3408_v54  ;;  %3418 = vmatpush.msk.msra.mxu3 %vm61_vm0, %v3409_v55 }
  0x7d   :  { %3386 = vmatpush.msk.msra.mxu0 %vm61_vm0, %v3384_v56  ;;  %3394 = vmatpush.msk.msra.mxu1 %vm61_vm0, %v3385_v57 }
  0x7e   :  { %1244 = vmatpush.msra.mxu2 %v3406_v6  ;;  %1280 = vmatpush.msra.mxu3 %v3407_v7 }
  0x7f   :  { %1147 = vmatpush.msra.mxu0 %v3382_v12 }
  0x82   :  { %3292 = vmatmul.msk.f32.gmra.mxu0 %vm39_vm1, %v4003_v21  ;;  %3300 = vmatmul.msk.f32.gmra.mxu1 %vm39_vm1, %v4003_v21 }
  0x83   :  { %3316 = vmatmul.msk.f32.gmra.mxu2 %vm39_vm1, %v4003_v21  ;;  %3324 = vmatmul.msk.f32.gmra.mxu3 %vm39_vm1, %v4003_v21 }
  0x87   :  { %v85_v61 = vpop.f32.mrf.mxu0  ;;  %v121_v62 = vpop.f32.mrf.mxu1 }
  0x8a   :  { %3293 = vmatmul.msk.f32.gmra.mxu0 %vm39_vm1, %v4028_v26  ;;  %3301 = vmatmul.msk.f32.gmra.mxu1 %vm39_vm1, %v4028_v26 }
  0x8b   :  { %3317 = vmatmul.msk.f32.gmra.mxu2 %vm39_vm1, %v4028_v26  ;;  %3325 = vmatmul.msk.f32.gmra.mxu3 %vm39_vm1, %v4028_v26 }
  0x8e   :  { %v182_v1 = vpop.f32.mrf.mxu2  ;;  %v218_v2 = vpop.f32.mrf.mxu3 }
  0x8f   :  { %v88_v3 = vpop.f32.mrf.mxu0  ;;  %v124_v4 = vpop.f32.mrf.mxu1  ;;  %v242_v13 = vrot.slane %v182_v1, 1  ;;  %v245_v17 = vrot.slane %v218_v2, 1 }
  0x92   :  { %3294 = vmatmul.msk.f32.gmra.mxu0 %vm39_vm1, %v4065_v35  ;;  %3302 = vmatmul.msk.f32.gmra.mxu1 %vm39_vm1, %v4065_v35 }
  0x93   :  { %3318 = vmatmul.msk.f32.gmra.mxu2 %vm39_vm1, %v4065_v35  ;;  %3326 = vmatmul.msk.f32.gmra.mxu3 %vm39_vm1, %v4065_v35 }
  0x96   :  { %v185_v14 = vpop.f32.mrf.mxu2  ;;  %v221_v15 = vpop.f32.mrf.mxu3 }
  0x97   :  { %v243_v18 = vrot.slane %v185_v14, 1  ;;  %v246_v19 = vrot.slane %v221_v15, 1  ;;  %v91_v20 = vpop.f32.mrf.mxu0  ;;  %v127_v22 = vpop.f32.mrf.mxu1 }
  0x98   :  { %v3381_v20 = vld [vmem:[%s6258_s1 + $0x218] sm:$0xff] }
  0x99   :  { %v244_v23 = vsel %vm241_vm2, %v242_v13, %v243_v18  ;;  %v4307_v24 = vadd.f32 %v243_v18, %v88_v3  ;;  %v247_v25 = vsel %vm241_vm2, %v245_v17, %v246_v19  ;;  %v4310_v27 = vadd.f32 %v246_v19, %v124_v4  ;;  %v3383_v13 = vld [vmem:[%s6258_s1 + $0x228] sm:$0xff]  ;;  %v3380_v19 = vld [vmem:[%s6258_s1 + $0x210] sm:$0xff] }
  0x9a   :  { %v4312_v28 = vadd.f32 %v244_v23, %v85_v61  ;;  %v4314_v29 = vadd.f32 %v247_v25, %v121_v62  ;;  %3295 = vmatmul.msk.f32.gmra.mxu0 %vm39_vm1, %v4078_v36  ;;  %3303 = vmatmul.msk.f32.gmra.mxu1 %vm39_vm1, %v4078_v36 }
  0x9b   :  { %3319 = vmatmul.msk.f32.gmra.mxu2 %vm39_vm1, %v4078_v36  ;;  %3327 = vmatmul.msk.f32.gmra.mxu3 %vm39_vm1, %v4078_v36 }
  0x9c   :  { %1183 = vmatpush.msra.mxu1 %v3383_v13  ;;  %1148 = vmatpush.msra.mxu0 %v3380_v19 }
  0x9e   :  { %v188_v30 = vpop.f32.mrf.mxu2  ;;  %v224_v31 = vpop.f32.mrf.mxu3  ;;  %1184 = vmatpush.msra.mxu1 %v3381_v20 }
  0x9f   :  { %v93_v32 = vpop.f32.mrf.mxu0  ;;  %v129_v33 = vpop.f32.mrf.mxu1  ;;  %v3404_v30 = vld [vmem:[%s6258_s1 + $0x250] sm:$0xff]  ;;  %v3405_v31 = vld [vmem:[%s6258_s1 + $0x258] sm:$0xff] }
  0xa0   :  { %1245 = vmatpush.msra.mxu2 %v3404_v30  ;;  %1281 = vmatpush.msra.mxu3 %v3405_v31 }
  0xa2   :  { %3296 = vmatmul.msk.f32.gmra.mxu0 %vm39_vm1, %v4091_v37  ;;  %3304 = vmatmul.msk.f32.gmra.mxu1 %vm39_vm1, %v4091_v37 }
  0xa3   :  { %3320 = vmatmul.msk.f32.gmra.mxu2 %vm39_vm1, %v4091_v37  ;;  %3328 = vmatmul.msk.f32.gmra.mxu3 %vm39_vm1, %v4091_v37 }
  0xa6   :  { %v190_v34 = vpop.f32.mrf.mxu2  ;;  %v226_v39 = vpop.f32.mrf.mxu3 }
  0xa7   :  { %v96_v40 = vpop.f32.mrf.mxu0  ;;  %v132_v41 = vpop.f32.mrf.mxu1  ;;  %v262_v42 = vrot.slane %v190_v34, 1  ;;  %v265_v45 = vrot.slane %v226_v39, 1  ;;  %v3402_v39 = vld [vmem:[%s6258_s1 + $0x240] sm:$0xff] }
  0xa8   :  { %1246 = vmatpush.msra.mxu2 %v3402_v39 }
  0xaa   :  { %3297 = vmatmul.msk.f32.gmra.mxu0 %vm39_vm1, %v4104_v38  ;;  %3305 = vmatmul.msk.f32.gmra.mxu1 %vm39_vm1, %v4104_v38 }
  0xab   :  { %3321 = vmatmul.msk.f32.gmra.mxu2 %vm39_vm1, %v4104_v38  ;;  %3329 = vmatmul.msk.f32.gmra.mxu3 %vm39_vm1, %v4104_v38 }
  0xae   :  { %v193_v43 = vpop.f32.mrf.mxu2  ;;  %v229_v44 = vpop.f32.mrf.mxu3 }
  0xaf   :  { %v263_v46 = vrot.slane %v193_v43, 1  ;;  %v266_v47 = vrot.slane %v229_v44, 1  ;;  %v99_v48 = vpop.f32.mrf.mxu0  ;;  %v135_v49 = vpop.f32.mrf.mxu1 }
  0xb1   :  { %v264_v50 = vsel %vm241_vm2, %v262_v42, %v263_v46  ;;  %v267_v51 = vsel %vm241_vm2, %v265_v45, %v266_v47 }
  0xb2   :  { %v4342_v52 = vadd.f32 %v264_v50, %v93_v32  ;;  %v4344_v53 = vadd.f32 %v267_v51, %v129_v33  ;;  %3339 = vmatmul.msk.f32.vlgmr.msrb.gmra.mxu0 %vm39_vm1, %v3974_v16  ;;  %3347 = vmatmul.msk.f32.vlgmr.msrb.gmra.mxu1 %vm39_vm1, %v3974_v16  ;;  %v3378_v32 = vld [vmem:[%s6258_s1 + $0x200] sm:$0xff]  ;;  %v3379_v33 = vld [vmem:[%s6258_s1 + $0x208] sm:$0xff] }
  0xb3   :  { %3363 = vmatmul.msk.f32.vlgmr.msrb.gmra.mxu2 %vm39_vm1, %v3974_v16  ;;  %3371 = vmatmul.msk.f32.vlgmr.msrb.gmra.mxu3 %vm39_vm1, %v3974_v16 }
  0xb4   :  { %1149 = vmatpush.msra.mxu0 %v3378_v32  ;;  %1185 = vmatpush.msra.mxu1 %v3379_v33 }
  0xb6   :  { %v196_v58 = vpop.f32.mrf.mxu2  ;;  %v232_v59 = vpop.f32.mrf.mxu3 }
  0xb7   :  { %v268_v60 = vrot.slane %v196_v58, 1  ;;  %v270_v61 = vrot.slane %v232_v59, 1  ;;  %v102_v62 = vpop.f32.mrf.mxu0  ;;  %v138_v63 = vpop.f32.mrf.mxu1 }
  0xb9   :  { %v269_v0 = vsel %vm241_vm2, %v263_v46, %v268_v60  ;;  %v4371_v1 = vadd.f32 %v268_v60, %v99_v48  ;;  %v271_v2 = vsel %vm241_vm2, %v266_v47, %v270_v61  ;;  %v4374_v3 = vadd.f32 %v270_v61, %v135_v49 }
  0xba   :  { %v4376_v4 = vadd.f32 %v269_v0, %v96_v40  ;;  %v4378_v5 = vadd.f32 %v271_v2, %v132_v41  ;;  %3340 = vmatmul.msk.f32.gmra.mxu0 %vm39_vm1, %v4003_v21  ;;  %3348 = vmatmul.msk.f32.gmra.mxu1 %vm39_vm1, %v4003_v21  ;;  %v3403_v40 = vld [vmem:[%s6258_s1 + $0x248] sm:$0xff] }
  0xbb   :  { %3364 = vmatmul.msk.f32.gmra.mxu2 %vm39_vm1, %v4003_v21  ;;  %3372 = vmatmul.msk.f32.gmra.mxu3 %vm39_vm1, %v4003_v21 }
  0xbc   :  { %1282 = vmatpush.msra.mxu3 %v3403_v40 }
  0xbe   :  { %v199_v8 = vpop.f32.mrf.mxu2  ;;  %v235_v9 = vpop.f32.mrf.mxu3 }
  0xbf   :  { %v316_v10 = vpop.f32.mrf.mxu0  ;;  %v353_v11 = vpop.f32.mrf.mxu1 }
  0xc0   :  { %v380_v22 = vrot.slane %v316_v10, 2  ;;  %v383_v34 = vrot.slane %v353_v11, 2 }
  0xc2   :  { %3341 = vmatmul.msk.f32.gmra.mxu0 %vm39_vm1, %v4028_v26  ;;  %3349 = vmatmul.msk.f32.gmra.mxu1 %vm39_vm1, %v4028_v26 }
  0xc3   :  { %3365 = vmatmul.msk.f32.gmra.mxu2 %vm39_vm1, %v4028_v26  ;;  %3373 = vmatmul.msk.f32.gmra.mxu3 %vm39_vm1, %v4028_v26 }
  0xc6   :  { %v458_v14 = vpop.f32.mrf.mxu2  ;;  %v495_v15 = vpop.f32.mrf.mxu3 }
  0xc7   :  { %v319_v17 = vpop.f32.mrf.mxu0  ;;  %v356_v18 = vpop.f32.mrf.mxu1  ;;  %v522_v41 = vrot.slane %v458_v14, 3  ;;  %v525_v46 = vrot.slane %v495_v15, 3 }
  0xc8   :  { %v381_v23 = vrot.slane %v319_v17, 2  ;;  %v384_v25 = vrot.slane %v356_v18, 2 }
  0xca   :  { %3342 = vmatmul.msk.f32.gmra.mxu0 %vm39_vm1, %v4065_v35  ;;  %3350 = vmatmul.msk.f32.gmra.mxu1 %vm39_vm1, %v4065_v35  ;;  %v382_v42 = vsel %vm379_vm3, %v380_v22, %v381_v23  ;;  %v385_v43 = vsel %vm379_vm3, %v383_v34, %v384_v25 }
  0xcb   :  { %3366 = vmatmul.msk.f32.gmra.mxu2 %vm39_vm1, %v4065_v35  ;;  %3374 = vmatmul.msk.f32.gmra.mxu3 %vm39_vm1, %v4065_v35  ;;  %v394_v51 = vadd.f32 %v382_v42, %v4312_v28  ;;  %v395_v54 = vadd.f32 %v385_v43, %v4314_v29 }
  0xce   :  { %v461_v44 = vpop.f32.mrf.mxu2  ;;  %v498_v45 = vpop.f32.mrf.mxu3 }
  0xcf   :  { %v523_v47 = vrot.slane %v461_v44, 3  ;;  %v526_v48 = vrot.slane %v498_v45, 3  ;;  %v322_v49 = vpop.f32.mrf.mxu0  ;;  %v359_v50 = vpop.f32.mrf.mxu1 }
  0xd0   :  { %v386_v55 = vrot.slane %v322_v49, 2  ;;  %v388_v58 = vrot.slane %v359_v50, 2 }
  0xd1   :  { %v524_v56 = vsel %vm521_vm4, %v522_v41, %v523_v47  ;;  %v527_v57 = vsel %vm521_vm4, %v525_v46, %v526_v48 }
  0xd2   :  { %v4446_v59 = vadd.f32 %v524_v56, %v394_v51  ;;  %v4448_v60 = vadd.f32 %v527_v57, %v395_v54  ;;  %v387_v61 = vsel %vm379_vm3, %v381_v23, %v386_v55  ;;  %3343 = vmatmul.msk.f32.gmra.mxu0 %vm39_vm1, %v4078_v36  ;;  %3351 = vmatmul.msk.f32.gmra.mxu1 %vm39_vm1, %v4078_v36 }
  0xd3   :  { %v396_v62 = vadd.f32 %v387_v61, %v4307_v24  ;;  %3367 = vmatmul.msk.f32.gmra.mxu2 %vm39_vm1, %v4078_v36  ;;  %3375 = vmatmul.msk.f32.gmra.mxu3 %vm39_vm1, %v4078_v36  ;;  %v389_v28 = vsel %vm379_vm3, %v384_v25, %v388_v58 }
  0xd4   :  { %v397_v8 = vadd.f32 %v389_v28, %v4310_v27 }
  0xd6   :  { %v464_v29 = vpop.f32.mrf.mxu2  ;;  %v501_v63 = vpop.f32.mrf.mxu3 }
  0xd7   :  { %v528_v0 = vrot.slane %v464_v29, 3  ;;  %v530_v2 = vrot.slane %v501_v63, 3  ;;  %v325_v6 = vpop.f32.mrf.mxu0  ;;  %v362_v7 = vpop.f32.mrf.mxu1 }
  0xd8   :  { %v404_v15 = vrot.slane %v325_v6, 2  ;;  %v407_v19 = vrot.slane %v362_v7, 2 }
  0xd9   :  { %v529_v24 = vsel %vm521_vm4, %v523_v47, %v528_v0  ;;  %v531_v9 = vsel %vm521_vm4, %v526_v48, %v530_v2  ;;  %v3456_v48 = vld [vmem:[%s6258_s1 + $0x2f0] sm:$0xf] }
  0xda   :  { %v4464_v10 = vadd.f32 %v529_v24, %v396_v62  ;;  %v4466_v11 = vadd.f32 %v531_v9, %v397_v8  ;;  %3344 = vmatmul.msk.f32.gmra.mxu0 %vm39_vm1, %v4091_v37  ;;  %3352 = vmatmul.msk.f32.gmra.mxu1 %vm39_vm1, %v4091_v37 }
  0xdb   :  { %3368 = vmatmul.msk.f32.gmra.mxu2 %vm39_vm1, %v4091_v37  ;;  %3376 = vmatmul.msk.f32.gmra.mxu3 %vm39_vm1, %v4091_v37 }
  0xdc   :  { %3458 = vmatpush.msk.msrb.mxu2 %vm61_vm0, %v3456_v48 }
  0xde   :  { %v467_v27 = vpop.f32.mrf.mxu2  ;;  %v504_v12 = vpop.f32.mrf.mxu3 }
  0xdf   :  { %v328_v13 = vpop.f32.mrf.mxu0  ;;  %v365_v14 = vpop.f32.mrf.mxu1  ;;  %v546_v20 = vrot.slane %v467_v27, 3  ;;  %v549_v30 = vrot.slane %v504_v12, 3  ;;  %v3431_v27 = vld [vmem:[%s6258_s1 + $0x2a8] sm:$0xff] }
  0xe0   :  { %v405_v17 = vrot.slane %v328_v13, 2  ;;  %v408_v18 = vrot.slane %v365_v14, 2 }
  0xe2   :  { %3345 = vmatmul.msk.f32.gmra.mxu0 %vm39_vm1, %v4104_v38  ;;  %3353 = vmatmul.msk.f32.gmra.mxu1 %vm39_vm1, %v4104_v38  ;;  %v406_v22 = vsel %vm379_vm3, %v404_v15, %v405_v17  ;;  %v409_v31 = vsel %vm379_vm3, %v407_v19, %v408_v18 }
  0xe3   :  { %3369 = vmatmul.msk.f32.gmra.mxu2 %vm39_vm1, %v4104_v38  ;;  %3377 = vmatmul.msk.f32.gmra.mxu3 %vm39_vm1, %v4104_v38  ;;  %v420_v42 = vadd.f32 %v406_v22, %v4342_v52  ;;  %v421_v45 = vadd.f32 %v409_v31, %v4344_v53  ;;  %v3457_v52 = vld [vmem:[%s6258_s1 + $0x2f8] sm:$0xf]  ;;  %v3432_v53 = vld [vmem:[%s6258_s1 + $0x2b0] sm:$0xf]  ;;  %v3427_v31 = vld [vmem:[%s6258_s1 + $0x288] sm:$0xff] }
  0xe4   :  { %3466 = vmatpush.msk.msrb.mxu3 %vm61_vm0, %v3457_v52  ;;  %3434 = vmatpush.msk.msrb.mxu0 %vm61_vm0, %v3432_v53  ;;  %v3429_v22 = vld [vmem:[%s6258_s1 + $0x298] sm:$0xff] }
  0xe6   :  { %v470_v23 = vpop.f32.mrf.mxu2  ;;  %v507_v25 = vpop.f32.mrf.mxu3 }
  0xe7   :  { %v547_v32 = vrot.slane %v470_v23, 3  ;;  %v550_v33 = vrot.slane %v507_v25, 3  ;;  %v331_v34 = vpop.f32.mrf.mxu0  ;;  %v368_v39 = vpop.f32.mrf.mxu1  ;;  %v3453_v23 = vld [vmem:[%s6258_s1 + $0x2d8] sm:$0xff] }
  0xe8   :  { %v410_v40 = vrot.slane %v331_v34, 2  ;;  %v412_v41 = vrot.slane %v368_v39, 2 }
  0xe9   :  { %v548_v43 = vsel %vm521_vm4, %v546_v20, %v547_v32  ;;  %v551_v44 = vsel %vm521_vm4, %v549_v30, %v550_v33  ;;  %v3428_v20 = vld [vmem:[%s6258_s1 + $0x290] sm:$0xff]  ;;  %v3426_v30 = vld [vmem:[%s6258_s1 + $0x280] sm:$0xff] }
  0xea   :  { %v424_v46 = vadd.f32 %v410_v40, %v4371_v1  ;;  %v425_v47 = vadd.f32 %v412_v41, %v4374_v3  ;;  %3387 = vmatmul.msk.f32.vlgmr.msra.gmra.mxu0 %vm39_vm1, %v3974_v16  ;;  %3395 = vmatmul.msk.f32.vlgmr.msra.gmra.mxu1 %vm39_vm1, %v3974_v16  ;;  %v3433_v1 = vld [vmem:[%s6258_s1 + $0x2b8] sm:$0xf]  ;;  %v4510_v3 = vadd.f32 %v548_v43, %v420_v42 }
  0xeb   :  { %3411 = vmatmul.msk.f32.vlgmr.msra.gmra.mxu2 %vm39_vm1, %v3974_v16  ;;  %3419 = vmatmul.msk.f32.vlgmr.msra.gmra.mxu3 %vm39_vm1, %v3974_v16  ;;  %v4515_v49 = vadd.f32 %v551_v44, %v421_v45  ;;  %v411_v50 = vsel %vm379_vm3, %v405_v17, %v410_v40  ;;  %v413_v51 = vsel %vm379_vm3, %v408_v18, %v412_v41 }
  0xec   :  { %3442 = vmatpush.msk.msrb.mxu1 %vm61_vm0, %v3433_v1  ;;  %v422_v61 = vadd.f32 %v411_v50, %v4376_v4  ;;  %v423_v62 = vadd.f32 %v413_v51, %v4378_v5  ;;  %v3454_v4 = vld [vmem:[%s6258_s1 + $0x2e0] sm:$0xff]  ;;  %v3455_v5 = vld [vmem:[%s6258_s1 + $0x2e8] sm:$0xff] }
  0xed   :  { %1518 = vmatpush.msrb.mxu2 %v3454_v4  ;;  %1555 = vmatpush.msrb.mxu3 %v3455_v5 }
  0xee   :  { %v473_v54 = vpop.f32.mrf.mxu2  ;;  %v510_v55 = vpop.f32.mrf.mxu3  ;;  %1414 = vmatpush.msrb.mxu1 %v3431_v27 }
  0xef   :  { %v552_v56 = vrot.slane %v473_v54, 3  ;;  %v554_v57 = vrot.slane %v510_v55, 3  ;;  %v334_v58 = vpop.f32.mrf.mxu0  ;;  %v371_v16 = vpop.f32.mrf.mxu1  ;;  %1556 = vmatpush.msrb.mxu3 %v3453_v23  ;;  %v4657_v23 = vld [vmem:[%s6257_s0] sm:$0xff] }
  0xf0   :  { %1415 = vmatpush.msrb.mxu1 %v3429_v22 }
  0xf1   :  { %v553_v28 = vsel %vm521_vm4, %v547_v32, %v552_v56  ;;  %v4525_v29 = vadd.f32 %v552_v56, %v424_v46  ;;  %v555_v63 = vsel %vm521_vm4, %v550_v33, %v554_v57  ;;  %v4528_v0 = vadd.f32 %v554_v57, %v425_v47  ;;  %v3450_v32 = vld [vmem:[%s6258_s1 + $0x2c0] sm:$0xff]  ;;  %v3451_v33 = vld [vmem:[%s6258_s1 + $0x2c8] sm:$0xff] }
  0xf2   :  { %v4530_v2 = vadd.f32 %v553_v28, %v422_v61  ;;  %v4532_v6 = vadd.f32 %v555_v63, %v423_v62  ;;  %3388 = vmatmul.msk.f32.gmra.mxu0 %vm39_vm1, %v4003_v21  ;;  %3396 = vmatmul.msk.f32.gmra.mxu1 %vm39_vm1, %v4003_v21 }
  0xf3   :  { %3412 = vmatmul.msk.f32.gmra.mxu2 %vm39_vm1, %v4003_v21  ;;  %3420 = vmatmul.msk.f32.gmra.mxu3 %vm39_vm1, %v4003_v21  ;;  %v3430_v21 = vld [vmem:[%s6258_s1 + $0x2a0] sm:$0xff] }
  0xf4   :  { %1377 = vmatpush.msrb.mxu0 %v3430_v21  ;;  %1416 = vmatpush.msrb.mxu1 %v3427_v31 }
  0xf5   :  { %1557 = vmatpush.msrb.mxu3 %v3451_v33 }
  0xf6   :  { %v476_v7 = vpop.f32.mrf.mxu2  ;;  %v513_v8 = vpop.f32.mrf.mxu3  ;;  %1378 = vmatpush.msrb.mxu0 %v3428_v20 }
  0xf7   :  { %v600_v24 = vpop.f32.mrf.mxu0  ;;  %v636_v9 = vpop.f32.mrf.mxu1 }
  0xf8   :  { %v661_v17 = vrot.slane %v600_v24, 4  ;;  %v664_v25 = vrot.slane %v636_v9, 4  ;;  %1379 = vmatpush.msrb.mxu0 %v3426_v30  ;;  %v3481_v30 = vld [vmem:[%s6258_s1 + $0x338] sm:$0xf] }
  0xf9   :  { %3490 = vmatpush.msk.msra.mxu1 %vm61_vm0, %v3481_v30 }
  0xfa   :  { %3389 = vmatmul.msk.f32.gmra.mxu0 %vm39_vm1, %v4028_v26  ;;  %3397 = vmatmul.msk.f32.gmra.mxu1 %vm39_vm1, %v4028_v26 }
  0xfb   :  { %3413 = vmatmul.msk.f32.gmra.mxu2 %vm39_vm1, %v4028_v26  ;;  %3421 = vmatmul.msk.f32.gmra.mxu3 %vm39_vm1, %v4028_v26  ;;  %v3452_v26 = vld [vmem:[%s6258_s1 + $0x2d0] sm:$0xff] }
  0xfc   :  { %1519 = vmatpush.msrb.mxu2 %v3452_v26 }
  0xfe   :  { %v733_v12 = vpop.f32.mrf.mxu2  ;;  %v769_v13 = vpop.f32.mrf.mxu3  ;;  %1520 = vmatpush.msrb.mxu2 %v3450_v32 }
  0xff   :  { %v603_v14 = vpop.f32.mrf.mxu0  ;;  %v639_v15 = vpop.f32.mrf.mxu1  ;;  %v795_v34 = vrot.slane %v733_v12, 5 }
 0x100   :  { %v662_v18 = vrot.slane %v603_v14, 4  ;;  %v665_v19 = vrot.slane %v639_v15, 4 }
 0x102   :  { %3390 = vmatmul.msk.f32.gmra.mxu0 %vm39_vm1, %v4065_v35  ;;  %3398 = vmatmul.msk.f32.gmra.mxu1 %vm39_vm1, %v4065_v35  ;;  %v663_v39 = vsel %vm61_vm0, %v661_v17, %v662_v18  ;;  %v666_v40 = vsel %vm61_vm0, %v664_v25, %v665_v19  ;;  %v3480_v25 = vld [vmem:[%s6258_s1 + $0x330] sm:$0xf] }
 0x103   :  { %3414 = vmatmul.msk.f32.gmra.mxu2 %vm39_vm1, %v4065_v35  ;;  %3422 = vmatmul.msk.f32.gmra.mxu3 %vm39_vm1, %v4065_v35  ;;  %v798_v35 = vrot.slane %v769_v13, 5  ;;  %v675_v47 = vadd.f32 %v663_v39, %v4446_v59  ;;  %v676_v48 = vadd.f32 %v666_v40, %v4448_v60 }
 0x104   :  { %3482 = vmatpush.msk.msra.mxu0 %vm61_vm0, %v3480_v25 }
 0x106   :  { %v736_v41 = vpop.f32.mrf.mxu2  ;;  %v772_v42 = vpop.f32.mrf.mxu3 }
 0x107   :  { %v796_v43 = vrot.slane %v736_v41, 5  ;;  %v799_v44 = vrot.slane %v772_v42, 5  ;;  %v606_v45 = vpop.f32.mrf.mxu0  ;;  %v642_v46 = vpop.f32.mrf.mxu1 }
 0x108   :  { %v667_v52 = vrot.slane %v606_v45, 4  ;;  %v669_v50 = vrot.slane %v642_v46, 4 }
 0x109   :  { %v797_v53 = vsel %vm794_vm5, %v795_v34, %v796_v43  ;;  %v800_v1 = vsel %vm794_vm5, %v798_v35, %v799_v44 }
 0x10a   :  { %v4600_v51 = vadd.f32 %v797_v53, %v675_v47  ;;  %v4602_v54 = vadd.f32 %v800_v1, %v676_v48  ;;  %v668_v55 = vsel %vm61_vm0, %v662_v18, %v667_v52  ;;  %3391 = vmatmul.msk.f32.gmra.mxu0 %vm39_vm1, %v4078_v36  ;;  %3399 = vmatmul.msk.f32.gmra.mxu1 %vm39_vm1, %v4078_v36  ;;  %v3504_v18 = vld [vmem:[%s6258_s1 + $0x370] sm:$0xf]  ;;  %v4690_v47 = vld [vmem:[%s6257_s0 + $0x8] sm:$0xff] }
 0x10b   :  { %v677_v56 = vadd.f32 %v668_v55, %v4464_v10  ;;  %3415 = vmatmul.msk.f32.gmra.mxu2 %vm39_vm1, %v4078_v36  ;;  %3423 = vmatmul.msk.f32.gmra.mxu3 %vm39_vm1, %v4078_v36  ;;  %v670_v59 = vsel %vm61_vm0, %v665_v19, %v669_v50  ;;  %v3505_v19 = vld [vmem:[%s6258_s1 + $0x378] sm:$0xf]  ;;  %v3503_v48 = vld [vmem:[%s6258_s1 + $0x368] sm:$0xff]  ;;  %v4711_v55 = vld [vmem:[%s6257_s0 + $0x10] sm:$0xff] }
 0x10c   :  { %v678_v28 = vadd.f32 %v670_v59, %v4466_v11  ;;  %3506 = vmatpush.msk.msra.mxu2 %vm61_vm0, %v3504_v18  ;;  %3514 = vmatpush.msk.msra.mxu3 %vm61_vm0, %v3505_v19  ;;  %v3479_v59 = vld [vmem:[%s6258_s1 + $0x328] sm:$0xff] }
 0x10d   :  { %1695 = vmatpush.msra.mxu1 %v3479_v59 }
 0x10e   :  { %v739_v60 = vpop.f32.mrf.mxu2  ;;  %v775_v57 = vpop.f32.mrf.mxu3  ;;  %1828 = vmatpush.msra.mxu3 %v3503_v48 }
 0x10f   :  { %v801_v58 = vrot.slane %v739_v60, 5  ;;  %v803_v16 = vrot.slane %v775_v57, 5  ;;  %v609_v61 = vpop.f32.mrf.mxu0  ;;  %v645_v62 = vpop.f32.mrf.mxu1 }
 0x111   :  { %v802_v10 = vsel %vm794_vm5, %v796_v43, %v801_v58  ;;  %v804_v63 = vsel %vm794_vm5, %v799_v44, %v803_v16 }
 0x112   :  { %v4618_v4 = vadd.f32 %v802_v10, %v677_v56  ;;  %v4620_v5 = vadd.f32 %v804_v63, %v678_v28  ;;  %3392 = vmatmul.msk.f32.gmra.mxu0 %vm39_vm1, %v4091_v37  ;;  %3400 = vmatmul.msk.f32.gmra.mxu1 %vm39_vm1, %v4091_v37  ;;  %v3478_v56 = vld [vmem:[%s6258_s1 + $0x320] sm:$0xff]  ;;  %v3476_v10 = vld [vmem:[%s6258_s1 + $0x310] sm:$0xff]  ;;  %v3477_v63 = vld [vmem:[%s6258_s1 + $0x318] sm:$0xff] }
 0x113   :  { %3416 = vmatmul.msk.f32.gmra.mxu2 %vm39_vm1, %v4091_v37  ;;  %3424 = vmatmul.msk.f32.gmra.mxu3 %vm39_vm1, %v4091_v37 }
 0x114   :  { %1659 = vmatpush.msra.mxu0 %v3478_v56  ;;  %1696 = vmatpush.msra.mxu1 %v3477_v63 }
 0x116   :  { %v742_v36 = vpop.f32.mrf.mxu2  ;;  %v778_v11 = vpop.f32.mrf.mxu3  ;;  %1660 = vmatpush.msra.mxu0 %v3476_v10 }
 0x117   :  { %v611_v7 = vpop.f32.mrf.mxu0  ;;  %v647_v8 = vpop.f32.mrf.mxu1  ;;  %v4736_v36 = vld [vmem:[%s6257_s0 + $0x18] sm:$0xff]  ;;  %v3500_v11 = vld [vmem:[%s6258_s1 + $0x350] sm:$0xff] }
 0x118   :  { %v683_v24 = vrot.slane %v611_v7, 4  ;;  %v684_v9 = vrot.slane %v647_v8, 4  ;;  %v3501_v7 = vld [vmem:[%s6258_s1 + $0x358] sm:$0xff] }
 0x119   :  { %1829 = vmatpush.msra.mxu3 %v3501_v7 }
 0x11a   :  { %3393 = vmatmul.msk.f32.gmra.mxu0 %vm39_vm1, %v4104_v38  ;;  %3401 = vmatmul.msk.f32.gmra.mxu1 %vm39_vm1, %v4104_v38  ;;  %v695_v27 = vadd.f32 %v683_v24, %v4510_v3  ;;  %v696_v12 = vadd.f32 %v684_v9, %v4515_v49 }
 0x11b   :  { %3417 = vmatmul.msk.f32.gmra.mxu2 %vm39_vm1, %v4104_v38  ;;  %3425 = vmatmul.msk.f32.gmra.mxu3 %vm39_vm1, %v4104_v38 }
 0x11e   :  { %v744_v21 = vpop.f32.mrf.mxu2  ;;  %v780_v37 = vpop.f32.mrf.mxu3 }
 0x11f   :  { %v817_v13 = vrot.slane %v744_v21, 5  ;;  %v818_v14 = vrot.slane %v780_v37, 5  ;;  %v614_v15 = vpop.f32.mrf.mxu0  ;;  %v650_v17 = vpop.f32.mrf.mxu1  ;;  %v3498_v21 = vld [vmem:[%s6258_s1 + $0x340] sm:$0xff]  ;;  %v3499_v37 = vld [vmem:[%s6258_s1 + $0x348] sm:$0xff] }
 0x120   :  { %v685_v20 = vrot.slane %v614_v15, 4  ;;  %v687_v38 = vrot.slane %v650_v17, 4  ;;  %1830 = vmatpush.msra.mxu3 %v3499_v37 }
 0x121   :  { %v4648_v3 = vadd.f32 %v817_v13, %v695_v27  ;;  %v4650_v49 = vadd.f32 %v818_v14, %v696_v12 }
 0x122   :  { %v699_v22 = vadd.f32 %v685_v20, %v4525_v29  ;;  %v700_v26 = vadd.f32 %v687_v38, %v4528_v0  ;;  %3435 = vmatmul.msk.f32.vlgmr.msrb.gmra.mxu0 %vm39_vm1, %v4657_v23  ;;  %3443 = vmatmul.msk.f32.vlgmr.msrb.gmra.mxu1 %vm39_vm1, %v4657_v23  ;;  %v686_v29 = vsel %vm61_vm0, %v683_v24, %v685_v20  ;;  %v3474_v24 = vld [vmem:[%s6258_s1 + $0x300] sm:$0xff] }
 0x123   :  { %3459 = vmatmul.msk.f32.vlgmr.msrb.gmra.mxu2 %vm39_vm1, %v4657_v23  ;;  %3467 = vmatmul.msk.f32.vlgmr.msrb.gmra.mxu3 %vm39_vm1, %v4657_v23  ;;  %v688_v0 = vsel %vm61_vm0, %v684_v9, %v687_v38  ;;  %v697_v41 = vadd.f32 %v686_v29, %v4530_v2  ;;  %v3475_v9 = vld [vmem:[%s6258_s1 + $0x308] sm:$0xff] }
 0x124   :  { %v698_v42 = vadd.f32 %v688_v0, %v4532_v6  ;;  %v3502_v6 = vld [vmem:[%s6258_s1 + $0x360] sm:$0xff]  ;;  %1661 = vmatpush.msra.mxu0 %v3474_v24  ;;  %1697 = vmatpush.msra.mxu1 %v3475_v9 }
 0x125   :  { %1792 = vmatpush.msra.mxu2 %v3502_v6 }
 0x126   :  { %v747_v31 = vpop.f32.mrf.mxu2  ;;  %v783_v32 = vpop.f32.mrf.mxu3 }
 0x127   :  { %v819_v33 = vrot.slane %v747_v31, 5  ;;  %v821_v34 = vrot.slane %v783_v32, 5  ;;  %v617_v39 = vpop.f32.mrf.mxu0  ;;  %v653_v40 = vpop.f32.mrf.mxu1  ;;  %1793 = vmatpush.msra.mxu2 %v3500_v11  ;;  %v4774_v32 = vld [vmem:[%s6257_s0 + $0x20] sm:$0xff] }
 0x129   :  { %v820_v35 = vsel %vm794_vm5, %v817_v13, %v819_v33  ;;  %v4680_v43 = vadd.f32 %v819_v33, %v699_v22  ;;  %v822_v44 = vsel %vm794_vm5, %v818_v14, %v821_v34  ;;  %v4683_v45 = vadd.f32 %v821_v34, %v700_v26  ;;  %1794 = vmatpush.msra.mxu2 %v3498_v21 }
 0x12a   :  { %v4685_v46 = vadd.f32 %v820_v35, %v697_v41  ;;  %3436 = vmatmul.msk.f32.gmra.mxu0 %vm39_vm1, %v4690_v47  ;;  %v4694_v2 = vadd.f32 %v822_v44, %v698_v42  ;;  %3444 = vmatmul.msk.f32.gmra.mxu1 %vm39_vm1, %v4690_v47 }
 0x12b   :  { %3460 = vmatmul.msk.f32.gmra.mxu2 %vm39_vm1, %v4690_v47  ;;  %3468 = vmatmul.msk.f32.gmra.mxu3 %vm39_vm1, %v4690_v47 }
 0x12e   :  { %v750_v52 = vpop.f32.mrf.mxu2  ;;  %v786_v53 = vpop.f32.mrf.mxu3 }
 0x12f   :  { %v867_v1 = vpop.f32.mrf.mxu0  ;;  %v904_v50 = vpop.f32.mrf.mxu1 }
 0x130   :  { %v931_v61 = vrot.slane %v867_v1, 6  ;;  %v934_v8 = vrot.slane %v904_v50, 6 }
 0x132   :  { %3437 = vmatmul.msk.f32.gmra.mxu0 %vm39_vm1, %v4711_v55  ;;  %3445 = vmatmul.msk.f32.gmra.mxu1 %vm39_vm1, %v4711_v55 }
 0x133   :  { %3461 = vmatmul.msk.f32.gmra.mxu2 %vm39_vm1, %v4711_v55  ;;  %3469 = vmatmul.msk.f32.gmra.mxu3 %vm39_vm1, %v4711_v55 }
 0x136   :  { %v1009_v60 = vpop.f32.mrf.mxu2  ;;  %v1046_v57 = vpop.f32.mrf.mxu3 }
 0x137   :  { %v870_v58 = vpop.f32.mrf.mxu0  ;;  %v907_v16 = vpop.f32.mrf.mxu1  ;;  %v1073_v27 = vrot.slane %v1009_v60, 7  ;;  %v1076_v17 = vrot.slane %v1046_v57, 7  ;;  %v4817_v60 = vld [vmem:[%s6257_s0 + $0x30] sm:$0xff] }
 0x138   :  { %v932_v62 = vrot.slane %v870_v58, 6  ;;  %v935_v28 = vrot.slane %v907_v16, 6 }
 0x13a   :  { %3438 = vmatmul.msk.f32.gmra.mxu0 %vm39_vm1, %v4736_v36  ;;  %3446 = vmatmul.msk.f32.gmra.mxu1 %vm39_vm1, %v4736_v36  ;;  %v933_v12 = vsel %vm930_vm6, %v931_v61, %v932_v62  ;;  %v936_v13 = vsel %vm930_vm6, %v934_v8, %v935_v28 }
 0x13b   :  { %3462 = vmatmul.msk.f32.gmra.mxu2 %vm39_vm1, %v4736_v36  ;;  %3470 = vmatmul.msk.f32.gmra.mxu3 %vm39_vm1, %v4736_v36  ;;  %v945_v26 = vadd.f32 %v933_v12, %v4600_v51  ;;  %v946_v25 = vadd.f32 %v936_v13, %v4602_v54 }
 0x13e   :  { %v1012_v14 = vpop.f32.mrf.mxu2  ;;  %v1049_v15 = vpop.f32.mrf.mxu3 }
 0x13f   :  { %v1074_v18 = vrot.slane %v1012_v14, 7  ;;  %v1077_v19 = vrot.slane %v1049_v15, 7  ;;  %v873_v20 = vpop.f32.mrf.mxu0  ;;  %v910_v38 = vpop.f32.mrf.mxu1 }
 0x140   :  { %v937_v22 = vrot.slane %v873_v20, 6  ;;  %v939_v30 = vrot.slane %v910_v38, 6 }
 0x141   :  { %v1075_v29 = vsel %vm1072_vm7, %v1073_v27, %v1074_v18  ;;  %v1078_v0 = vsel %vm1072_vm7, %v1076_v17, %v1077_v19 }
 0x142   :  { %v938_v31 = vsel %vm930_vm6, %v932_v62, %v937_v22  ;;  %3439 = vmatmul.msk.f32.gmra.mxu0 %vm39_vm1, %v4774_v32  ;;  %v4778_v33 = vadd.f32 %v1075_v29, %v945_v26  ;;  %v4780_v51 = vadd.f32 %v1078_v0, %v946_v25  ;;  %3447 = vmatmul.msk.f32.gmra.mxu1 %vm39_vm1, %v4774_v32 }
 0x143   :  { %3463 = vmatmul.msk.f32.gmra.mxu2 %vm39_vm1, %v4774_v32  ;;  %v947_v54 = vadd.f32 %v938_v31, %v4618_v4  ;;  %3471 = vmatmul.msk.f32.gmra.mxu3 %vm39_vm1, %v4774_v32  ;;  %v940_v34 = vsel %vm930_vm6, %v935_v28, %v939_v30  ;;  %v4796_v4 = vld [vmem:[%s6257_s0 + $0x28] sm:$0xff] }
 0x144   :  { %v948_v6 = vadd.f32 %v940_v34, %v4620_v5 }
 0x146   :  { %v1015_v39 = vpop.f32.mrf.mxu2  ;;  %v1052_v40 = vpop.f32.mrf.mxu3 }
 0x147   :  { %v1079_v41 = vrot.slane %v1015_v39, 7  ;;  %v1081_v42 = vrot.slane %v1052_v40, 7  ;;  %v876_v35 = vpop.f32.mrf.mxu0  ;;  %v913_v44 = vpop.f32.mrf.mxu1 }
 0x149   :  { %v1080_v48 = vsel %vm1072_vm7, %v1074_v18, %v1079_v41  ;;  %v1082_v52 = vsel %vm1072_vm7, %v1077_v19, %v1081_v42 }
 0x14a   :  { %3440 = vmatmul.msk.f32.gmra.mxu0 %vm39_vm1, %v4796_v4  ;;  %v4800_v53 = vadd.f32 %v1080_v48, %v947_v54  ;;  %v4802_v1 = vadd.f32 %v1082_v52, %v948_v6  ;;  %3448 = vmatmul.msk.f32.gmra.mxu1 %vm39_vm1, %v4796_v4 }
 0x14b   :  { %3464 = vmatmul.msk.f32.gmra.mxu2 %vm39_vm1, %v4796_v4  ;;  %3472 = vmatmul.msk.f32.gmra.mxu3 %vm39_vm1, %v4796_v4 }
 0x14e   :  { %v1018_v5 = vpop.f32.mrf.mxu2  ;;  %v1055_v50 = vpop.f32.mrf.mxu3 }
 0x14f   :  { %v4810_v56 = vpop.f32.mrf.mxu0  ;;  %v4812_v59 = vpop.f32.mrf.mxu1 }
 0x150   :  { %v956_v54 = vrot.slane %v4812_v59, 6 }
 0x152   :  { %3441 = vmatmul.msk.f32.gmra.mxu0 %vm39_vm1, %v4817_v60  ;;  %3449 = vmatmul.msk.f32.gmra.mxu1 %vm39_vm1, %v4817_v60  ;;  %v972_v39 = vadd.f32 %v956_v54, %v4650_v49 }
 0x153   :  { %3465 = vmatmul.msk.f32.gmra.mxu2 %vm39_vm1, %v4817_v60  ;;  %3473 = vmatmul.msk.f32.gmra.mxu3 %vm39_vm1, %v4817_v60 }
 0x156   :  { %v4827_v57 = vpop.f32.mrf.mxu2  ;;  %v4829_v58 = vpop.f32.mrf.mxu3 }
 0x157   :  { %v4831_v16 = vpop.f32.mrf.mxu0  ;;  %v4833_v61 = vpop.f32.mrf.mxu1 }
 0x158   :  { %v957_v63 = vrot.slane %v4831_v16, 6  ;;  %v959_v8 = vrot.slane %v4833_v61, 6 }
 0x15a   :  { %3483 = vmatmul.msk.f32.vlgmr.msra.gmra.mxu0 %vm39_vm1, %v4657_v23  ;;  %3491 = vmatmul.msk.f32.vlgmr.msra.gmra.mxu1 %vm39_vm1, %v4657_v23  ;;  %v960_v52 = vsel %vm930_vm6, %v956_v54, %v959_v8 }
 0x15b   :  { %3507 = vmatmul.msk.f32.vlgmr.msra.gmra.mxu2 %vm39_vm1, %v4657_v23  ;;  %3515 = vmatmul.msk.f32.vlgmr.msra.gmra.mxu3 %vm39_vm1, %v4657_v23 }
 0x15e   :  { %v4843_v62 = vpop.f32.mrf.mxu2  ;;  %v4845_v28 = vpop.f32.mrf.mxu3 }
 0x15f   :  { %v884_v10 = vpop.f32.mrf.mxu0  ;;  %v921_v7 = vpop.f32.mrf.mxu1  ;;  %v1099_v12 = vrot.slane %v4843_v62, 7  ;;  %v1101_v44 = vrot.slane %v4845_v28, 7 }
 0x160   :  { %v961_v11 = vrot.slane %v884_v10, 6  ;;  %v963_v24 = vrot.slane %v921_v7, 6 }
 0x162   :  { %3484 = vmatmul.msk.f32.gmra.mxu0 %vm39_vm1, %v4690_v47  ;;  %v962_v9 = vsel %vm930_vm6, %v957_v63, %v961_v11  ;;  %3492 = vmatmul.msk.f32.gmra.mxu1 %vm39_vm1, %v4690_v47  ;;  %v964_v21 = vsel %vm930_vm6, %v959_v8, %v963_v24  ;;  %v1097_v11 = vrot.slane %v4827_v57, 7 }
 0x163   :  { %3508 = vmatmul.msk.f32.gmra.mxu2 %vm39_vm1, %v4690_v47  ;;  %v975_v23 = vadd.f32 %v962_v9, %v4680_v43  ;;  %3516 = vmatmul.msk.f32.gmra.mxu3 %vm39_vm1, %v4690_v47  ;;  %v4863_v37 = vadd.f32 %v964_v21, %v4683_v45 }
 0x166   :  { %v1026_v27 = vpop.f32.mrf.mxu2  ;;  %v4866_v14 = vpop.f32.mrf.mxu3 }
 0x167   :  { %v1103_v13 = vrot.slane %v1026_v27, 7  ;;  %v1151_v15 = vpop.f32.mrf.mxu0  ;;  %v1187_v17 = vpop.f32.mrf.mxu1  ;;  %v1105_v61 = vrot.slane %v4866_v14, 7 }
 0x169   :  { %v1104_v43 = vsel %vm1072_vm7, %v1099_v12, %v1103_v13 }
 0x16a   :  { %3485 = vmatmul.msk.f32.gmra.mxu0 %vm39_vm1, %v4711_v55  ;;  %v4873_v18 = vadd.f32 %v1104_v43, %v975_v23  ;;  %3493 = vmatmul.msk.f32.gmra.mxu1 %vm39_vm1, %v4711_v55  ;;  %v1100_v43 = vsel %vm1072_vm7, %v1097_v11, %v1099_v12 }
 0x16b   :  { %3509 = vmatmul.msk.f32.gmra.mxu2 %vm39_vm1, %v4711_v55  ;;  %3517 = vmatmul.msk.f32.gmra.mxu3 %vm39_vm1, %v4711_v55 }
 0x16e   :  { %v1248_v45 = vpop.f32.mrf.mxu2  ;;  %v1284_v47 = vpop.f32.mrf.mxu3 }
 0x16f   :  { %v4881_v19 = vpop.f32.mrf.mxu0  ;;  %v4883_v20 = vpop.f32.mrf.mxu1 }
 0x172   :  { %3486 = vmatmul.msk.f32.gmra.mxu0 %vm39_vm1, %v4736_v36  ;;  %3494 = vmatmul.msk.f32.gmra.mxu1 %vm39_vm1, %v4736_v36 }
 0x173   :  { %3510 = vmatmul.msk.f32.gmra.mxu2 %vm39_vm1, %v4736_v36  ;;  %3518 = vmatmul.msk.f32.gmra.mxu3 %vm39_vm1, %v4736_v36 }
 0x176   :  { %v4893_v38 = vpop.f32.mrf.mxu2  ;;  %v4895_v55 = vpop.f32.mrf.mxu3 }
 0x177   :  { %v1156_v22 = vpop.f32.mrf.mxu0  ;;  %v4897_v26 = vpop.f32.mrf.mxu1 }
 0x178   :  { %v1208_v25 = vadd.f32 %v1156_v22, %v4800_v53 }
 0x17a   :  { %3487 = vmatmul.msk.f32.gmra.mxu0 %vm39_vm1, %v4774_v32  ;;  %3495 = vmatmul.msk.f32.gmra.mxu1 %vm39_vm1, %v4774_v32 }
 0x17b   :  { %3511 = vmatmul.msk.f32.gmra.mxu2 %vm39_vm1, %v4774_v32  ;;  %3519 = vmatmul.msk.f32.gmra.mxu3 %vm39_vm1, %v4774_v32  ;;  %v1098_v32 = vrot.slane %v4829_v58, 7  ;;  %v955_v58 = vrot.slane %v4810_v56, 6 }
 0x17d   :  { %v1114_v35 = vadd.f32 %v1098_v32, %v972_v39  ;;  %v1102_v49 = vsel %vm1072_vm7, %v1098_v32, %v1101_v44  ;;  %v971_v7 = vadd.f32 %v955_v58, %v4648_v3  ;;  %v958_v57 = vsel %vm930_vm6, %v955_v58, %v957_v63 }
 0x17e   :  { %v4907_v36 = vpop.f32.mrf.mxu2  ;;  %v4911_v29 = vpop.f32.mrf.mxu3  ;;  %v973_v45 = vadd.f32 %v958_v57, %v4685_v46 }
 0x17f   :  { %v1308_v30 = vrot.slane %v4907_v36, 1  ;;  %v1159_v0 = vpop.f32.mrf.mxu0  ;;  %v1195_v31 = vpop.f32.mrf.mxu1  ;;  %v1113_v24 = vadd.f32 %v1097_v11, %v971_v7 }
 0x181   :  { %v4916_v34 = vadd.f32 %v1308_v30, %v1208_v25 }
 0x182   :  { %3488 = vmatmul.msk.f32.gmra.mxu0 %vm39_vm1, %v4796_v4  ;;  %3496 = vmatmul.msk.f32.gmra.mxu1 %vm39_vm1, %v4796_v4 }
 0x183   :  { %3512 = vmatmul.msk.f32.gmra.mxu2 %vm39_vm1, %v4796_v4  ;;  %3520 = vmatmul.msk.f32.gmra.mxu3 %vm39_vm1, %v4796_v4  ;;  %v974_v4 = vadd.f32 %v960_v52, %v4694_v2  ;;  %v1310_v52 = vrot.slane %v4895_v55, 1 }
 0x185   :  { %v1116_v59 = vadd.f32 %v1102_v49, %v974_v4 }
 0x186   :  { %v1256_v40 = vpop.f32.mrf.mxu2  ;;  %v1292_v41 = vpop.f32.mrf.mxu3 }
 0x187   :  { %v1161_v42 = vpop.f32.mrf.mxu0  ;;  %v1197_v6 = vpop.f32.mrf.mxu1 }
 0x188   :  { %v4929_v48 = vadd.f32 %v1197_v6, %v1114_v35  ;;  %v1210_v56 = vadd.f32 %v1161_v42, %v1113_v24  ;;  %v1311_v6 = vrot.slane %v4911_v29, 1 }
 0x18a   :  { %3489 = vmatmul.msk.f32.gmra.mxu0 %vm39_vm1, %v4817_v60  ;;  %3497 = vmatmul.msk.f32.gmra.mxu1 %vm39_vm1, %v4817_v60 }
 0x18b   :  { %3513 = vmatmul.msk.f32.gmra.mxu2 %vm39_vm1, %v4817_v60  ;;  %3521 = vmatmul.msk.f32.gmra.mxu3 %vm39_vm1, %v4817_v60  ;;  %v1106_v60 = vsel %vm1072_vm7, %v1101_v44, %v1105_v61  ;;  %v1307_v44 = vrot.slane %v4893_v38, 1  ;;  %v1207_v38 = vadd.f32 %v4883_v20, %v4780_v51  ;;  %v1209_v51 = vadd.f32 %v4897_v26, %v4802_v1  ;;  %v3539_v26 = vld [vmem:[%s6259_s2 + $0x110] sm:$0xff] }
 0x18c   :  { %v1118_v27 = vadd.f32 %v1106_v60, %v4863_v37  ;;  %v1115_v37 = vadd.f32 %v1100_v43, %v973_v45  ;;  %2055 = vmatpush.msrb.mxu2 %v3539_v26 }
 0x18d   :  { %v1309_v49 = vsel %vm241_vm2, %v1307_v44, %v1308_v30  ;;  %v1320_v57 = vadd.f32 %v1311_v6, %v1209_v51  ;;  %v3530_v51 = vld [vmem:[%s6259_s2 + $0xc8] sm:$0xff] }
 0x18e   :  { %v1258_v53 = vpop.f32.mrf.mxu2  ;;  %v4942_v5 = vpop.f32.mrf.mxu3 }
 0x18f   :  { %v1164_v50 = vpop.f32.mrf.mxu0  ;;  %v1200_v28 = vpop.f32.mrf.mxu1  ;;  %v1327_v8 = vrot.slane %v1258_v53, 1 }
 0x190   :  { %v1213_v10 = vadd.f32 %v1200_v28, %v1116_v59  ;;  %v1212_v0 = vadd.f32 %v1164_v50, %v1115_v37  ;;  %v1206_v50 = vadd.f32 %v4881_v19, %v4778_v33  ;;  %v1312_v59 = vsel %vm241_vm2, %v1310_v52, %v1311_v6  ;;  %v3535_v6 = vld [vmem:[%s6259_s2 + $0xf0] sm:$0xff] }
 0x191   :  { %v1318_v36 = vadd.f32 %v1312_v59, %v1207_v38  ;;  %v1330_v52 = vrot.slane %v4942_v5, 1  ;;  %v1964_v38 = vld [vmem:[%s6259_s2 + $0x70] sm:$0xff]  ;;  %v3534_v5 = vld [vmem:[%s6259_s2 + $0xe8] sm:$0xff] }
 0x196   :  { %v1261_v2 = vpop.f32.mrf.mxu2  ;;  %v4949_v23 = vpop.f32.mrf.mxu3 }
 0x197   :  { %v1328_v9 = vrot.slane %v1261_v2, 1  ;;  %v1167_v21 = vpop.f32.mrf.mxu0  ;;  %v1203_v14 = vpop.f32.mrf.mxu1  ;;  %v1331_v16 = vrot.slane %v4949_v23, 1 }
 0x198   :  { %v1214_v13 = vadd.f32 %v1167_v21, %v4873_v18  ;;  %v1215_v15 = vadd.f32 %v1203_v14, %v1118_v27 }
 0x199   :  { %v1329_v3 = vsel %vm241_vm2, %v1327_v8, %v1328_v9 }
 0x19a   :  { %v4957_v17 = vadd.f32 %v1329_v3, %v1210_v56 }
 0x19e   :  { %v1264_v47 = vpop.f32.mrf.mxu2  ;;  %v1300_v18 = vpop.f32.mrf.mxu3 }
 0x19f   :  { %v1333_v22 = vrot.slane %v1264_v47, 1  ;;  %v1381_v25 = vpop.f32.mrf.mxu0  ;;  %v1335_v63 = vrot.slane %v1300_v18, 1  ;;  %v1418_v31 = vpop.f32.mrf.mxu1 }
 0x1a1   :  { %v1334_v54 = vsel %vm241_vm2, %v1328_v9, %v1333_v22  ;;  %v4965_v32 = vadd.f32 %v1333_v22, %v1214_v13  ;;  %v1336_v46 = vsel %vm241_vm2, %v1331_v16, %v1335_v63  ;;  %v4972_v62 = vadd.f32 %v1335_v63, %v1215_v15  ;;  %v3538_v63 = vld [vmem:[%s6259_s2 + $0x108] sm:$0xff] }
 0x1a2   :  { %v4967_v39 = vadd.f32 %v1334_v54, %v1212_v0  ;;  %v4974_v12 = vadd.f32 %v1336_v46, %v1213_v10  ;;  %v1317_v10 = vadd.f32 %v1309_v49, %v1206_v50  ;;  %2056 = vmatpush.msrb.mxu2 %v3538_v63  ;;  %v3537_v46 = vld [vmem:[%s6259_s2 + $0x100] sm:$0xff] }
 0x1a4   :  { %2057 = vmatpush.msrb.mxu2 %v3537_v46  ;;  %v3562_v46 = vld [vmem:[%s6259_s2 + $0x1b8] sm:$0xff] }
 0x1a6   :  { %v1522_v40 = vpop.f32.mrf.mxu2  ;;  %v1559_v41 = vpop.f32.mrf.mxu3 }
 0x1a7   :  { %v1383_v42 = vpop.f32.mrf.mxu0  ;;  %v1420_v35 = vpop.f32.mrf.mxu1  ;;  %v3536_v40 = vld [vmem:[%s6259_s2 + $0xf8] sm:$0xff] }
 0x1a8   :  { %v1444_v4 = vrot.slane %v1383_v42, 2  ;;  %v1447_v55 = vrot.slane %v1420_v35, 2  ;;  %v1965_v41 = vld [vmem:[%s6259_s2 + $0x78] sm:$0xff]  ;;  %2058 = vmatpush.msrb.mxu2 %v3536_v40  ;;  %v1954_v40 = vld [vmem:[%s6259_s2 + $0x20] sm:$0xff] }
 0x1a9   :  { %1976 = vmatpush.msrb.mxu0 %v1965_v41  ;;  %v3524_v41 = vld [vmem:[%s6259_s2 + $0x98] sm:$0xff] }
 0x1aa   :  { %2059 = vmatpush.msrb.mxu2 %v3535_v6  ;;  %v3581_v6 = vld [vmem:[%s6259_s2 + $0x240] sm:$0xff] }
 0x1ab   :  { %1977 = vmatpush.msrb.mxu0 %v1964_v38 }
 0x1ac   :  { %2060 = vmatpush.msrb.mxu2 %v3534_v5  ;;  %v3580_v5 = vld [vmem:[%s6259_s2 + $0x238] sm:$0xff] }
 0x1ae   :  { %v1524_v53 = vpop.f32.mrf.mxu2  ;;  %v1561_v58 = vpop.f32.mrf.mxu3 }
 0x1af   :  { %v1386_v61 = vpop.f32.mrf.mxu0  ;;  %v1423_v29 = vpop.f32.mrf.mxu1  ;;  %v1585_v33 = vrot.slane %v1524_v53, 3  ;;  %v1588_v20 = vrot.slane %v1561_v58, 3  ;;  %v1332_v53 = vsel %vm241_vm2, %v1330_v52, %v1331_v16  ;;  %v3602_v52 = vld [vmem:[%s6259_s2 + $0x2d8] sm:$0xff] }
 0x1b0   :  { %v1445_v28 = vrot.slane %v1386_v61, 2  ;;  %v1448_v11 = vrot.slane %v1423_v29, 2  ;;  %v1344_v23 = vadd.f32 %v1332_v53, %v4929_v48  ;;  %v1953_v53 = vld [vmem:[%s6259_s2 + $0x18] sm:$0xff] }
 0x1b2   :  { %v1446_v30 = vsel %vm379_vm3, %v1444_v4, %v1445_v28  ;;  %v1449_v60 = vsel %vm379_vm3, %v1447_v55, %v1448_v11  ;;  %v3533_v55 = vld [vmem:[%s6259_s2 + $0xe0] sm:$0xff] }
 0x1b3   :  { %v1458_v7 = vadd.f32 %v1446_v30, %v1317_v10  ;;  %v1459_v8 = vadd.f32 %v1449_v60, %v1318_v36  ;;  %v1963_v10 = vld [vmem:[%s6259_s2 + $0x68] sm:$0xff]  ;;  %2061 = vmatpush.msrb.mxu2 %v3533_v55  ;;  %v1962_v30 = vld [vmem:[%s6259_s2 + $0x60] sm:$0xff]  ;;  %v1961_v60 = vld [vmem:[%s6259_s2 + $0x58] sm:$0xff] }
 0x1b4   :  { %1978 = vmatpush.msrb.mxu0 %v1963_v10  ;;  %v3600_v10 = vld [vmem:[%s6259_s2 + $0x2c8] sm:$0xff] }
 0x1b5   :  { %v1951_v55 = vld [vmem:[%s6259_s2 + $0x8] sm:$0xff] }
 0x1b6   :  { %v1527_v19 = vpop.f32.mrf.mxu2  ;;  %v1564_v2 = vpop.f32.mrf.mxu3  ;;  %1979 = vmatpush.msrb.mxu0 %v1962_v30  ;;  %v3599_v30 = vld [vmem:[%s6259_s2 + $0x2c0] sm:$0xff] }
 0x1b7   :  { %v1586_v24 = vrot.slane %v1527_v19, 3  ;;  %v1389_v9 = vpop.f32.mrf.mxu0  ;;  %v1589_v21 = vrot.slane %v1564_v2, 3  ;;  %v1426_v56 = vpop.f32.mrf.mxu1 }
 0x1b8   :  { %v1450_v27 = vrot.slane %v1389_v9, 2  ;;  %v1452_v14 = vrot.slane %v1426_v56, 2  ;;  %1980 = vmatpush.msrb.mxu0 %v1961_v60  ;;  %v1960_v9 = vld [vmem:[%s6259_s2 + $0x50] sm:$0xff]  ;;  %v3529_v56 = vld [vmem:[%s6259_s2 + $0xc0] sm:$0xff]  ;;  %v3560_v60 = vld [vmem:[%s6259_s2 + $0x1a8] sm:$0xff] }
 0x1b9   :  { %v1587_v13 = vsel %vm521_vm4, %v1585_v33, %v1586_v24  ;;  %v1590_v15 = vsel %vm521_vm4, %v1588_v20, %v1589_v21 }
 0x1ba   :  { %v4992_v3 = vadd.f32 %v1587_v13, %v1458_v7  ;;  %v1451_v43 = vsel %vm379_vm3, %v1445_v28, %v1450_v27  ;;  %v4996_v45 = vadd.f32 %v1590_v15, %v1459_v8  ;;  %v1453_v1 = vsel %vm379_vm3, %v1448_v11, %v1452_v14  ;;  %v3532_v7 = vld [vmem:[%s6259_s2 + $0xd8] sm:$0xff]  ;;  %1981 = vmatpush.msrb.mxu0 %v1960_v9  ;;  %v1959_v27 = vld [vmem:[%s6259_s2 + $0x48] sm:$0xff] }
 0x1bb   :  { %v1460_v37 = vadd.f32 %v1451_v43, %v4916_v34  ;;  %v1461_v47 = vadd.f32 %v1453_v1, %v1320_v57  ;;  %2062 = vmatpush.msrb.mxu2 %v3532_v7  ;;  %v3528_v15 = vld [vmem:[%s6259_s2 + $0xb8] sm:$0xff]  ;;  %v1950_v7 = vld [vmem:[%s6259_s2] sm:$0xff] }
 0x1bc   :  { %1982 = vmatpush.msrb.mxu0 %v1959_v27  ;;  %v3576_v27 = vld [vmem:[%s6259_s2 + $0x218] sm:$0xff] }
 0x1be   :  { %v1530_v22 = vpop.f32.mrf.mxu2  ;;  %v1567_v25 = vpop.f32.mrf.mxu3 }
 0x1bf   :  { %v1591_v18 = vrot.slane %v1530_v22, 3  ;;  %v1392_v0 = vpop.f32.mrf.mxu0  ;;  %v1593_v31 = vrot.slane %v1567_v25, 3  ;;  %v1429_v54 = vpop.f32.mrf.mxu1  ;;  %v3526_v25 = vld [vmem:[%s6259_s2 + $0xa8] sm:$0xff] }
 0x1c0   :  { %v1468_v49 = vrot.slane %v1392_v0, 2  ;;  %v1471_v28 = vrot.slane %v1429_v54, 2  ;;  %v3563_v0 = vld [vmem:[%s6259_s2 + $0x1c0] sm:$0x3f]  ;;  %v1955_v54 = vld [vmem:[%s6259_s2 + $0x28] sm:$0xff] }
 0x1c1   :  { %v1592_v34 = vsel %vm521_vm4, %v1586_v24, %v1591_v18  ;;  %v1594_v35 = vsel %vm521_vm4, %v1589_v21, %v1593_v31  ;;  %v1956_v18 = vld [vmem:[%s6259_s2 + $0x30] sm:$0xff]  ;;  %3564 = vmatpush.msk.msrb.mxu1 %vm379_vm3, %v3563_v0  ;;  %v3595_v0 = vld [vmem:[%s6259_s2 + $0x2a0] sm:$0xff] }
 0x1c2   :  { %v5016_v42 = vadd.f32 %v1592_v34, %v1460_v37  ;;  %v5019_v44 = vadd.f32 %v1594_v35, %v1461_v47  ;;  %v3525_v34 = vld [vmem:[%s6259_s2 + $0xa0] sm:$0xff]  ;;  %v3561_v35 = vld [vmem:[%s6259_s2 + $0x1b0] sm:$0xff] }
 0x1c3   :  { %2166 = vmatpush.msrb.mxu1 %v3562_v46  ;;  %v3556_v46 = vld [vmem:[%s6259_s2 + $0x188] sm:$0xff] }
 0x1c5   :  { %2167 = vmatpush.msrb.mxu1 %v3561_v35 }
 0x1c6   :  { %v5025_v4 = vpop.f32.mrf.mxu2  ;;  %v5030_v50 = vpop.f32.mrf.mxu3 }
 0x1c7   :  { %v5032_v59 = vpop.f32.mrf.mxu0  ;;  %v1432_v61 = vpop.f32.mrf.mxu1  ;;  %2288 = vmatpush.msra.mxu1 %v3602_v52 }
 0x1c8   :  { %v1469_v58 = vrot.slane %v5032_v59, 2  ;;  %v1472_v29 = vrot.slane %v1432_v61, 2 }
 0x1ca   :  { %v1470_v16 = vsel %vm379_vm3, %v1468_v49, %v1469_v58  ;;  %v1473_v36 = vsel %vm379_vm3, %v1471_v28, %v1472_v29  ;;  %v3601_v28 = vld [vmem:[%s6259_s2 + $0x2d0] sm:$0xff] }
 0x1cb   :  { %v5052_v11 = vadd.f32 %v1470_v16, %v4957_v17  ;;  %v5055_v48 = vadd.f32 %v1473_v36, %v1344_v23  ;;  %v3531_v17 = vld [vmem:[%s6259_s2 + $0xd0] sm:$0xff]  ;;  %2289 = vmatpush.msra.mxu1 %v3601_v28  ;;  %v3578_v36 = vld [vmem:[%s6259_s2 + $0x228] sm:$0xff] }
 0x1cc   :  { %2063 = vmatpush.msrb.mxu2 %v3531_v17  ;;  %v1952_v23 = vld [vmem:[%s6259_s2 + $0x10] sm:$0xff]  ;;  %v3577_v17 = vld [vmem:[%s6259_s2 + $0x220] sm:$0xff] }
 0x1cd   :  { %v3579_v16 = vld [vmem:[%s6259_s2 + $0x230] sm:$0xff]  ;;  %2290 = vmatpush.msra.mxu1 %v3600_v10 }
 0x1ce   :  { %v5069_v8 = vpop.f32.mrf.mxu2  ;;  %v5071_v33 = vpop.f32.mrf.mxu3  ;;  %2064 = vmatpush.msrb.mxu2 %v3530_v51  ;;  %v3593_v10 = vld [vmem:[%s6259_s2 + $0x290] sm:$0xff] }
 0x1cf   :  { %v5073_v19 = vpop.f32.mrf.mxu0  ;;  %v1435_v2 = vpop.f32.mrf.mxu1  ;;  %2291 = vmatpush.msra.mxu1 %v3599_v30 }
 0x1d0   :  { %v1474_v24 = vrot.slane %v5073_v19, 2  ;;  %v1476_v20 = vrot.slane %v1435_v2, 2  ;;  %2065 = vmatpush.msrb.mxu2 %v3529_v56  ;;  %v3598_v2 = vld [vmem:[%s6259_s2 + $0x2b8] sm:$0xff]  ;;  %v3597_v56 = vld [vmem:[%s6259_s2 + $0x2b0] sm:$0xff] }
 0x1d1   :  { %2292 = vmatpush.msra.mxu1 %v3598_v2  ;;  %v3554_v2 = vld [vmem:[%s6259_s2 + $0x178] sm:$0xff] }
 0x1d2   :  { %v1488_v21 = vadd.f32 %v1474_v24, %v4965_v32  ;;  %v1477_v13 = vsel %vm379_vm3, %v1472_v29, %v1476_v20  ;;  %v1489_v14 = vadd.f32 %v1476_v20, %v4972_v62  ;;  %v1958_v32 = vld [vmem:[%s6259_s2 + $0x40] sm:$0xff]  ;;  %2066 = vmatpush.msrb.mxu2 %v3528_v15  ;;  %v1957_v62 = vld [vmem:[%s6259_s2 + $0x38] sm:$0xff]  ;;  %v3575_v15 = vld [vmem:[%s6259_s2 + $0x210] sm:$0xff] }
 0x1d3   :  { %v5094_v57 = vadd.f32 %v1477_v13, %v4974_v12  ;;  %1983 = vmatpush.msrb.mxu0 %v1958_v32  ;;  %v3527_v12 = vld [vmem:[%s6259_s2 + $0xb0] sm:$0xff]  ;;  %2293 = vmatpush.msra.mxu1 %v3597_v56  ;;  %v3558_v32 = vld [vmem:[%s6259_s2 + $0x198] sm:$0xff] }
 0x1d4   :  { %2067 = vmatpush.msrb.mxu2 %v3527_v12  ;;  %v3553_v56 = vld [vmem:[%s6259_s2 + $0x170] sm:$0xff] }
 0x1d5   :  { %1984 = vmatpush.msrb.mxu0 %v1957_v62  ;;  %v3596_v62 = vld [vmem:[%s6259_s2 + $0x2a8] sm:$0xff] }
 0x1d6   :  { %v5102_v43 = vpop.f32.mrf.mxu2  ;;  %v5111_v1 = vpop.f32.mrf.mxu3  ;;  %2068 = vmatpush.msrb.mxu2 %v3526_v25  ;;  %2294 = vmatpush.msra.mxu1 %v3596_v62  ;;  %v3574_v25 = vld [vmem:[%s6259_s2 + $0x208] sm:$0xff] }
 0x1d7   :  { %v1615_v37 = vrot.slane %v5102_v43, 3  ;;  %v1663_v26 = vpop.f32.mrf.mxu0  ;;  %v1617_v47 = vrot.slane %v5111_v1, 3  ;;  %v1699_v22 = vpop.f32.mrf.mxu1  ;;  %1985 = vmatpush.msrb.mxu0 %v1956_v18  ;;  %v3557_v18 = vld [vmem:[%s6259_s2 + $0x190] sm:$0xff] }
 0x1d8   :  { %2069 = vmatpush.msrb.mxu2 %v3525_v34  ;;  %2295 = vmatpush.msra.mxu1 %v3595_v0 }
 0x1d9   :  { %v5125_v63 = vadd.f32 %v1615_v37, %v1488_v21  ;;  %v5129_v31 = vadd.f32 %v1617_v47, %v1489_v14  ;;  %1986 = vmatpush.msrb.mxu0 %v1955_v54  ;;  %v3559_v21 = vld [vmem:[%s6259_s2 + $0x1a0] sm:$0xff]  ;;  %v1968_v14 = vld [vmem:[%s6259_s2 + $0x90] sm:$0x3f] }
 0x1da   :  { %2070 = vmatpush.msrb.mxu2 %v3524_v41  ;;  %3522 = vmatpush.msk.msrb.mxu3 %vm379_vm3, %v1968_v14  ;;  %v3594_v41 = vld [vmem:[%s6259_s2 + $0x298] sm:$0xff] }
 0x1db   :  { %1987 = vmatpush.msrb.mxu0 %v1954_v40  ;;  %v3573_v40 = vld [vmem:[%s6259_s2 + $0x200] sm:$0xff]  ;;  %2296 = vmatpush.msra.mxu1 %v3594_v41 }
 0x1dc   :  { %2209 = vmatpush.msra.mxu2 %v3581_v6 }
 0x1dd   :  { %1988 = vmatpush.msrb.mxu0 %v1953_v53  ;;  %2297 = vmatpush.msra.mxu1 %v3593_v10 }
 0x1de   :  { %v1796_v49 = vpop.f32.mrf.mxu2  ;;  %v1832_v61 = vpop.f32.mrf.mxu3  ;;  %2210 = vmatpush.msra.mxu2 %v3580_v5 }
 0x1df   :  { %v1665_v38 = vpop.f32.mrf.mxu0  ;;  %v1701_v29 = vpop.f32.mrf.mxu1  ;;  %1989 = vmatpush.msrb.mxu0 %v1952_v23  ;;  %v3555_v23 = vld [vmem:[%s6259_s2 + $0x180] sm:$0xff] }
 0x1e0   :  { %2211 = vmatpush.msra.mxu2 %v3579_v16  ;;  %v1724_v12 = vrot.slane %v1665_v38, 4  ;;  %v1727_v54 = vrot.slane %v1701_v29, 4  ;;  %v3572_v16 = vld [vmem:[%s6259_s2 + $0x1f8] sm:$0xff] }
 0x1e1   :  { %1990 = vmatpush.msrb.mxu0 %v1951_v55 }
 0x1e2   :  { %2212 = vmatpush.msra.mxu2 %v3578_v36 }
 0x1e3   :  { %1991 = vmatpush.msrb.mxu0 %v1950_v7 }
 0x1e4   :  { %2213 = vmatpush.msra.mxu2 %v3577_v17 }
 0x1e5   :  { %2132 = vmatpush.msra.mxu0 %v3560_v60 }
 0x1e6   :  { %v1798_v9 = vpop.f32.mrf.mxu2  ;;  %v1834_v51 = vpop.f32.mrf.mxu3  ;;  %2214 = vmatpush.msra.mxu2 %v3576_v27 }
 0x1e7   :  { %v1668_v20 = vpop.f32.mrf.mxu0  ;;  %v1704_v13 = vpop.f32.mrf.mxu1  ;;  %2133 = vmatpush.msra.mxu0 %v3559_v21  ;;  %v1857_v34 = vrot.slane %v1798_v9, 5  ;;  %v1860_v38 = vrot.slane %v1834_v51, 5  ;;  %v3592_v9 = vld [vmem:[%s6259_s2 + $0x288] sm:$0xff] }
 0x1e8   :  { %v1725_v26 = vrot.slane %v1668_v20, 4  ;;  %2215 = vmatpush.msra.mxu2 %v3575_v15  ;;  %v1728_v22 = vrot.slane %v1704_v13, 4  ;;  %2298 = vmatpush.msra.mxu1 %v3592_v9  ;;  %v3570_v13 = vld [vmem:[%s6259_s2 + $0x1e8] sm:$0xff]  ;;  %v3590_v15 = vld [vmem:[%s6259_s2 + $0x278] sm:$0xff] }
 0x1e9   :  { %2134 = vmatpush.msra.mxu0 %v3558_v32  ;;  %v3569_v32 = vld [vmem:[%s6259_s2 + $0x1e0] sm:$0xff] }
 0x1ea   :  { %2216 = vmatpush.msra.mxu2 %v3574_v25  ;;  %v1726_v35 = vsel %vm61_vm0, %v1724_v12, %v1725_v26  ;;  %v1729_v52 = vsel %vm61_vm0, %v1727_v54, %v1728_v22  ;;  %v3551_v54 = vld [vmem:[%s6259_s2 + $0x160] sm:$0xff] }
 0x1eb   :  { %2135 = vmatpush.msra.mxu0 %v3557_v18  ;;  %v1738_v55 = vadd.f32 %v1726_v35, %v4992_v3  ;;  %v1739_v7 = vadd.f32 %v1729_v52, %v4996_v45  ;;  %v3571_v3 = vld [vmem:[%s6259_s2 + $0x1f0] sm:$0xff]  ;;  %v1967_v35 = vld [vmem:[%s6259_s2 + $0x88] sm:$0xff] }
 0x1ec   :  { %2217 = vmatpush.msra.mxu2 %v3573_v40  ;;  %v3567_v52 = vld [vmem:[%s6259_s2 + $0x1d0] sm:$0xff]  ;;  %2010 = vmatpush.msrb.mxu3 %v1967_v35 }
 0x1ed   :  { %2136 = vmatpush.msra.mxu0 %v3556_v46  ;;  %v3589_v46 = vld [vmem:[%s6259_s2 + $0x270] sm:$0xff] }
 0x1ee   :  { %v1801_v6 = vpop.f32.mrf.mxu2  ;;  %v5237_v53 = vpop.f32.mrf.mxu3  ;;  %2218 = vmatpush.msra.mxu2 %v3572_v16 }
 0x1ef   :  { %v1858_v49 = vrot.slane %v1801_v6, 5  ;;  %v1671_v61 = vpop.f32.mrf.mxu0  ;;  %v1861_v5 = vrot.slane %v5237_v53, 5  ;;  %v1707_v29 = vpop.f32.mrf.mxu1  ;;  %2137 = vmatpush.msra.mxu0 %v3555_v23  ;;  %v3550_v6 = vld [vmem:[%s6259_s2 + $0x158] sm:$0xff]  ;;  %v1610_v23 = vrot.slane %v5069_v8, 3  ;;  %v3541_v8 = vld [vmem:[%s6259_s2 + $0x120] sm:$0xff] }
 0x1f0   :  { %v1730_v28 = vrot.slane %v1671_v61, 4  ;;  %v1732_v30 = vrot.slane %v1707_v29, 4  ;;  %2219 = vmatpush.msra.mxu2 %v3571_v3  ;;  %v1966_v61 = vld [vmem:[%s6259_s2 + $0x80] sm:$0xff]  ;;  %v1609_v29 = vrot.slane %v5025_v4, 3  ;;  %v1612_v3 = vrot.slane %v5030_v50, 3 }
 0x1f1   :  { %v1859_v36 = vsel %vm794_vm5, %v1857_v34, %v1858_v49  ;;  %v1862_v60 = vsel %vm794_vm5, %v1860_v38, %v1861_v5  ;;  %2138 = vmatpush.msra.mxu0 %v3554_v2  ;;  %v3568_v34 = vld [vmem:[%s6259_s2 + $0x1d8] sm:$0xff]  ;;  %v3549_v38 = vld [vmem:[%s6259_s2 + $0x150] sm:$0xff]  ;;  %2011 = vmatpush.msrb.mxu3 %v1966_v61  ;;  %v1475_v50 = vsel %vm379_vm3, %v1469_v58, %v1474_v24 }
 0x1f2   :  { %v1731_v17 = vsel %vm61_vm0, %v1725_v26, %v1730_v28  ;;  %v1871_v51 = vadd.f32 %v1859_v36, %v1738_v55  ;;  %v1733_v20 = vsel %vm61_vm0, %v1728_v22, %v1732_v30  ;;  %v1872_v21 = vadd.f32 %v1862_v60, %v1739_v7  ;;  %2220 = vmatpush.msra.mxu2 %v3570_v13  ;;  %v3587_v28 = vld [vmem:[%s6259_s2 + $0x260] sm:$0xff]  ;;  %v3542_v55 = vld [vmem:[%s6259_s2 + $0x128] sm:$0x3f] }
 0x1f3   :  { %v1740_v45 = vadd.f32 %v1731_v17, %v5016_v42  ;;  %v1741_v27 = vadd.f32 %v1733_v20, %v5019_v44  ;;  %v3591_v42 = vld [vmem:[%s6259_s2 + $0x280] sm:$0xff]  ;;  %2139 = vmatpush.msra.mxu0 %v3553_v56  ;;  %v3552_v44 = vld [vmem:[%s6259_s2 + $0x168] sm:$0xff]  ;;  %v1613_v30 = vrot.slane %v5071_v33, 3  ;;  %3543 = vmatpush.msk.msra.mxu3 %vm379_vm3, %v3542_v55  ;;  %v3540_v20 = vld [vmem:[%s6259_s2 + $0x118] sm:$0xff]  ;;  %v1486_v19 = vadd.f32 %v1475_v50, %v4967_v39 }
 0x1f4   :  { %2299 = vmatpush.msra.mxu1 %v3591_v42  ;;  %v1897_v62 = vmul.f32 0.5, %v1871_v51  ;;  %2221 = vmatpush.msra.mxu2 %v3569_v32  ;;  %v1898_v18 = vmul.f32 0.5, %v1872_v21  ;;  %v3548_v36 = vld [vmem:[%s6259_s2 + $0x148] sm:$0xff]  ;;  %v3547_v17 = vld [vmem:[%s6259_s2 + $0x140] sm:$0xff]  ;;  %v1611_v51 = vsel %vm521_vm4, %v1609_v29, %v1610_v23  ;;  %v3546_v21 = vld [vmem:[%s6259_s2 + $0x138] sm:$0xff]  ;;  %v1616_v59 = vsel %vm521_vm4, %v1610_v23, %v1615_v37 }
 0x1f5   :  { %2140 = vmatpush.msra.mxu0 %v3552_v44  ;;  %2089 = vmatpush.msra.mxu3 %v3541_v8  ;;  %v1625_v32 = vadd.f32 %v1611_v51, %v5052_v11 }
 0x1f6   :  { %v1804_v14 = vpop.f32.mrf.mxu2  ;;  %v1840_v26 = vpop.f32.mrf.mxu3  ;;  %2300 = vmatpush.msra.mxu1 %v3590_v15  ;;  %2222 = vmatpush.msra.mxu2 %v3568_v34  ;;  %3824 = vtanh.f32 %v1897_v62 }
 0x1f7   :  { %v1863_v12 = vrot.slane %v1804_v14, 5  ;;  %v1674_v22 = vpop.f32.mrf.mxu0  ;;  %v1865_v25 = vrot.slane %v1840_v26, 5  ;;  %v1710_v0 = vpop.f32.mrf.mxu1  ;;  %2141 = vmatpush.msra.mxu0 %v3551_v54  ;;  %3826 = vtanh.f32 %v1898_v18  ;;  %2090 = vmatpush.msra.mxu3 %v3540_v20  ;;  %v3545_v14 = vld [vmem:[%s6259_s2 + $0x130] sm:$0xff] }
 0x1f8   :  { %2301 = vmatpush.msra.mxu1 %v3589_v46  ;;  %2223 = vmatpush.msra.mxu2 %v3567_v52 }
 0x1f9   :  { %v1864_v40 = vsel %vm794_vm5, %v1858_v49, %v1863_v12  ;;  %v1866_v53 = vsel %vm794_vm5, %v1861_v5, %v1865_v25  ;;  %2142 = vmatpush.msra.mxu0 %v3550_v6  ;;  %v3588_v49 = vld [vmem:[%s6259_s2 + $0x268] sm:$0xff] }
 0x1fa   :  { %v1873_v41 = vadd.f32 %v1864_v40, %v1740_v45  ;;  %2302 = vmatpush.msra.mxu1 %v3588_v49  ;;  %v3566_v5 = vld [vmem:[%s6259_s2 + $0x1c8] sm:$0xff]  ;;  %v1874_v16 = vadd.f32 %v1866_v53, %v1741_v27  ;;  %v1614_v27 = vsel %vm521_vm4, %v1612_v3, %v1613_v30  ;;  %v1627_v40 = vadd.f32 %v1616_v59, %v1486_v19 }
 0x1fb   :  { %2143 = vmatpush.msra.mxu0 %v3549_v38  ;;  %2224 = vmatpush.msra.mxu2 %v3566_v5  ;;  %v1626_v15 = vadd.f32 %v1614_v27, %v5055_v48  ;;  %v1618_v48 = vsel %vm521_vm4, %v1613_v30, %v1617_v47 }
 0x1fc   :  { %2303 = vmatpush.msra.mxu1 %v3587_v28  ;;  %v3825_v2 = vpop.eup %3824  ;;  %v1899_v9 = vmul.f32 0.5, %v1873_v41  ;;  %v1900_v45 = vmul.f32 0.5, %v1874_v16  ;;  %v1628_v52 = vadd.f32 %v1618_v48, %v5094_v57 }
 0x1fd   :  { %2144 = vmatpush.msra.mxu0 %v3548_v36  ;;  %v3827_v33 = vpop.eup %3826  ;;  %v1905_v13 = vadd.f32 1.0, %v3825_v2 }
 0x1fe   :  { %v1807_v10 = vpop.f32.mrf.mxu2  ;;  %v1843_v7 = vpop.f32.mrf.mxu3  ;;  %v1906_v44 = vadd.f32 1.0, %v3827_v33  ;;  %3828 = vtanh.f32 %v1899_v9 }
 0x1ff   :  { %v1676_v60 = vpop.f32.mrf.mxu0  ;;  %v1712_v4 = vpop.f32.mrf.mxu1  ;;  %2145 = vmatpush.msra.mxu0 %v3547_v17  ;;  %3830 = vtanh.f32 %v1900_v45  ;;  %v5358_v22 = vmul.f32 0.5, %v1905_v13 }
 0x200   :  { %v1746_v56 = vrot.slane %v1676_v60, 4  ;;  %v1747_v42 = vrot.slane %v1712_v4, 4  ;;  %v5363_v54 = vmul.f32 0.5, %v1906_v44 }
 0x201   :  { %2146 = vmatpush.msra.mxu0 %v3546_v21  ;;  %v2019_v1 = vrot.slane %v5358_v22, 1  ;;  %v2096_v47 = vrot.slane %v5358_v22, 2  ;;  %v2250_v16 = vrot.slane %v5358_v22, 4  ;;  %v2402_v27 = vrot.slane %v5358_v22, 6 }
 0x202   :  { %v1758_v58 = vadd.f32 %v1746_v56, %v1625_v32  ;;  %v1759_v18 = vadd.f32 %v1747_v42, %v1626_v15  ;;  %v2097_v61 = vrot.slane %v5363_v54, 2  ;;  %v2020_v28 = vrot.slane %v5363_v54, 1 }
 0x203   :  { %2147 = vmatpush.msra.mxu0 %v3545_v14  ;;  %v2174_v10 = vrot.slane %v5363_v54, 3  ;;  %v2330_v30 = vrot.slane %v5363_v54, 5  ;;  %v2251_v7 = vrot.slane %v5363_v54, 4  ;;  %v2403_v17 = vrot.slane %v5363_v54, 6 }
 0x204   :  { %v3829_v46 = vpop.eup %3828  ;;  %v2479_v14 = vrot.slane %v5358_v22, 7  ;;  %v2480_v15 = vrot.slane %v5363_v54, 7  ;;  %v2329_v19 = vrot.slane %v5358_v22, 5 }
 0x205   :  { %v3831_v6 = vpop.eup %3830  ;;  %v1907_v38 = vadd.f32 1.0, %v3829_v46  ;;  %v3665_v46 = vld [vmem:[%s6259_s2 + $0x4a0] sm:$0xff] }
 0x206   :  { %v1809_v62 = vpop.f32.mrf.mxu2  ;;  %v1845_v12 = vpop.f32.mrf.mxu3  ;;  %v1908_v57 = vadd.f32 1.0, %v3831_v6 }
 0x207   :  { %v1879_v24 = vrot.slane %v1809_v62, 5  ;;  %v1679_v26 = vpop.f32.mrf.mxu0  ;;  %v1880_v25 = vrot.slane %v1845_v12, 5  ;;  %v1715_v0 = vpop.f32.mrf.mxu1  ;;  %v5381_v2 = vmul.f32 0.5, %v1907_v38 }
 0x208   :  { %v1748_v11 = vrot.slane %v1679_v26, 4  ;;  %v1750_v43 = vrot.slane %v1715_v0, 4  ;;  %v5384_v45 = vmul.f32 0.5, %v1908_v57 }
 0x209   :  { %v1891_v39 = vadd.f32 %v1879_v24, %v1758_v58  ;;  %v1892_v34 = vadd.f32 %v1880_v25, %v1759_v18  ;;  %v2708_v59 = vrot.slane %v5381_v2, 2  ;;  %v2631_v12 = vrot.slane %v5381_v2, 1 }
 0x20a   :  { %v1762_v37 = vadd.f32 %v1748_v11, %v5125_v63  ;;  %v1763_v35 = vadd.f32 %v1750_v43, %v5129_v31  ;;  %v1749_v49 = vsel %vm61_vm0, %v1746_v56, %v1748_v11  ;;  %v2173_v63 = vrot.slane %v5358_v22, 3 }
 0x20b   :  { %v1913_v41 = vmul.f32 0.5, %v1891_v39  ;;  %v1914_v53 = vmul.f32 0.5, %v1892_v34  ;;  %v1751_v5 = vsel %vm61_vm0, %v1747_v42, %v1750_v43  ;;  %v1760_v55 = vadd.f32 %v1749_v49, %v1627_v40 }
 0x20c   :  { %v1761_v60 = vadd.f32 %v1751_v5, %v1628_v52  ;;  %v2709_v49 = vrot.slane %v5384_v45, 2 }
 0x20d   :  { %3832 = vtanh.f32 %v1913_v41 }
 0x20e   :  { %3834 = vtanh.f32 %v1914_v53  ;;  %v1812_v31 = vpop.f32.mrf.mxu2  ;;  %v1848_v23 = vpop.f32.mrf.mxu3  ;;  %v3584_v53 = vld [vmem:[%s6259_s2 + $0x258] sm:$0x3f] }
 0x20f   :  { %v1881_v29 = vrot.slane %v1812_v31, 5  ;;  %v1883_v36 = vrot.slane %v1848_v23, 5  ;;  %v3664_v31 = vld [vmem:[%s6259_s2 + $0x498] sm:$0xff] }
 0x211   :  { %v1882_v4 = vsel %vm794_vm5, %v1879_v24, %v1881_v29  ;;  %v1895_v8 = vadd.f32 %v1881_v29, %v1762_v37  ;;  %v1884_v9 = vsel %vm794_vm5, %v1880_v25, %v1883_v36  ;;  %v1896_v33 = vadd.f32 %v1883_v36, %v1763_v35  ;;  %v3644_v37 = vld [vmem:[%s6259_s2 + $0x408] sm:$0xff]  ;;  %v3583_v36 = vld [vmem:[%s6259_s2 + $0x250] sm:$0xff] }
 0x212   :  { %v1893_v3 = vadd.f32 %v1882_v4, %v1760_v55  ;;  %v1894_v21 = vadd.f32 %v1884_v9, %v1761_v60  ;;  %v2632_v24 = vrot.slane %v5384_v45, 1  ;;  %v2942_v29 = vrot.slane %v5384_v45, 5 }
 0x213   :  { %v3833_v51 = vpop.eup %3832  ;;  %v1917_v20 = vmul.f32 0.5, %v1895_v8  ;;  %v1918_v42 = vmul.f32 0.5, %v1896_v33  ;;  %v2863_v60 = vrot.slane %v5384_v45, 4  ;;  %v2785_v4 = vrot.slane %v5381_v2, 3  ;;  %v3642_v33 = vld [vmem:[%s6259_s2 + $0x3f8] sm:$0xff] }
 0x214   :  { %v3835_v56 = vpop.eup %3834  ;;  %v1925_v50 = vadd.f32 1.0, %v3833_v51  ;;  %v1915_v13 = vmul.f32 0.5, %v1893_v3  ;;  %v1916_v32 = vmul.f32 0.5, %v1894_v21  ;;  %v3663_v51 = vld [vmem:[%s6259_s2 + $0x490] sm:$0xff]  ;;  %v2941_v21 = vrot.slane %v5381_v2, 5 }
 0x215   :  { %v1926_v44 = vadd.f32 1.0, %v3835_v56  ;;  %3836 = vtanh.f32 %v1917_v20  ;;  %v2786_v20 = vrot.slane %v5384_v45, 3 }
 0x216   :  { %v1931_v62 = vmul.f32 0.5, %v1925_v50  ;;  %3838 = vtanh.f32 %v1915_v13  ;;  %v3582_v13 = vld [vmem:[%s6259_s2 + $0x248] sm:$0xff] }
 0x217   :  { %v1932_v58 = vmul.f32 0.5, %v1926_v44  ;;  %3840 = vtanh.f32 %v1916_v32  ;;  %v3014_v44 = vrot.slane %v5381_v2, 6  ;;  %v2862_v32 = vrot.slane %v5381_v2, 4 }
 0x218   :  { %3842 = vtanh.f32 %v1918_v42  ;;  %v1944_v26 = vrot.slane %v1931_v62, 3  ;;  %v2023_v18 = vrot.slane %v1931_v62, 4  ;;  %v2100_v25 = vrot.slane %v1931_v62, 5  ;;  %v3624_v42 = vld [vmem:[%s6259_s2 + $0x378] sm:$0xff] }
 0x219   :  { %v1945_v11 = vrot.slane %v1932_v58, 3  ;;  %v2101_v0 = vrot.slane %v1932_v58, 5  ;;  %v2024_v48 = vrot.slane %v1932_v58, 4  ;;  %v2177_v39 = vrot.slane %v1931_v62, 6 }
 0x21a   :  { %v1948_v43 = vsel %vm1072_vm7, %v5358_v22, %v1944_v26  ;;  %v2027_v34 = vsel %vm1072_vm7, %v2019_v1, %v2023_v18  ;;  %v5405_v40 = vsel %vm1072_vm7, %v2096_v47, %v2100_v25  ;;  %v2178_v41 = vrot.slane %v1932_v58, 6  ;;  %v3626_v47 = vld [vmem:[%s6259_s2 + $0x388] sm:$0x3f]  ;;  %v3641_v58 = vld [vmem:[%s6259_s2 + $0x3f0] sm:$0xff] }
 0x21b   :  { %v3837_v35 = vpop.eup %3836  ;;  %1992 = vmatmul.f32.vlgmr.msrb.gmra.mxu0 %v1948_v43  ;;  %v1949_v6 = vsel %vm1072_vm7, %v5363_v54, %v1945_v11  ;;  %2071 = vmatmul.f32.vlgmr.msrb.gmra.mxu2 %v2027_v34  ;;  %v2105_v52 = vsel %vm1072_vm7, %v2097_v61, %v2101_v0  ;;  %v5416_v1 = vsel %vm1072_vm7, %v2020_v28, %v2024_v48  ;;  %v3643_v61 = vld [vmem:[%s6259_s2 + $0x400] sm:$0xff]  ;;  %v3662_v26 = vld [vmem:[%s6259_s2 + $0x488] sm:$0xff] }
 0x21c   :  { %v3839_v38 = vpop.eup %3838  ;;  %v1929_v5 = vadd.f32 1.0, %v3837_v35  ;;  %3523 = vmatmul.msk.f32.vlgmr.msrb.gmra.mxu3 %vm1969_vm8, %v1949_v6  ;;  %3565 = vmatmul.msk.f32.vlgmr.msrb.gmra.mxu1 %vm1969_vm8, %v2105_v52  ;;  %v5433_v28 = vsel %vm1072_vm7, %v2173_v63, %v2177_v39  ;;  %v5438_v57 = vsel %vm1072_vm7, %v2174_v10, %v2178_v41  ;;  %v3625_v63 = vld [vmem:[%s6259_s2 + $0x380] sm:$0xff]  ;;  %v3015_v10 = vrot.slane %v5384_v45, 6  ;;  %v3604_v54 = vld [vmem:[%s6259_s2 + $0x2e8] sm:$0xff] }
 0x21d   :  { %v3841_v23 = vpop.eup %3840  ;;  %v1927_v55 = vadd.f32 1.0, %v3839_v38  ;;  %2438 = vmatpush.msrb.mxu2 %v3644_v37  ;;  %2515 = vmatpush.msrb.mxu1 %v3665_v46  ;;  %v3661_v34 = vld [vmem:[%s6259_s2 + $0x480] sm:$0xff]  ;;  %v3660_v38 = vld [vmem:[%s6259_s2 + $0x478] sm:$0xff] }
 0x21e   :  { %v3843_v8 = vpop.eup %3842  ;;  %v5450_v3 = vmul.f32 0.5, %v1929_v5  ;;  %v1928_v9 = vadd.f32 1.0, %v3841_v23  ;;  %3585 = vmatpush.msk.msrb.mxu3 %vm379_vm3, %v3584_v53  ;;  %3627 = vmatpush.msk.msrb.mxu0 %vm379_vm3, %v3626_v47  ;;  %v3640_v53 = vld [vmem:[%s6259_s2 + $0x3e8] sm:$0xff]  ;;  %v3605_v5 = vld [vmem:[%s6259_s2 + $0x2f0] sm:$0x3f] }
 0x21f   :  { %v5462_v56 = vmul.f32 0.5, %v1927_v55  ;;  %v1930_v50 = vadd.f32 1.0, %v3843_v8  ;;  %2439 = vmatpush.msrb.mxu2 %v3643_v61  ;;  %2516 = vmatpush.msrb.mxu1 %v3664_v31  ;;  %v3647_v61 = vld [vmem:[%s6259_s2 + $0x420] sm:$0x3f]  ;;  %v3659_v23 = vld [vmem:[%s6259_s2 + $0x470] sm:$0xff] }
 0x220   :  { %v5472_v62 = vmul.f32 0.5, %v1928_v9  ;;  %2243 = vmatpush.msrb.mxu3 %v3583_v36  ;;  %2395 = vmatpush.msrb.mxu0 %v3625_v63  ;;  %v3018_v18 = vrot.slane %v5450_v3, 1  ;;  %v5483_v25 = vsel %vm1072_vm7, %v2941_v21, %v5450_v3  ;;  %v2868_v11 = vrot.slane %v5450_v3, 7  ;;  %v3638_v36 = vld [vmem:[%s6259_s2 + $0x3d8] sm:$0xff]  ;;  %v3636_v3 = vld [vmem:[%s6259_s2 + $0x3c8] sm:$0xff] }
 0x221   :  { %v1936_v0 = vmul.f32 0.5, %v1930_v50  ;;  %2440 = vmatpush.msrb.mxu2 %v3642_v33  ;;  %2517 = vmatpush.msrb.mxu1 %v3663_v51  ;;  %v2256_v48 = vrot.slane %v5462_v56, 7  ;;  %v2406_v39 = vrot.slane %v5462_v56, 1  ;;  %v2483_v43 = vrot.slane %v5462_v56, 2  ;;  %v3658_v33 = vld [vmem:[%s6259_s2 + $0x468] sm:$0xff]  ;;  %v3603_v51 = vld [vmem:[%s6259_s2 + $0x2e0] sm:$0xff] }
 0x222   :  { %2244 = vmatpush.msrb.mxu3 %v3582_v13  ;;  %2396 = vmatpush.msrb.mxu0 %v3624_v42  ;;  %v5496_v37 = vsel %vm1072_vm7, %v2330_v30, %v5472_v62  ;;  %v2257_v46 = vrot.slane %v5472_v62, 7  ;;  %v2407_v41 = vrot.slane %v5472_v62, 1  ;;  %v2484_v35 = vrot.slane %v5472_v62, 2  ;;  %v3637_v13 = vld [vmem:[%s6259_s2 + $0x3d0] sm:$0xff] }
 0x223   :  { %v2869_v6 = vrot.slane %v1936_v0, 7  ;;  %v3019_v52 = vrot.slane %v1936_v0, 1  ;;  %2441 = vmatpush.msrb.mxu2 %v3641_v58  ;;  %2518 = vmatpush.msrb.mxu1 %v3662_v26  ;;  %v2260_v47 = vsel %vm1072_vm7, %v2250_v16, %v2256_v48  ;;  %v5510_v30 = vsel %vm1072_vm7, %v2402_v27, %v2406_v39  ;;  %v3668_v58 = vld [vmem:[%s6259_s2 + $0x4b8] sm:$0x3f]  ;;  %v3633_v48 = vld [vmem:[%s6259_s2 + $0x3b0] sm:$0xff]  ;;  %v3654_v39 = vld [vmem:[%s6259_s2 + $0x448] sm:$0xff] }
 0x224   :  { %3544 = vmatmul.msk.f32.vlgmr.msra.gmra.mxu3 %vm1969_vm8, %v5416_v1  ;;  %2148 = vmatmul.f32.vlgmr.msra.gmra.mxu0 %v5405_v40  ;;  %v5524_v16 = vsel %vm1072_vm7, %v2251_v7, %v2257_v46  ;;  %v5529_v27 = vsel %vm1072_vm7, %v2403_v17, %v2407_v41  ;;  %v5534_v40 = vsel %vm1072_vm7, %v2479_v14, %v2483_v43  ;;  %v2636_v1 = vrot.slane %v5472_v62, 4  ;;  %v3639_v7 = vld [vmem:[%s6259_s2 + $0x3e0] sm:$0xff]  ;;  %v3634_v26 = vld [vmem:[%s6259_s2 + $0x3b8] sm:$0xff]  ;;  %v3619_v43 = vld [vmem:[%s6259_s2 + $0x350] sm:$0xff] }
 0x225   :  { %2225 = vmatmul.f32.vlgmr.msra.gmra.mxu2 %v5433_v28  ;;  %2519 = vmatpush.msrb.mxu1 %v3661_v34  ;;  %v5547_v17 = vsel %vm1072_vm7, %v2480_v15, %v2484_v35  ;;  %v2557_v14 = vrot.slane %v5472_v62, 3  ;;  %v5554_v31 = vsel %vm1072_vm7, %v2329_v19, %v5462_v56  ;;  %v2713_v28 = vrot.slane %v5472_v62, 5  ;;  %v3632_v34 = vld [vmem:[%s6259_s2 + $0x3a8] sm:$0xff]  ;;  %v3631_v35 = vld [vmem:[%s6259_s2 + $0x3a0] sm:$0xff] }
 0x226   :  { %2442 = vmatpush.msrb.mxu2 %v3640_v53  ;;  %2304 = vmatmul.f32.vlgmr.msra.gmra.mxu1 %v2260_v47  ;;  %v5566_v15 = vsel %vm1072_vm7, %v2632_v24, %v2636_v1  ;;  %v2712_v22 = vrot.slane %v5462_v56, 5  ;;  %v2635_v19 = vrot.slane %v5462_v56, 4  ;;  %v5573_v55 = vsel %vm1072_vm7, %v2942_v29, %v1936_v0  ;;  %v3646_v24 = vld [vmem:[%s6259_s2 + $0x418] sm:$0xff]  ;;  %v3667_v0 = vld [vmem:[%s6259_s2 + $0x4b0] sm:$0xff]  ;;  %v3666_v46 = vld [vmem:[%s6259_s2 + $0x4a8] sm:$0xff] }
 0x227   :  { %2520 = vmatpush.msrb.mxu1 %v3660_v38  ;;  %3606 = vmatpush.msk.msra.mxu3 %vm379_vm3, %v3605_v5  ;;  %v5584_v63 = vsel %vm1072_vm7, %v5384_v45, %v2557_v14  ;;  %v5589_v29 = vsel %vm1072_vm7, %v2709_v49, %v2713_v28  ;;  %v5594_v8 = vsel %vm1072_vm7, %v2863_v60, %v2869_v6  ;;  %v2789_v9 = vrot.slane %v5462_v56, 6  ;;  %v3635_v45 = vld [vmem:[%s6259_s2 + $0x3c0] sm:$0xff]  ;;  %v3618_v41 = vld [vmem:[%s6259_s2 + $0x348] sm:$0xff]  ;;  %v3652_v6 = vld [vmem:[%s6259_s2 + $0x438] sm:$0xff] }
 0x228   :  { %2443 = vmatpush.msrb.mxu2 %v3639_v7  ;;  %3648 = vmatpush.msk.msra.mxu0 %vm379_vm3, %v3647_v61  ;;  %v5607_v49 = vsel %vm1072_vm7, %v2708_v59, %v2712_v22  ;;  %v5612_v60 = vsel %vm1072_vm7, %v2631_v12, %v2635_v19  ;;  %v2556_v21 = vrot.slane %v5462_v56, 3  ;;  %v5618_v50 = vsel %vm1072_vm7, %v3015_v10, %v3019_v52  ;;  %v3689_v52 = vld [vmem:[%s6259_s2 + $0x550] sm:$0x3f]  ;;  %v3617_v53 = vld [vmem:[%s6259_s2 + $0x340] sm:$0xff]  ;;  %v3630_v47 = vld [vmem:[%s6259_s2 + $0x398] sm:$0xff] }
 0x229   :  { %2521 = vmatpush.msrb.mxu1 %v3659_v23  ;;  %2322 = vmatpush.msra.mxu3 %v3604_v54  ;;  %v5626_v59 = vsel %vm1072_vm7, %v2785_v4, %v2789_v9  ;;  %v2790_v12 = vrot.slane %v5472_v62, 6  ;;  %v5634_v10 = vsel %vm1072_vm7, %v3014_v44, %v3018_v18  ;;  %v5641_v56 = vsel %vm1072_vm7, %v2862_v32, %v2868_v11  ;;  %v3623_v4 = vld [vmem:[%s6259_s2 + $0x370] sm:$0xff]  ;;  %v3657_v44 = vld [vmem:[%s6259_s2 + $0x460] sm:$0xff]  ;;  %v3620_v11 = vld [vmem:[%s6259_s2 + $0x358] sm:$0xff] }
 0x22a   :  { %2444 = vmatpush.msrb.mxu2 %v3638_v36  ;;  %2472 = vmatpush.msra.mxu0 %v3646_v24  ;;  %v5648_v42 = vsel %vm1072_vm7, %v5381_v2, %v2556_v21  ;;  %v3622_v2 = vld [vmem:[%s6259_s2 + $0x368] sm:$0xff]  ;;  %v3645_v62 = vld [vmem:[%s6259_s2 + $0x410] sm:$0xff]  ;;  %v3687_v7 = vld [vmem:[%s6259_s2 + $0x540] sm:$0xff] }
 0x22b   :  { %2522 = vmatpush.msrb.mxu1 %v3658_v33  ;;  %2323 = vmatpush.msra.mxu3 %v3603_v51  ;;  %v5659_v32 = vsel %vm1072_vm7, %v2786_v20, %v2790_v12  ;;  %v3621_v20 = vld [vmem:[%s6259_s2 + $0x360] sm:$0xff]  ;;  %v3655_v18 = vld [vmem:[%s6259_s2 + $0x450] sm:$0xff]  ;;  %v3688_v5 = vld [vmem:[%s6259_s2 + $0x548] sm:$0xff] }
 0x22c   :  { %2445 = vmatpush.msrb.mxu2 %v3637_v13  ;;  %3586 = vmatmul.msk.f32.vlgmr.msrb.gmra.mxu3 %vm1969_vm8, %v5438_v57  ;;  %v3656_v57 = vld [vmem:[%s6259_s2 + $0x458] sm:$0xff]  ;;  %v3651_v38 = vld [vmem:[%s6259_s2 + $0x430] sm:$0xff]  ;;  %v3650_v1 = vld [vmem:[%s6259_s2 + $0x428] sm:$0xff] }
 0x22d   :  { %2361 = vmatpush.msrb.mxu3 %v3623_v4  ;;  %3628 = vmatmul.msk.f32.vlgmr.msrb.gmra.mxu0 %vm1969_vm8, %v5496_v37  ;;  %v3653_v37 = vld [vmem:[%s6259_s2 + $0x440] sm:$0xff]  ;;  %v3710_v61 = vld [vmem:[%s6259_s2 + $0x5e8] sm:$0x3f]  ;;  %v3615_v28 = vld [vmem:[%s6259_s2 + $0x330] sm:$0xff] }
 0x22e   :  { %2446 = vmatpush.msrb.mxu2 %v3636_v3  ;;  %2523 = vmatpush.msrb.mxu1 %v3657_v44  ;;  %v3728_v14 = vld [vmem:[%s6259_s2 + $0x668] sm:$0xff]  ;;  %v3707_v23 = vld [vmem:[%s6259_s2 + $0x5d0] sm:$0xff]  ;;  %v3709_v54 = vld [vmem:[%s6259_s2 + $0x5e0] sm:$0xff] }
 0x22f   :  { %2362 = vmatpush.msrb.mxu3 %v3622_v2  ;;  %2473 = vmatpush.msra.mxu0 %v3645_v62  ;;  %v3706_v22 = vld [vmem:[%s6259_s2 + $0x5c8] sm:$0xff]  ;;  %v3708_v19 = vld [vmem:[%s6259_s2 + $0x5d8] sm:$0xff]  ;;  %v3613_v24 = vld [vmem:[%s6259_s2 + $0x320] sm:$0xff] }
 0x230   :  { %2447 = vmatpush.msrb.mxu2 %v3635_v45  ;;  %2524 = vmatpush.msrb.mxu1 %v3656_v57  ;;  %v3726_v36 = vld [vmem:[%s6259_s2 + $0x658] sm:$0xff]  ;;  %v3731_v9 = vld [vmem:[%s6259_s2 + $0x680] sm:$0x3f]  ;;  %v3725_v33 = vld [vmem:[%s6259_s2 + $0x650] sm:$0xff] }
 0x231   :  { %2363 = vmatpush.msrb.mxu3 %v3621_v20  ;;  %3669 = vmatpush.msk.msrb.mxu0 %vm379_vm3, %v3668_v58  ;;  %v3612_v51 = vld [vmem:[%s6259_s2 + $0x318] sm:$0xff]  ;;  %v3724_v12 = vld [vmem:[%s6259_s2 + $0x648] sm:$0xff]  ;;  %v3611_v4 = vld [vmem:[%s6259_s2 + $0x310] sm:$0xff] }
 0x232   :  { %2448 = vmatpush.msrb.mxu2 %v3634_v26  ;;  %2525 = vmatpush.msrb.mxu1 %v3655_v18  ;;  %v3704_v21 = vld [vmem:[%s6259_s2 + $0x5b8] sm:$0xff]  ;;  %v3703_v3 = vld [vmem:[%s6259_s2 + $0x5b0] sm:$0xff]  ;;  %v3723_v2 = vld [vmem:[%s6259_s2 + $0x640] sm:$0xff] }
 0x233   :  { %2364 = vmatpush.msrb.mxu3 %v3620_v11  ;;  %2549 = vmatpush.msrb.mxu0 %v3667_v0  ;;  %v3730_v13 = vld [vmem:[%s6259_s2 + $0x678] sm:$0xff]  ;;  %v3729_v44 = vld [vmem:[%s6259_s2 + $0x670] sm:$0xff]  ;;  %v3749_v62 = vld [vmem:[%s6259_s2 + $0x700] sm:$0xff] }
 0x234   :  { %2449 = vmatpush.msrb.mxu2 %v3633_v48  ;;  %2526 = vmatpush.msrb.mxu1 %v3654_v39  ;;  %v3610_v45 = vld [vmem:[%s6259_s2 + $0x308] sm:$0xff]  ;;  %v3722_v57 = vld [vmem:[%s6259_s2 + $0x638] sm:$0xff]  ;;  %v3701_v58 = vld [vmem:[%s6259_s2 + $0x5a0] sm:$0xff] }
 0x235   :  { %3607 = vmatmul.msk.f32.vlgmr.msra.gmra.mxu3 %vm1969_vm8, %v5524_v16  ;;  %3649 = vmatmul.msk.f32.vlgmr.msra.gmra.mxu0 %vm1969_vm8, %v5529_v27  ;;  %v3616_v16 = vld [vmem:[%s6259_s2 + $0x338] sm:$0xff]  ;;  %v3629_v27 = vld [vmem:[%s6259_s2 + $0x390] sm:$0xff]  ;;  %v3720_v48 = vld [vmem:[%s6259_s2 + $0x628] sm:$0xff] }
 0x236   :  { %2365 = vmatpush.msrb.mxu3 %v3619_v43  ;;  %2450 = vmatpush.msrb.mxu2 %v3632_v34  ;;  %v3748_v20 = vld [vmem:[%s6259_s2 + $0x6f8] sm:$0xff]  ;;  %v3721_v26 = vld [vmem:[%s6259_s2 + $0x630] sm:$0xff]  ;;  %v3746_v43 = vld [vmem:[%s6259_s2 + $0x6e8] sm:$0xff] }
 0x237   :  { %2527 = vmatpush.msrb.mxu1 %v3653_v37  ;;  %2550 = vmatpush.msrb.mxu0 %v3666_v46  ;;  %v3747_v18 = vld [vmem:[%s6259_s2 + $0x6f0] sm:$0xff]  ;;  %v3608_v11 = vld [vmem:[%s6259_s2 + $0x2f8] sm:$0xff]  ;;  %v3719_v46 = vld [vmem:[%s6259_s2 + $0x620] sm:$0xff] }
 0x238   :  { %2366 = vmatpush.msrb.mxu3 %v3618_v41  ;;  %2451 = vmatpush.msrb.mxu2 %v3631_v35  ;;  %v3700_v0 = vld [vmem:[%s6259_s2 + $0x598] sm:$0xff]  ;;  %v3699_v34 = vld [vmem:[%s6259_s2 + $0x590] sm:$0xff]  ;;  %v3745_v41 = vld [vmem:[%s6259_s2 + $0x6e0] sm:$0xff] }
 0x239   :  { %2528 = vmatpush.msrb.mxu1 %v3652_v6  ;;  %3690 = vmatpush.msk.msra.mxu0 %vm379_vm3, %v3689_v52  ;;  %v3686_v39 = vld [vmem:[%s6259_s2 + $0x538] sm:$0xff]  ;;  %v3685_v37 = vld [vmem:[%s6259_s2 + $0x530] sm:$0xff]  ;;  %v3684_v35 = vld [vmem:[%s6259_s2 + $0x528] sm:$0xff] }
 0x23a   :  { %2367 = vmatpush.msrb.mxu3 %v3617_v53  ;;  %2452 = vmatpush.msrb.mxu2 %v3630_v47  ;;  %v3718_v6 = vld [vmem:[%s6259_s2 + $0x618] sm:$0xff]  ;;  %v3697_v52 = vld [vmem:[%s6259_s2 + $0x580] sm:$0xff]  ;;  %v3717_v47 = vld [vmem:[%s6259_s2 + $0x610] sm:$0xff] }
 0x23b   :  { %2529 = vmatpush.msrb.mxu1 %v3651_v38  ;;  %2622 = vmatpush.msra.mxu0 %v3688_v5  ;;  %v3683_v53 = vld [vmem:[%s6259_s2 + $0x520] sm:$0xff]  ;;  %v3743_v38 = vld [vmem:[%s6259_s2 + $0x6d0] sm:$0xff]  ;;  %v3696_v5 = vld [vmem:[%s6259_s2 + $0x578] sm:$0xff] }
 0x23c   :  { %2368 = vmatpush.msrb.mxu3 %v3616_v16  ;;  %2453 = vmatpush.msrb.mxu2 %v3629_v27  ;;  %v3682_v16 = vld [vmem:[%s6259_s2 + $0x518] sm:$0xff]  ;;  %v3716_v27 = vld [vmem:[%s6259_s2 + $0x608] sm:$0xff] }
 0x23d   :  { %2530 = vmatpush.msrb.mxu1 %v3650_v1  ;;  %2454 = vmatmul.f32.vlgmr.msrb.gmra.mxu2 %v5510_v30  ;;  %v3727_v30 = vld [vmem:[%s6259_s2 + $0x660] sm:$0xff]  ;;  %v3742_v1 = vld [vmem:[%s6259_s2 + $0x6c8] sm:$0xff] }
 0x23e   :  { %2531 = vmatmul.f32.vlgmr.msrb.gmra.mxu1 %v5534_v40  ;;  %2623 = vmatpush.msra.mxu0 %v3687_v7  ;;  %v3614_v40 = vld [vmem:[%s6259_s2 + $0x328] sm:$0xff]  ;;  %v3695_v7 = vld [vmem:[%s6259_s2 + $0x570] sm:$0xff] }
 0x23f   :  { %3711 = vmatpush.msk.msra.mxu2 %vm379_vm3, %v3710_v61  ;;  %2744 = vmatpush.msra.mxu1 %v3728_v14  ;;  %v3681_v61 = vld [vmem:[%s6259_s2 + $0x510] sm:$0xff]  ;;  %v3715_v14 = vld [vmem:[%s6259_s2 + $0x600] sm:$0xff] }
 0x240   :  { %2369 = vmatpush.msrb.mxu3 %v3615_v28  ;;  %3670 = vmatmul.msk.f32.vlgmr.msrb.gmra.mxu0 %vm1969_vm8, %v5547_v17  ;;  %v3705_v17 = vld [vmem:[%s6259_s2 + $0x5c0] sm:$0xff] }
 0x241   :  { %2667 = vmatpush.msrb.mxu0 %v3707_v23  ;;  %2701 = vmatpush.msra.mxu2 %v3709_v54  ;;  %v3741_v28 = vld [vmem:[%s6259_s2 + $0x6c0] sm:$0xff]  ;;  %v3694_v23 = vld [vmem:[%s6259_s2 + $0x568] sm:$0xff] }
 0x242   :  { %2745 = vmatpush.msra.mxu1 %v3727_v30  ;;  %2370 = vmatpush.msrb.mxu3 %v3614_v40  ;;  %v3680_v54 = vld [vmem:[%s6259_s2 + $0x508] sm:$0xff]  ;;  %v3714_v30 = vld [vmem:[%s6259_s2 + $0x5f8] sm:$0xff] }
 0x243   :  { %2668 = vmatpush.msrb.mxu0 %v3706_v22  ;;  %2702 = vmatpush.msra.mxu2 %v3708_v19  ;;  %v3740_v40 = vld [vmem:[%s6259_s2 + $0x6b8] sm:$0xff]  ;;  %v3693_v22 = vld [vmem:[%s6259_s2 + $0x560] sm:$0xff] }
 0x244   :  { %2746 = vmatpush.msra.mxu1 %v3726_v36  ;;  %2371 = vmatpush.msrb.mxu3 %v3613_v24  ;;  %v3679_v19 = vld [vmem:[%s6259_s2 + $0x500] sm:$0xff]  ;;  %v3713_v36 = vld [vmem:[%s6259_s2 + $0x5f0] sm:$0xff] }
 0x245   :  { %2669 = vmatpush.msrb.mxu0 %v3705_v17  ;;  %3732 = vmatpush.msk.msrb.mxu2 %vm379_vm3, %v3731_v9  ;;  %v3739_v24 = vld [vmem:[%s6259_s2 + $0x6b0] sm:$0xff]  ;;  %v3692_v17 = vld [vmem:[%s6259_s2 + $0x558] sm:$0xff] }
 0x246   :  { %2747 = vmatpush.msra.mxu1 %v3725_v33  ;;  %2372 = vmatpush.msrb.mxu3 %v3612_v51  ;;  %v3678_v9 = vld [vmem:[%s6259_s2 + $0x4f8] sm:$0xff]  ;;  %v3794_v33 = vld [vmem:[%s6259_s2 + $0x848] sm:$0x3f] }
 0x247   :  { %2670 = vmatpush.msrb.mxu0 %v3704_v21  ;;  %2778 = vmatpush.msrb.mxu2 %v3730_v13  ;;  %v3738_v51 = vld [vmem:[%s6259_s2 + $0x6a8] sm:$0xff]  ;;  %v3773_v21 = vld [vmem:[%s6259_s2 + $0x7b0] sm:$0x3f]  ;;  %v3793_v13 = vld [vmem:[%s6259_s2 + $0x840] sm:$0xff] }
 0x248   :  { %3712 = vmatmul.msk.f32.vlgmr.msra.gmra.mxu2 %vm1969_vm8, %v5566_v15  ;;  %2748 = vmatpush.msra.mxu1 %v3724_v12  ;;  %v3702_v15 = vld [vmem:[%s6259_s2 + $0x5a8] sm:$0xff]  ;;  %v3677_v12 = vld [vmem:[%s6259_s2 + $0x4f0] sm:$0xff] }
 0x249   :  { %2373 = vmatpush.msrb.mxu3 %v3611_v4  ;;  %3691 = vmatmul.msk.f32.vlgmr.msra.gmra.mxu0 %vm1969_vm8, %v5584_v63  ;;  %v3609_v63 = vld [vmem:[%s6259_s2 + $0x300] sm:$0xff] }
 0x24a   :  { %2671 = vmatpush.msrb.mxu0 %v3703_v3  ;;  %2779 = vmatpush.msrb.mxu2 %v3729_v44  ;;  %v3737_v4 = vld [vmem:[%s6259_s2 + $0x6a0] sm:$0xff]  ;;  %v3792_v3 = vld [vmem:[%s6259_s2 + $0x838] sm:$0xff]  ;;  %v3676_v44 = vld [vmem:[%s6259_s2 + $0x4e8] sm:$0xff] }
 0x24b   :  { %2749 = vmatpush.msra.mxu1 %v3723_v2  ;;  %2374 = vmatpush.msrb.mxu3 %v3610_v45  ;;  %v3771_v2 = vld [vmem:[%s6259_s2 + $0x7a0] sm:$0xff]  ;;  %v3791_v45 = vld [vmem:[%s6259_s2 + $0x830] sm:$0xff] }
 0x24c   :  { %2821 = vmatpush.msra.mxu2 %v3749_v62  ;;  %2672 = vmatpush.msrb.mxu0 %v3702_v15  ;;  %v3812_v62 = vld [vmem:[%s6259_s2 + $0x8c8] sm:$0xff]  ;;  %v3675_v15 = vld [vmem:[%s6259_s2 + $0x4e0] sm:$0xff] }
 0x24d   :  { %2750 = vmatpush.msra.mxu1 %v3722_v57  ;;  %2375 = vmatpush.msrb.mxu3 %v3609_v63  ;;  %v3735_v57 = vld [vmem:[%s6259_s2 + $0x690] sm:$0xff]  ;;  %v3790_v63 = vld [vmem:[%s6259_s2 + $0x828] sm:$0xff] }
 0x24e   :  { %2822 = vmatpush.msra.mxu2 %v3748_v20  ;;  %2673 = vmatpush.msrb.mxu0 %v3701_v58  ;;  %v3811_v20 = vld [vmem:[%s6259_s2 + $0x8c0] sm:$0xff]  ;;  %v3674_v58 = vld [vmem:[%s6259_s2 + $0x4d8] sm:$0xff] }
 0x24f   :  { %2751 = vmatpush.msra.mxu1 %v3721_v26  ;;  %2376 = vmatpush.msrb.mxu3 %v3608_v11  ;;  %v3734_v26 = vld [vmem:[%s6259_s2 + $0x688] sm:$0xff]  ;;  %v3789_v11 = vld [vmem:[%s6259_s2 + $0x820] sm:$0xff] }
 0x250   :  { %2823 = vmatpush.msra.mxu2 %v3747_v18  ;;  %2674 = vmatpush.msrb.mxu0 %v3700_v0  ;;  %v3810_v18 = vld [vmem:[%s6259_s2 + $0x8b8] sm:$0xff]  ;;  %v3673_v0 = vld [vmem:[%s6259_s2 + $0x4d0] sm:$0xff] }
 0x251   :  { %2377 = vmatmul.f32.vlgmr.msrb.gmra.mxu3 %v5554_v31  ;;  %2752 = vmatpush.msra.mxu1 %v3720_v48  ;;  %v3698_v31 = vld [vmem:[%s6259_s2 + $0x588] sm:$0xff]  ;;  %v3809_v48 = vld [vmem:[%s6259_s2 + $0x8b0] sm:$0xff] }
 0x252   :  { %2588 = vmatpush.msra.mxu3 %v3686_v39  ;;  %3733 = vmatmul.msk.f32.vlgmr.msrb.gmra.mxu2 %vm1969_vm8, %v5589_v29  ;;  %v3744_v29 = vld [vmem:[%s6259_s2 + $0x6d8] sm:$0xff] }
 0x253   :  { %2824 = vmatpush.msra.mxu2 %v3746_v43  ;;  %2675 = vmatpush.msrb.mxu0 %v3699_v34  ;;  %v3788_v39 = vld [vmem:[%s6259_s2 + $0x818] sm:$0xff]  ;;  %v3672_v43 = vld [vmem:[%s6259_s2 + $0x4c8] sm:$0xff] }
 0x254   :  { %2589 = vmatpush.msra.mxu3 %v3685_v37  ;;  %2753 = vmatpush.msra.mxu1 %v3719_v46  ;;  %v3814_v34 = vld [vmem:[%s6259_s2 + $0x8d8] sm:$0xff]  ;;  %v3671_v37 = vld [vmem:[%s6259_s2 + $0x4c0] sm:$0xff] }
 0x255   :  { %2825 = vmatpush.msra.mxu2 %v3745_v41  ;;  %2676 = vmatpush.msrb.mxu0 %v3698_v31  ;;  %v3807_v46 = vld [vmem:[%s6259_s2 + $0x8a0] sm:$0xff]  ;;  %v3752_v41 = vld [vmem:[%s6259_s2 + $0x718] sm:$0x3f]  ;;  %v3786_v31 = vld [vmem:[%s6259_s2 + $0x808] sm:$0xff] }
 0x256   :  { %2590 = vmatpush.msra.mxu3 %v3684_v35  ;;  %2754 = vmatpush.msra.mxu1 %v3718_v6  ;;  %v3806_v35 = vld [vmem:[%s6259_s2 + $0x898] sm:$0xff]  ;;  %v3813_v6 = vld [vmem:[%s6259_s2 + $0x8d0] sm:$0xff] }
 0x257   :  { %2826 = vmatpush.msra.mxu2 %v3744_v29  ;;  %2677 = vmatpush.msrb.mxu0 %v3697_v52  ;;  %v3751_v29 = vld [vmem:[%s6259_s2 + $0x710] sm:$0xff]  ;;  %v3785_v52 = vld [vmem:[%s6259_s2 + $0x800] sm:$0xff] }
 0x258   :  { %2591 = vmatpush.msra.mxu3 %v3683_v53  ;;  %2755 = vmatpush.msra.mxu1 %v3717_v47  ;;  %v3805_v53 = vld [vmem:[%s6259_s2 + $0x890] sm:$0xff]  ;;  %v3784_v47 = vld [vmem:[%s6259_s2 + $0x7f8] sm:$0xff] }
 0x259   :  { %2827 = vmatpush.msra.mxu2 %v3743_v38  ;;  %2678 = vmatpush.msrb.mxu0 %v3696_v5  ;;  %v3770_v38 = vld [vmem:[%s6259_s2 + $0x798] sm:$0xff]  ;;  %v3804_v5 = vld [vmem:[%s6259_s2 + $0x888] sm:$0xff] }
 0x25a   :  { %2592 = vmatpush.msra.mxu3 %v3682_v16  ;;  %2756 = vmatpush.msra.mxu1 %v3716_v27  ;;  %v3783_v16 = vld [vmem:[%s6259_s2 + $0x7f0] sm:$0xff] }
 0x25b   :  { %2828 = vmatpush.msra.mxu2 %v3742_v1  ;;  %2679 = vmatpush.msrb.mxu0 %v3695_v7  ;;  %v3769_v27 = vld [vmem:[%s6259_s2 + $0x790] sm:$0xff]  ;;  %v3803_v1 = vld [vmem:[%s6259_s2 + $0x880] sm:$0xff]  ;;  %v3768_v7 = vld [vmem:[%s6259_s2 + $0x788] sm:$0xff] }
 0x25c   :  { %2593 = vmatpush.msra.mxu3 %v3681_v61  ;;  %2757 = vmatpush.msra.mxu1 %v3715_v14  ;;  %v3802_v61 = vld [vmem:[%s6259_s2 + $0x878] sm:$0xff]  ;;  %v3781_v14 = vld [vmem:[%s6259_s2 + $0x7e0] sm:$0xff] }
 0x25d   :  { %2829 = vmatpush.msra.mxu2 %v3741_v28  ;;  %2680 = vmatpush.msrb.mxu0 %v3694_v23  ;;  %v3767_v28 = vld [vmem:[%s6259_s2 + $0x780] sm:$0xff]  ;;  %v3801_v23 = vld [vmem:[%s6259_s2 + $0x870] sm:$0xff] }
 0x25e   :  { %2594 = vmatpush.msra.mxu3 %v3680_v54  ;;  %2758 = vmatpush.msra.mxu1 %v3714_v30  ;;  %v3780_v54 = vld [vmem:[%s6259_s2 + $0x7d8] sm:$0xff]  ;;  %v3800_v30 = vld [vmem:[%s6259_s2 + $0x868] sm:$0xff] }
 0x25f   :  { %2830 = vmatpush.msra.mxu2 %v3740_v40  ;;  %2681 = vmatpush.msrb.mxu0 %v3693_v22  ;;  %v3779_v40 = vld [vmem:[%s6259_s2 + $0x7d0] sm:$0xff] }
 0x260   :  { %2595 = vmatpush.msra.mxu3 %v3679_v19  ;;  %2759 = vmatpush.msra.mxu1 %v3713_v36  ;;  %v3765_v22 = vld [vmem:[%s6259_s2 + $0x770] sm:$0xff]  ;;  %v3799_v19 = vld [vmem:[%s6259_s2 + $0x860] sm:$0xff]  ;;  %v3778_v36 = vld [vmem:[%s6259_s2 + $0x7c8] sm:$0xff] }
 0x261   :  { %2831 = vmatpush.msra.mxu2 %v3739_v24  ;;  %2682 = vmatpush.msrb.mxu0 %v3692_v17  ;;  %v3764_v24 = vld [vmem:[%s6259_s2 + $0x768] sm:$0xff]  ;;  %v3798_v17 = vld [vmem:[%s6259_s2 + $0x858] sm:$0xff] }
 0x262   :  { %2760 = vmatmul.f32.vlgmr.msra.gmra.mxu1 %v5607_v49  ;;  %2596 = vmatpush.msra.mxu3 %v3678_v9  ;;  %v3772_v49 = vld [vmem:[%s6259_s2 + $0x7a8] sm:$0xff]  ;;  %v3777_v9 = vld [vmem:[%s6259_s2 + $0x7c0] sm:$0xff] }
 0x263   :  { %3795 = vmatpush.msk.msrb.mxu1 %vm379_vm3, %v3794_v33  ;;  %2683 = vmatmul.f32.vlgmr.msrb.gmra.mxu0 %v5612_v60  ;;  %v3736_v60 = vld [vmem:[%s6259_s2 + $0x698] sm:$0xff]  ;;  %v3763_v33 = vld [vmem:[%s6259_s2 + $0x760] sm:$0xff] }
 0x264   :  { %2832 = vmatpush.msra.mxu2 %v3738_v51  ;;  %3774 = vmatpush.msk.msra.mxu0 %vm379_vm3, %v3773_v21  ;;  %v3797_v51 = vld [vmem:[%s6259_s2 + $0x850] sm:$0xff]  ;;  %v3776_v21 = vld [vmem:[%s6259_s2 + $0x7b8] sm:$0xff] }
 0x265   :  { %3007 = vmatpush.msrb.mxu1 %v3793_v13  ;;  %2597 = vmatpush.msra.mxu3 %v3677_v12  ;;  %v3762_v13 = vld [vmem:[%s6259_s2 + $0x758] sm:$0xff]  ;;  %v3761_v12 = vld [vmem:[%s6259_s2 + $0x750] sm:$0xff] }
 0x266   :  { %2833 = vmatpush.msra.mxu2 %v3737_v4  ;;  %2934 = vmatpush.msra.mxu0 %v3772_v49  ;;  %v3760_v4 = vld [vmem:[%s6259_s2 + $0x748] sm:$0xff]  ;;  %v3759_v49 = vld [vmem:[%s6259_s2 + $0x740] sm:$0xff] }
 0x267   :  { %3008 = vmatpush.msrb.mxu1 %v3792_v3  ;;  %2598 = vmatpush.msra.mxu3 %v3676_v44  ;;  %v3757_v3 = vld [vmem:[%s6259_s2 + $0x730] sm:$0xff]  ;;  %v3755_v44 = vld [vmem:[%s6259_s2 + $0x720] sm:$0xff] }
 0x268   :  { %2834 = vmatpush.msra.mxu2 %v3736_v60  ;;  %2935 = vmatpush.msra.mxu0 %v3771_v2 }
 0x269   :  { %3050 = vmatpush.msra.mxu1 %v3812_v62  ;;  %2599 = vmatpush.msra.mxu3 %v3675_v15 }
 0x26a   :  { %2973 = vmatpush.msrb.mxu0 %v3791_v45  ;;  %2835 = vmatpush.msra.mxu2 %v3735_v57 }
 0x26b   :  { %3051 = vmatpush.msra.mxu1 %v3811_v20  ;;  %2600 = vmatpush.msra.mxu3 %v3674_v58  ;;  %v3099_v20 = vld [vmem:[%s6261_s4 + $0x40] sm:$0x1f]  ;;  %v3096_v58 = vld [vmem:[%s6261_s4 + $0x28] sm:$0xff] }
 0x26c   :  { %2974 = vmatpush.msrb.mxu0 %v3790_v63  ;;  %3796 = vmatmul.msk.f32.vlgmr.msrb.gmra.mxu1 %vm1969_vm8, %v5573_v55  ;;  %v3815_v55 = vld [vmem:[%s6259_s2 + $0x8e0] sm:$0x3f]  ;;  %v3098_v63 = vld [vmem:[%s6261_s4 + $0x38] sm:$0xff] }
 0x26d   :  { %2836 = vmatpush.msra.mxu2 %v3734_v26  ;;  %3775 = vmatmul.msk.f32.vlgmr.msra.gmra.mxu0 %vm1969_vm8, %v5594_v8  ;;  %v3808_v8 = vld [vmem:[%s6259_s2 + $0x8a8] sm:$0xff] }
 0x26e   :  { %3052 = vmatpush.msra.mxu1 %v3810_v18  ;;  %2837 = vmatmul.f32.vlgmr.msra.gmra.mxu2 %v5626_v59  ;;  %v3787_v59 = vld [vmem:[%s6259_s2 + $0x810] sm:$0xff] }
 0x26f   :  { %2975 = vmatpush.msrb.mxu0 %v3789_v11  ;;  %2601 = vmatpush.msra.mxu3 %v3673_v0 }
 0x270   :  { %3053 = vmatpush.msra.mxu1 %v3809_v48  ;;  %3816 = vmatpush.msk.msrb.mxu2 %vm379_vm3, %v3815_v55  ;;  %v3823_v55 = vld [vmem:[%s6260_s3] ss:$0 sm:$0xff] }
 0x271   :  { %2976 = vmatpush.msrb.mxu0 %v3788_v39  ;;  %2602 = vmatpush.msra.mxu3 %v3672_v43 }
 0x272   :  { %3054 = vmatpush.msra.mxu1 %v3808_v8  ;;  %3084 = vmatpush.msrb.mxu2 %v3814_v34 }
 0x273   :  { %2977 = vmatpush.msrb.mxu0 %v3787_v59  ;;  %2603 = vmatpush.msra.mxu3 %v3671_v37  ;;  %v3095_v37 = vld [vmem:[%s6261_s4 + $0x20] sm:$0xff] }
 0x274   :  { %3055 = vmatpush.msra.mxu1 %v3807_v46  ;;  %2604 = vmatmul.f32.vlgmr.msra.gmra.mxu3 %v5648_v42  ;;  %v3750_v42 = vld [vmem:[%s6259_s2 + $0x708] sm:$0xff] }
 0x275   :  { %3753 = vmatpush.msk.msrb.mxu3 %vm379_vm3, %v3752_v41  ;;  %2978 = vmatpush.msrb.mxu0 %v3786_v31  ;;  %v3094_v41 = vld [vmem:[%s6261_s4 + $0x18] sm:$0xff] }
 0x276   :  { %3056 = vmatpush.msra.mxu1 %v3806_v35  ;;  %3085 = vmatpush.msrb.mxu2 %v3813_v6  ;;  %v3093_v35 = vld [vmem:[%s6261_s4 + $0x10] sm:$0xff] }
 0x277   :  { %2855 = vmatpush.msrb.mxu3 %v3751_v29  ;;  %2979 = vmatpush.msrb.mxu0 %v3785_v52 }
 0x278   :  { %3817 = vmatmul.msk.f32.vlgmr.msrb.gmra.mxu2 %vm1969_vm8, %v5618_v50  ;;  %3057 = vmatpush.msra.mxu1 %v3805_v53  ;;  %v3782_v50 = vld [vmem:[%s6259_s2 + $0x7e8] sm:$0xff] }
 0x279   :  { %2856 = vmatpush.msrb.mxu3 %v3750_v42  ;;  %2980 = vmatpush.msrb.mxu0 %v3784_v47  ;;  %v3092_v42 = vld [vmem:[%s6261_s4 + $0x8] sm:$0xff] }
 0x27a   :  { %3058 = vmatpush.msra.mxu1 %v3804_v5  ;;  %3818 = vmatpush.msk.msra.mxu2 %vm521_vm4, %v3099_v20  ;;  %v3091_v5 = vld [vmem:[%s6261_s4] sm:$0xff]  ;;  %v3136_v20 = vld [vmem:[%s6262_s5 + $0x28] sm:$0x3f] }
 0x27b   :  { %2900 = vmatpush.msra.mxu3 %v3770_v38  ;;  %2981 = vmatpush.msrb.mxu0 %v3783_v16 }
 0x27c   :  { %3059 = vmatpush.msra.mxu1 %v3803_v1  ;;  %3754 = vmatmul.msk.f32.vlgmr.msrb.gmra.mxu3 %vm1969_vm8, %v5659_v32  ;;  %v3766_v32 = vld [vmem:[%s6259_s2 + $0x778] sm:$0xff] }
 0x27d   :  { %2901 = vmatpush.msra.mxu3 %v3769_v27  ;;  %2982 = vmatpush.msrb.mxu0 %v3782_v50 }
 0x27e   :  { %3060 = vmatpush.msra.mxu1 %v3802_v61  ;;  %3115 = vmatpush.msra.mxu2 %v3098_v63  ;;  %v3135_v63 = vld [vmem:[%s6262_s5 + $0x20] sm:$0xff] }
 0x27f   :  { %2902 = vmatpush.msra.mxu3 %v3768_v7  ;;  %2983 = vmatpush.msrb.mxu0 %v3781_v14 }
 0x280   :  { %3061 = vmatpush.msra.mxu1 %v3801_v23 }
 0x281   :  { %2903 = vmatpush.msra.mxu3 %v3767_v28  ;;  %2984 = vmatpush.msrb.mxu0 %v3780_v54 }
 0x282   :  { %3062 = vmatpush.msra.mxu1 %v3800_v30 }
 0x283   :  { %2904 = vmatpush.msra.mxu3 %v3766_v32  ;;  %2985 = vmatpush.msrb.mxu0 %v3779_v40 }
 0x284   :  { %3063 = vmatpush.msra.mxu1 %v3799_v19 }
 0x285   :  { %2905 = vmatpush.msra.mxu3 %v3765_v22  ;;  %2986 = vmatpush.msrb.mxu0 %v3778_v36 }
 0x286   :  { %3064 = vmatpush.msra.mxu1 %v3798_v17 }
 0x287   :  { %2906 = vmatpush.msra.mxu3 %v3764_v24  ;;  %2987 = vmatpush.msrb.mxu0 %v3777_v9 }
 0x288   :  { %3065 = vmatpush.msra.mxu1 %v3797_v51 }
 0x289   :  { %2907 = vmatpush.msra.mxu3 %v3763_v33  ;;  %2988 = vmatpush.msrb.mxu0 %v3776_v21 }
 0x28a   :  { %3066 = vmatmul.f32.vlgmr.msra.gmra.mxu1 %v5634_v10  ;;  %2989 = vmatmul.f32.vlgmr.msrb.gmra.mxu0 %v5483_v25  ;;  %v3758_v10 = vld [vmem:[%s6259_s2 + $0x738] sm:$0xff]  ;;  %v3756_v25 = vld [vmem:[%s6259_s2 + $0x728] sm:$0xff] }
 0x28b   :  { %2908 = vmatpush.msra.mxu3 %v3762_v13 }
 0x28d   :  { %2909 = vmatpush.msra.mxu3 %v3761_v12 }
 0x28f   :  { %2910 = vmatpush.msra.mxu3 %v3760_v4 }
 0x291   :  { %2911 = vmatpush.msra.mxu3 %v3759_v49 }
 0x293   :  { %2912 = vmatpush.msra.mxu3 %v3758_v10 }
 0x295   :  { %2913 = vmatpush.msra.mxu3 %v3757_v3 }
 0x297   :  { %2914 = vmatpush.msra.mxu3 %v3756_v25 }
 0x298   :  { %v1993_v60 = vpop.f32.mrf.mxu0 }
 0x299   :  { %2915 = vmatpush.msra.mxu3 %v3755_v44  ;;  %v2169_v11 = vpop.f32.mrf.mxu1 }
 0x29a   :  { %2916 = vmatmul.f32.vlgmr.msra.gmra.mxu3 %v5641_v56  ;;  %v3097_v56 = vld [vmem:[%s6261_s4 + $0x30] sm:$0xff] }
 0x29b   :  { %3116 = vmatpush.msra.mxu2 %v3097_v56  ;;  %3820 = vmatpush.msk.msrb.mxu3 %vm379_vm3, %v3136_v20  ;;  %v3134_v56 = vld [vmem:[%s6262_s5 + $0x18] sm:$0xff] }
 0x29d   :  { %3117 = vmatpush.msra.mxu2 %v3096_v58  ;;  %3155 = vmatpush.msrb.mxu3 %v3135_v63  ;;  %v3133_v58 = vld [vmem:[%s6262_s5 + $0x10] sm:$0xff] }
 0x29e   :  { %v2072_v57 = vpop.f32.mrf.mxu2 }
 0x29f   :  { %v2013_v62 = vpop.f32.mrf.mxu3  ;;  %3118 = vmatpush.msra.mxu2 %v3095_v37  ;;  %3156 = vmatpush.msrb.mxu3 %v3134_v56 }
 0x2a0   :  { %v2014_v39 = vadd.f32 %v2013_v62, %v1993_v60 }
 0x2a1   :  { %v2149_v2 = vpop.f32.mrf.mxu0  ;;  %3119 = vmatpush.msra.mxu2 %v3094_v41  ;;  %3157 = vmatpush.msrb.mxu3 %v3133_v58 }
 0x2a2   :  { %v2016_v46 = vadd.f32 %v3823_v55, %v2014_v39  ;;  %v2170_v6 = vadd.f32 %v2169_v11, %v2149_v2 }
 0x2a3   :  { %v2305_v59 = vpop.f32.mrf.mxu1  ;;  %3120 = vmatpush.msra.mxu2 %v3093_v35 }
 0x2a5   :  { %3121 = vmatpush.msra.mxu2 %v3092_v42 }
 0x2a7   :  { %v2092_v15 = vpop.f32.mrf.mxu3  ;;  %3122 = vmatpush.msra.mxu2 %v3091_v5 }
 0x2a8   :  { %v2226_v0 = vpop.f32.mrf.mxu2  ;;  %v2093_v34 = vadd.f32 %v2092_v15, %v2072_v57 }
 0x2aa   :  { %v2398_v45 = vpop.f32.mrf.mxu0  ;;  %v2095_v31 = vadd.f32 %v2093_v34, %v2016_v46 }
 0x2ac   :  { %v2172_v47 = vadd.f32 %v2170_v6, %v2095_v31 }
 0x2af   :  { %v2246_v18 = vpop.f32.mrf.mxu3 }
 0x2b0   :  { %v2247_v29 = vadd.f32 %v2246_v18, %v2226_v0  ;;  %v3131_v18 = vld [vmem:[%s6262_s5] sm:$0xff] }
 0x2b2   :  { %v2475_v26 = vpop.f32.mrf.mxu0  ;;  %v2249_v1 = vadd.f32 %v2247_v29, %v2172_v47 }
 0x2b8   :  { %v2325_v43 = vpop.f32.mrf.mxu3 }
 0x2b9   :  { %v2326_v38 = vadd.f32 %v2325_v43, %v2305_v59 }
 0x2bb   :  { %v2532_v16 = vpop.f32.mrf.mxu1  ;;  %v2328_v7 = vadd.f32 %v2326_v38, %v2249_v1 }
 0x2bd   :  { %v2552_v48 = vpop.f32.mrf.mxu0 }
 0x2be   :  { %v2553_v40 = vadd.f32 %v2552_v48, %v2532_v16 }
 0x2c0   :  { %v2455_v8 = vpop.f32.mrf.mxu2 }
 0x2c1   :  { %v2476_v23 = vadd.f32 %v2475_v26, %v2455_v8  ;;  %v3132_v26 = vld [vmem:[%s6262_s5 + $0x8] sm:$0xff]  ;;  %s3883_s5 = smov [#allocation2]  }
 0x2c2   :  { %3158 = vmatpush.msrb.mxu3 %v3132_v26  ;;  %s3183_s8 = sshll.u32 %s3883_s5, 4  ;;  %s3184_s8 = int_to_ptr.vmem [resolvable:$true] %s3183_s8 }
 0x2c4   :  { %3159 = vmatpush.msrb.mxu3 %v3131_v18 }
 0x2c6   :  { %v2625_v52 = vpop.f32.mrf.mxu0 }
 0x2cb   :  { %v2704_v27 = vpop.f32.mrf.mxu2 }
 0x2d4   :  { %v2378_v53 = vpop.f32.mrf.mxu3 }
 0x2d5   :  { %v2399_v50 = vadd.f32 %v2398_v45, %v2378_v53  ;;  %v2781_v30 = vpop.f32.mrf.mxu2 }
 0x2d7   :  { %v2401_v61 = vadd.f32 %v2399_v50, %v2328_v7 }
 0x2d9   :  { %v2478_v32 = vadd.f32 %v2476_v23, %v2401_v61 }
 0x2db   :  { %v2555_v19 = vadd.f32 %v2553_v40, %v2478_v32 }
 0x2df   :  { %v2761_v54 = vpop.f32.mrf.mxu1 }
 0x2e0   :  { %v2684_v14 = vpop.f32.mrf.mxu0  ;;  %v2782_v13 = vadd.f32 %v2781_v30, %v2761_v54 }
 0x2e1   :  { %v2705_v9 = vadd.f32 %v2704_v27, %v2684_v14 }
 0x2e9   :  { %v3010_v33 = vpop.f32.mrf.mxu1 }
 0x2ea   :  { %v2937_v24 = vpop.f32.mrf.mxu0 }
 0x2f1   :  { %v2838_v51 = vpop.f32.mrf.mxu2 }
 0x2f7   :  { %v2605_v28 = vpop.f32.mrf.mxu3 }
 0x2f8   :  { %v2626_v22 = vadd.f32 %v2625_v52, %v2605_v28 }
 0x2fa   :  { %v2628_v36 = vadd.f32 %v2626_v22, %v2555_v19 }
 0x2fb   :  { %v3087_v62 = vpop.f32.mrf.mxu2 }
 0x2fc   :  { %v2707_v21 = vadd.f32 %v2705_v9, %v2628_v36 }
 0x2fe   :  { %v2784_v4 = vadd.f32 %v2782_v13, %v2707_v21 }
 0x2ff   :  { %v2858_v17 = vpop.f32.mrf.mxu3 }
 0x300   :  { %v2859_v12 = vadd.f32 %v2858_v17, %v2838_v51 }
 0x302   :  { %v2861_v3 = vadd.f32 %v2859_v12, %v2784_v4 }
 0x307   :  { %v2990_v49 = vpop.f32.mrf.mxu0  ;;  %v3067_v44 = vpop.f32.mrf.mxu1 }
 0x308   :  { %v3011_v60 = vadd.f32 %v3010_v33, %v2990_v49  ;;  %v3088_v45 = vadd.f32 %v3087_v62, %v3067_v44 }
 0x31d   :  { %v2917_v10 = vpop.f32.mrf.mxu3 }
 0x31e   :  { %v2938_v25 = vadd.f32 %v2937_v24, %v2917_v10 }
 0x320   :  { %v2940_v2 = vadd.f32 %v2938_v25, %v2861_v3 }
 0x322   :  { %v3013_v15 = vadd.f32 %v3011_v60, %v2940_v2 }
 0x324   :  { %v3090_v57 = vadd.f32 %v3088_v45, %v3013_v15 }
 0x326   :  { %3819 = vmatmul.msk.f32.vlgmr.msra.gmra.mxu2 %vm3100_vm9, %v3090_v57 }
 0x3a9   :  { %v3124_v11 = vpop.f32.mrf.mxu2 }
 0x3aa   :  { %v3127_v0 = vmul.f32 0.5, %v3124_v11 }
 0x3ac   :  { %3844 = vtanh.f32 %v3127_v0 }
 0x3b2   :  { %v3845_v48 = vpop.eup %3844 }
 0x3b3   :  { %v3129_v55 = vadd.f32 1.0, %v3845_v48 }
 0x3b5   :  { %v3130_v39 = vmul.f32 0.5, %v3129_v55 }
 0x3b7   :  { %3821 = vmatmul.msk.f32.vlgmr.msrb.gmra.mxu3 %vm3137_vm10, %v3130_v39 }
 0x43a   :  { %v3161_v43 = vpop.f32.mrf.mxu3 }
 0x43b   :  { %v3165_v8 = vsel %vm3164_vm11, %v3161_v43, -inf }
 0x43c   :  { %3166 = vmax.xlane.f32.xlu0 %v3165_v8 }
 0x4af   :  { %v3167_v34 = vpop.xlane.xlu0 %3166 }
 0x4b0   :  { %v3168_v59 = vsub.f32 %v3161_v43, %v3167_v34 }
 0x4b2   :  { %v3169_v37 = vmul.f32 1.442695, %v3168_v59 }
 0x4b4   :  { %3846 = vpow2.f32 %v3169_v37 }
 0x4ba   :  { %v3847_v46 = vpop.eup %3846 }
 0x4bb   :  { %v3171_v41 = vsel %vm3164_vm11, %v3847_v46, 0.0 }
 0x4bc   :  { %3172 = vadd.xlane.f32.xlu0 %v3171_v41 }
 0x52f   :  { %v3173_v31 = vpop.xlane.xlu0 %3172 }
 0x530   :  { %3848 = vlog2.f32 %v3173_v31 }
 0x536   :  { %v3849_v35 = vpop.eup %3848 }
 0x537   :  { %v3175_v6 = vmul.f32 0.6931472, %v3849_v35 }
 0x539   :  { %v3176_v29 = vsub.f32 %v3168_v59, %v3175_v6 }
 0x53b   :  { %3177 = vst.msk [vmem:[#allocation2] sm:$0x3] %vm3164_vm11, %v3176_v29 }
 0x53c   :  { %3188 = dma.vmem_to_hbm [thread:$0]  %s3184_s8, 32, %s3186_s10, [#allocation3]  }
 0x53d   :  { %3881 = dma.done.wait [#allocation3], 32  }
 0x53e   :  { %3882 = vsyncadd [#allocation3], 4294967264 }
 0x53f   :  { %3193 = vsyncpa [#allocation3], 1 }

</bundles_post_ra>
